<compile_context>
chip_gen: v5e
topology: v5e:2x2
jax: 0.10.0
libtpu: 0.0.40
codegen_flags: <defaults>
</compile_context>

<pallas_src>
import jax
import jax.numpy as jnp
from jax.experimental import pallas as pl
from jax.experimental.pallas import tpu as pltpu


# --------------------------------------------------------------------------
# small helpers
# --------------------------------------------------------------------------
def _round_up(x, m):
    return -(-x // m) * m


def _silu(x):
    return x * jax.nn.sigmoid(x)


def _dot(a, w):
    # MXU matmul: cast the activation to the weight dtype (bf16 for the matmul
    # weights), accumulate in f32.
    return jnp.dot(a.astype(w.dtype), w, preferred_element_type=jnp.float32)


# --------------------------------------------------------------------------
# weight slab packing (host side)
# --------------------------------------------------------------------------
class _SlabPacker:
    """Packs many small weight tensors into one tile-aligned 2-D slab so the
    kernel takes a handful of inputs instead of ~40.  Row offsets are aligned
    (16 rows for bf16, 8 for f32) so the in-kernel static slices are cheap."""

    def __init__(self, row_align, out_dtype):
        self.row_align = row_align
        self.out_dtype = out_dtype
        self._items = []

    def add(self, name, arr):
        arr = jnp.asarray(arr, jnp.float32)
        if arr.ndim == 1:
            arr = arr[None, :]
        self._items.append((name, arr))

    def pack(self):
        lanes = _round_up(max(a.shape[1] for _, a in self._items), 128)
        layout, blocks, off = {}, [], 0
        for name, a in self._items:
            r, c = a.shape
            rp = _round_up(r, self.row_align)
            blk = jnp.zeros((rp, lanes), jnp.float32).at[:r, :c].set(a)
            blocks.append(blk)
            layout[name] = (off, r, c)
            off += rp
        return jnp.concatenate(blocks, axis=0).astype(self.out_dtype), layout


def _add_egnn(pfx, p, wslab, vslab):
    dim = p["w1_fi"].shape[0]
    h1w = p["w1_fi"].shape[1]
    half = _round_up(h1w, 128)
    # Fused feats_i|feats_j weight: each half padded to a 128-lane boundary so
    # the in-kernel split of the dot result is vreg-aligned.
    w1f = jnp.zeros((dim, 2 * half), jnp.float32)
    w1f = w1f.at[:, :h1w].set(p["w1_fi"]).at[:, half:half + h1w].set(p["w1_fj"])
    wslab.add(pfx + "/w1f", w1f)
    wslab.add(pfx + "/w1e", p["w1_e"])
    wslab.add(pfx + "/w2", p["w2"])
    wslab.add(pfx + "/wc1", p["wc1"])
    wslab.add(pfx + "/wn1f", p["wn1_f"])
    wslab.add(pfx + "/wn1m", p["wn1_m"])
    wslab.add(pfx + "/wn2", p["wn2"])
    vslab.add(pfx + "/w1rd", p["w1_rd"])
    vslab.add(pfx + "/b1", p["b1"])
    vslab.add(pfx + "/b2", p["b2"])
    vslab.add(pfx + "/bc1", p["bc1"])
    vslab.add(pfx + "/wc2", p["wc2"].T)   # [1, 4*m_dim] row for the VPU path
    vslab.add(pfx + "/bc2", p["bc2"])
    vslab.add(pfx + "/bn1", p["bn1"])
    vslab.add(pfx + "/bn2", p["bn2"])


def _pack_params(params):
    wslab = _SlabPacker(row_align=16, out_dtype=jnp.bfloat16)
    vslab = _SlabPacker(row_align=8, out_dtype=jnp.float32)
    _add_egnn("enc", params["egnn1"], wslab, vslab)
    _add_egnn("dec", params["egnn4"], wslab, vslab)
    wmu, bmu = params["fc1"]
    wlv, blv = params["fc2"]
    w3, b3 = params["fc3"]
    wslab.add("fc/wmulv", jnp.concatenate([wmu, wlv], axis=1))   # fused fc1|fc2
    vslab.add("fc/bmulv", jnp.concatenate([bmu, blv], axis=1))
    wslab.add("fc/w3", w3)
    vslab.add("fc/b3", b3)
    w_packed, w_layout = wslab.pack()
    v_packed, v_layout = vslab.pack()
    return w_packed, w_layout, v_packed, v_layout


# --------------------------------------------------------------------------
# in-kernel EGNN layer (lucidrains egnn-pytorch defaults: sum pooling, no
# feat/coor norm, residual node update; self pairs included)
# --------------------------------------------------------------------------
def _egnn_layer(feats, coors, edges, W, V, pfx, dim, m_dim, edge_dim, Bb, N):
    """feats: [Bb*N, dim] f32, coors: [Bb*N, 3] f32, edges: [Bb*N*N, edge_dim]
    f32 (pair row k = b*N*N + i*N + j)."""
    h1w = 2 * (2 * dim + edge_dim + 1)
    half = _round_up(h1w, 128)

    # --- edge MLP first layer: node-dependent halves hoisted to node space,
    #     feats_i / feats_j weights fused into ONE dot -----------------------
    hij = _dot(feats, W(pfx + "/w1f"))          # [Bb*N, 2*half]
    hi = hij[:, :h1w]                           # lane-prefix slice (free)
    hj = hij[:, half:half + h1w]                # vreg-aligned slice (free)

    # Pair expansion per batch element (static unroll, rank <= 3 throughout).
    hp_blocks, rel_blocks = [], []
    for b in range(Bb):
        s0 = b * N
        hi_b = hi[s0:s0 + N]
        hj_b = hj[s0:s0 + N]
        c_b = coors[s0:s0 + N]
        hp_blocks.append((hi_b[:, None, :] + hj_b[None, :, :]).reshape(N * N, h1w))
        rel_blocks.append((c_b[:, None, :] - c_b[None, :, :]).reshape(N * N, 3))
    h_pair = jnp.concatenate(hp_blocks, axis=0)          # [Bb*N*N, h1w]
    rel = jnp.concatenate(rel_blocks, axis=0)            # [Bb*N*N, 3]
    rel_dist = jnp.sum(rel * rel, axis=-1, keepdims=True)  # [Bb*N*N, 1]

    # TODO(synk): matches norm_rel_coors=False (raw rel coors); recent
    # egnn-pytorch defaults normalize rel_coors before the coordinate update.
    h1 = _silu(h_pair
               + rel_dist * V(pfx + "/w1rd")
               + _dot(edges, W(pfx + "/w1e"))
               + V(pfx + "/b1"))
    m_ij = _silu(_dot(h1, W(pfx + "/w2")) + V(pfx + "/b2"))        # [Bb*N*N, M]

    # --- coors MLP: width-1 output matmul done on VPU + lane reduction ------
    ch = _silu(_dot(m_ij, W(pfx + "/wc1")) + V(pfx + "/bc1"))      # [.., 4M]
    cw = jnp.sum(ch * V(pfx + "/wc2"), axis=-1, keepdims=True) + V(pfx + "/bc2")

    # --- aggregation over j: sublane-axis reduction (N == 8) ----------------
    coors_out = coors + jnp.sum((cw * rel).reshape(Bb * N, N, 3), axis=1)
    m_i = jnp.sum(m_ij.reshape(Bb * N, N, m_dim), axis=1)          # [Bb*N, M]

    # --- node MLP + residual --------------------------------------------------
    h2 = _silu(_dot(feats, W(pfx + "/wn1f")) + _dot(m_i, W(pfx + "/wn1m"))
               + V(pfx + "/bn1"))
    feats_out = feats + _dot(h2, W(pfx + "/wn2")) + V(pfx + "/bn2")
    return feats_out, coors_out


def _make_kernel(wlay, vlay, Bb, N, D, E, M, L, OUT):
    def kernel(feats_ref, coors_ref, edges_ref, eps_ref, wslab_ref, vslab_ref,
               x_ref, mu_ref, lv_ref):
        f32 = jnp.float32

        def W(name):
            r0, r, c = wlay[name]
            return wslab_ref[pl.ds(r0, r), pl.ds(0, c)]

        def V(name):
            r0, r, c = vlay[name]
            return vslab_ref[pl.ds(r0, r), pl.ds(0, c)]

        feats = feats_ref[...].reshape(Bb * N, D).astype(f32)
        coors = coors_ref[...].reshape(Bb * N, 3).astype(f32)
        edges = edges_ref[...].reshape(Bb * N * N, E).astype(f32)
        eps = eps_ref[...].reshape(Bb * N, L).astype(f32)

        # ---- encoder (egnn1) --------------------------------------------------
        f1, c1 = _egnn_layer(feats, coors, edges, W, V, "enc", D, M, E, Bb, N)

        # ---- VAE head: fc1|fc2 fused into one dot; reparameterize -------------
        mulv = _dot(f1, W("fc/wmulv")) + V("fc/bmulv")     # [Bb*N, 2L]
        mu = mulv[:, :L]
        lv = mulv[:, L:2 * L]
        z = mu + eps * jnp.exp(lv * 0.5)

        # ---- decoder (egnn4) + fc3 (decoded coors are discarded) --------------
        f4, _ = _egnn_layer(z, c1, edges, W, V, "dec", L, M, E, Bb, N)
        x_hat = _dot(f4, W("fc/w3")) + V("fc/b3")

        # ---- three separate narrow stores (no lane concat) ---------------------
        x_ref[...] = x_hat.reshape(Bb, N, OUT).astype(x_ref.dtype)
        mu_ref[...] = mu.reshape(Bb, N, L).astype(mu_ref.dtype)
        lv_ref[...] = lv.reshape(Bb, N, L).astype(lv_ref.dtype)

    return kernel


# --------------------------------------------------------------------------
# Wrapper: one pallas_call for the whole forward.
# --------------------------------------------------------------------------
def vgae_forward(params, feats, coors, edges, eps, *, batch_block=None):
    B, N, D = feats.shape
    E = edges.shape[-1]
    L = params["fc1"][0].shape[1]
    OUT = params["fc3"][0].shape[1]
    M = params["egnn1"]["w2"].shape[1]

    if batch_block is None:
        # Keep >= 2 grid steps so both v7x TensorCores get work while folding
        # the rest of the batch into each step (fills MXU rows).  On single-TC
        # chips (v5e/v6e) pass batch_block=B to fold the whole batch into one
        # grid step and save the per-step pipeline overhead.
        batch_block = B if B < 2 else B // 2
        while B % batch_block:
            batch_block -= 1
    assert B % batch_block == 0
    Bb = batch_block

    edges_flat = edges.reshape(B, N * N, E)   # pair row k = i*N + j
    wslab, wlay, vslab, vlay = _pack_params(params)
    kernel = _make_kernel(wlay, vlay, Bb, N, D, E, M, L, OUT)

    data_specs = [pl.BlockSpec((Bb, N, D), lambda b: (b, 0, 0)),
                  pl.BlockSpec((Bb, N, 3), lambda b: (b, 0, 0)),
                  pl.BlockSpec((Bb, N * N, E), lambda b: (b, 0, 0)),
                  pl.BlockSpec((Bb, N, L), lambda b: (b, 0, 0))]
    # Weight slabs: constant block index -> stay resident across grid steps.
    slab_specs = [pl.BlockSpec(wslab.shape, lambda b: (0, 0)),
                  pl.BlockSpec(vslab.shape, lambda b: (0, 0))]
    out_specs = [pl.BlockSpec((Bb, N, OUT), lambda b: (b, 0, 0)),
                 pl.BlockSpec((Bb, N, L), lambda b: (b, 0, 0)),
                 pl.BlockSpec((Bb, N, L), lambda b: (b, 0, 0))]
    out_shape = (jax.ShapeDtypeStruct((B, N, OUT), jnp.float32),
                 jax.ShapeDtypeStruct((B, N, L), jnp.float32),
                 jax.ShapeDtypeStruct((B, N, L), jnp.float32))

    x_hat, mu, logvar = pl.pallas_call(
        kernel,
        out_shape=out_shape,
        grid_spec=pltpu.PrefetchScalarGridSpec(
            num_scalar_prefetch=0, grid=(B // Bb,),
            in_specs=data_specs + slab_specs,
            out_specs=out_specs),
        compiler_params=pltpu.CompilerParams(
            dimension_semantics=("parallel",)),   # v7x: grid steps split on TCs
    )(feats, coors, edges_flat, eps, wslab, vslab)
    return x_hat, mu, logvar


# --------------------------------------------------------------------------
# Pure-JAX f32 reference (same math, no bf16, no packing) for validation.
# --------------------------------------------------------------------------
def _egnn_ref(p, feats, coors, edges):
    B, N, dim = feats.shape
    fi = jnp.broadcast_to(feats[:, :, None, :], (B, N, N, dim))
    fj = jnp.broadcast_to(feats[:, None, :, :], (B, N, N, dim))
    rel = coors[:, :, None, :] - coors[:, None, :, :]
    rel_dist = jnp.sum(rel * rel, axis=-1, keepdims=True)
    edge_in = jnp.concatenate([fi, fj, rel_dist, edges], axis=-1)
    w1 = jnp.concatenate([p["w1_fi"], p["w1_fj"], p["w1_rd"], p["w1_e"]], axis=0)
    h1 = _silu(edge_in @ w1 + p["b1"])
    m_ij = _silu(h1 @ p["w2"] + p["b2"])
    cw = _silu(m_ij @ p["wc1"] + p["bc1"]) @ p["wc2"] + p["bc2"]
    coors_out = coors + jnp.sum(cw * rel, axis=2)
    m_i = jnp.sum(m_ij, axis=2)
    wn1 = jnp.concatenate([p["wn1_f"], p["wn1_m"]], axis=0)
    h2 = _silu(jnp.concatenate([feats, m_i], axis=-1) @ wn1 + p["bn1"])
    feats_out = feats + h2 @ p["wn2"] + p["bn2"]
    return feats_out, coors_out


def vgae_forward_ref(params, feats, coors, edges, eps):
    f1, c1 = _egnn_ref(params["egnn1"], feats, coors, edges)
    mu = f1 @ params["fc1"][0] + params["fc1"][1]
    lv = f1 @ params["fc2"][0] + params["fc2"][1]
    z = mu + eps * jnp.exp(lv * 0.5)
    f4, _ = _egnn_ref(params["egnn4"], z, c1, edges)
    x_hat = f4 @ params["fc3"][0] + params["fc3"][1]
    return x_hat, mu, lv


# --------------------------------------------------------------------------
# Parameter initialization (deterministic, PyTorch-Linear-style uniform init)
# --------------------------------------------------------------------------
def _linear_init(key, fan_in, fan_out):
    kw, kb = jax.random.split(key)
    bound = 1.0 / float(fan_in) ** 0.5
    w = jax.random.uniform(kw, (fan_in, fan_out), jnp.float32, -bound, bound)
    b = jax.random.uniform(kb, (1, fan_out), jnp.float32, -bound, bound)
    return w, b


def _egnn_init(key, dim, edge_dim, m_dim):
    fin = 2 * dim + edge_dim + 1
    h1 = 2 * fin
    keys = jax.random.split(key, 6)
    w1, b1 = _linear_init(keys[0], fin, h1)
    w2, b2 = _linear_init(keys[1], h1, m_dim)
    wc1, bc1 = _linear_init(keys[2], m_dim, 4 * m_dim)
    wc2, bc2 = _linear_init(keys[3], 4 * m_dim, 1)
    wn1, bn1 = _linear_init(keys[4], dim + m_dim, 2 * dim)
    wn2, bn2 = _linear_init(keys[5], 2 * dim, dim)
    return {
        "w1_fi": w1[:dim], "w1_fj": w1[dim:2 * dim],
        "w1_rd": w1[2 * dim:2 * dim + 1], "w1_e": w1[2 * dim + 1:], "b1": b1,
        "w2": w2, "b2": b2,
        "wc1": wc1, "bc1": bc1, "wc2": wc2, "bc2": bc2,
        "wn1_f": wn1[:dim], "wn1_m": wn1[dim:], "bn1": bn1,
        "wn2": wn2, "bn2": bn2,
    }


if __name__ == "__main__":
    B, N = 4, 8
    D = 26          # num_nodes_feature (20 residue classes + 6 extra feats)
    M = 16          # hidden_channels (EGNN m_dim)
    L = 8           # latent_channels
    OUT = 20        # output_feature
    E = 4           # edge_dim

    key = jax.random.PRNGKey(0)
    k_feats, k_coors, k_edges, k_eps, k_p = jax.random.split(key, 5)
    feats = jax.random.normal(k_feats, (B, N, D), jnp.float32)
    coors = jax.random.normal(k_coors, (B, N, 3), jnp.float32)
    # `edge_index` in the PyTorch forward is the dense [B, N, N, E] edge-feature
    # tensor coming out of utils.to_dense.
    edges = jax.random.normal(k_edges, (B, N, N, E), jnp.float32)
    # TODO(synk): torch.randn_like inside reparameterize is generated host-side
    # here (could move in-kernel with pltpu.prng_seed + pltpu.stateful_normal).
    eps = jax.random.normal(k_eps, (B, N, L), jnp.float32)

    kp = jax.random.split(k_p, 5)
    params = {
        "egnn1": _egnn_init(kp[0], D, E, M),
        "egnn4": _egnn_init(kp[1], L, E, M),
        "fc1": _linear_init(kp[2], D, L),
        "fc2": _linear_init(kp[3], D, L),
        "fc3": _linear_init(kp[4], L, OUT),
    }

    x_hat, mu, logvar = jax.jit(vgae_forward)(params, feats, coors, edges, eps)
    jax.block_until_ready((x_hat, mu, logvar))

    assert x_hat.shape == (B, N, OUT)
    assert mu.shape == (B, N, L) and logvar.shape == (B, N, L)
    assert bool(jnp.all(jnp.isfinite(x_hat)))
    assert bool(jnp.all(jnp.isfinite(mu))) and bool(jnp.all(jnp.isfinite(logvar)))

    # Tolerance-asserted pure-JAX f32 reference (bf16 weight path => loose tol).
    xr, mur, lvr = vgae_forward_ref(params, feats, coors, edges, eps)
    assert bool(jnp.allclose(x_hat, xr, rtol=0.1, atol=0.1))
    assert bool(jnp.allclose(mu, mur, rtol=0.1, atol=0.1))
    assert bool(jnp.allclose(logvar, lvr, rtol=0.1, atol=0.1))

    print("KERNEL_OK")
</pallas_src>

<mosaic_0001>
module attributes {stable_mosaic.version = 11 : i64} {
  func.func @kernel(%arg0: i32, %arg1: memref<2x8x26xf32, #tpu.memory_space<vmem>>, %arg2: memref<2x8x3xf32, #tpu.memory_space<vmem>>, %arg3: memref<2x64x4xf32, #tpu.memory_space<vmem>>, %arg4: memref<2x8x8xf32, #tpu.memory_space<vmem>>, %arg5: memref<496x256xbf16, #tpu.memory_space<vmem>>, %arg6: memref<144x128xf32, #tpu.memory_space<vmem>>, %arg7: memref<2x8x20xf32, #tpu.memory_space<vmem>>, %arg8: memref<2x8x8xf32, #tpu.memory_space<vmem>>, %arg9: memref<2x8x8xf32, #tpu.memory_space<vmem>>) attributes {dimension_semantics = [#tpu.dimension_semantics<parallel>], iteration_bounds = array<i64: 2>, scalar_prefetch = 0 : i64, scratch_operands = 0 : i64, tpu.core_type = #tpu.core_type<tc>, window_params = [{transform_indices = @transform_0, window_bounds = array<i64: 2, 8, 26>}, {transform_indices = @transform_1, window_bounds = array<i64: 2, 8, 3>}, {transform_indices = @transform_2, window_bounds = array<i64: 2, 64, 4>}, {transform_indices = @transform_3, window_bounds = array<i64: 2, 8, 8>}, {pipeline_mode = #tpu.pipeline_mode<synchronous>, transform_indices = @transform_4, window_bounds = array<i64: 496, 256>}, {pipeline_mode = #tpu.pipeline_mode<synchronous>, transform_indices = @transform_5, window_bounds = array<i64: 144, 128>}, {transform_indices = @transform_6, window_bounds = array<i64: 2, 8, 20>}, {transform_indices = @transform_7, window_bounds = array<i64: 2, 8, 8>}, {transform_indices = @transform_8, window_bounds = array<i64: 2, 8, 8>}]} {
    %c0 = arith.constant 0 : index
    %c0_0 = arith.constant 0 : index
    %c0_1 = arith.constant 0 : index
    %0 = vector.load %arg1[%c0, %c0_0, %c0_1] : memref<2x8x26xf32, #tpu.memory_space<vmem>>, vector<2x8x26xf32>
    %1 = vector.shape_cast %0 : vector<2x8x26xf32> to vector<16x26xf32>
    %c0_2 = arith.constant 0 : index
    %c0_3 = arith.constant 0 : index
    %c0_4 = arith.constant 0 : index
    %2 = vector.load %arg2[%c0_2, %c0_3, %c0_4] : memref<2x8x3xf32, #tpu.memory_space<vmem>>, vector<2x8x3xf32>
    %3 = vector.shape_cast %2 : vector<2x8x3xf32> to vector<16x3xf32>
    %c0_5 = arith.constant 0 : index
    %c0_6 = arith.constant 0 : index
    %c0_7 = arith.constant 0 : index
    %4 = vector.load %arg3[%c0_5, %c0_6, %c0_7] : memref<2x64x4xf32, #tpu.memory_space<vmem>>, vector<2x64x4xf32>
    %5 = vector.shape_cast %4 : vector<2x64x4xf32> to vector<128x4xf32>
    %c0_8 = arith.constant 0 : index
    %c0_9 = arith.constant 0 : index
    %c0_10 = arith.constant 0 : index
    %6 = vector.load %arg4[%c0_8, %c0_9, %c0_10] : memref<2x8x8xf32, #tpu.memory_space<vmem>>, vector<2x8x8xf32>
    %7 = vector.shape_cast %6 : vector<2x8x8xf32> to vector<16x8xf32>
    %c0_11 = arith.constant 0 : index
    %c0_12 = arith.constant 0 : index
    %8 = vector.load %arg5[%c0_11, %c0_12] : memref<496x256xbf16, #tpu.memory_space<vmem>>, vector<26x256xbf16>
    %9 = arith.truncf %1 : vector<16x26xf32> to vector<16x26xbf16>
    %cst = arith.constant dense<0.000000e+00> : vector<16x256xf32>
    %10 = tpu.matmul %9, %8, %cst {dimension_numbers = #tpu.dot_dimension_numbers<[1], [0], [0], [1], [0, 0, 1, 1], [], []>} : vector<16x26xbf16>, vector<26x256xbf16>, vector<16x256xf32> -> vector<16x256xf32>
    %11 = vector.extract_strided_slice %10 {offsets = [0, 0], sizes = [16, 114], strides = [1, 1]} : vector<16x256xf32> to vector<16x114xf32>
    %12 = vector.extract_strided_slice %10 {offsets = [0, 128], sizes = [16, 114], strides = [1, 1]} : vector<16x256xf32> to vector<16x114xf32>
    %13 = vector.extract_strided_slice %11 {offsets = [0, 0], sizes = [8, 114], strides = [1, 1]} : vector<16x114xf32> to vector<8x114xf32>
    %14 = vector.extract_strided_slice %12 {offsets = [0, 0], sizes = [8, 114], strides = [1, 1]} : vector<16x114xf32> to vector<8x114xf32>
    %15 = vector.extract_strided_slice %3 {offsets = [0, 0], sizes = [8, 3], strides = [1, 1]} : vector<16x3xf32> to vector<8x3xf32>
    %16 = vector.shape_cast %13 : vector<8x114xf32> to vector<8x1x114xf32>
    %17 = vector.shape_cast %14 : vector<8x114xf32> to vector<1x8x114xf32>
    %18 = vector.broadcast %16 : vector<8x1x114xf32> to vector<8x8x114xf32>
    %19 = vector.broadcast %17 : vector<1x8x114xf32> to vector<8x8x114xf32>
    %20 = arith.addf %18, %19 : vector<8x8x114xf32>
    %21 = vector.shape_cast %20 : vector<8x8x114xf32> to vector<64x114xf32>
    %22 = vector.shape_cast %15 : vector<8x3xf32> to vector<8x1x3xf32>
    %23 = vector.shape_cast %15 : vector<8x3xf32> to vector<1x8x3xf32>
    %24 = vector.broadcast %22 : vector<8x1x3xf32> to vector<8x8x3xf32>
    %25 = vector.broadcast %23 : vector<1x8x3xf32> to vector<8x8x3xf32>
    %26 = arith.subf %24, %25 : vector<8x8x3xf32>
    %27 = vector.shape_cast %26 : vector<8x8x3xf32> to vector<64x3xf32>
    %28 = vector.extract_strided_slice %11 {offsets = [8, 0], sizes = [8, 114], strides = [1, 1]} : vector<16x114xf32> to vector<8x114xf32>
    %29 = vector.extract_strided_slice %12 {offsets = [8, 0], sizes = [8, 114], strides = [1, 1]} : vector<16x114xf32> to vector<8x114xf32>
    %30 = vector.extract_strided_slice %3 {offsets = [8, 0], sizes = [8, 3], strides = [1, 1]} : vector<16x3xf32> to vector<8x3xf32>
    %31 = vector.shape_cast %28 : vector<8x114xf32> to vector<8x1x114xf32>
    %32 = vector.shape_cast %29 : vector<8x114xf32> to vector<1x8x114xf32>
    %33 = vector.broadcast %31 : vector<8x1x114xf32> to vector<8x8x114xf32>
    %34 = vector.broadcast %32 : vector<1x8x114xf32> to vector<8x8x114xf32>
    %35 = arith.addf %33, %34 : vector<8x8x114xf32>
    %36 = vector.shape_cast %35 : vector<8x8x114xf32> to vector<64x114xf32>
    %37 = vector.shape_cast %30 : vector<8x3xf32> to vector<8x1x3xf32>
    %38 = vector.shape_cast %30 : vector<8x3xf32> to vector<1x8x3xf32>
    %39 = vector.broadcast %37 : vector<8x1x3xf32> to vector<8x8x3xf32>
    %40 = vector.broadcast %38 : vector<1x8x3xf32> to vector<8x8x3xf32>
    %41 = arith.subf %39, %40 : vector<8x8x3xf32>
    %42 = vector.shape_cast %41 : vector<8x8x3xf32> to vector<64x3xf32>
    %43 = tpu.concatenate %21, %36 in 0 : vector<64x114xf32>, vector<64x114xf32> -> vector<128x114xf32>
    %44 = tpu.concatenate %27, %42 in 0 : vector<64x3xf32>, vector<64x3xf32> -> vector<128x3xf32>
    %45 = arith.mulf %44, %44 : vector<128x3xf32>
    %cst_13 = arith.constant dense<0.000000e+00> : vector<128xf32>
    %46 = vector.multi_reduction <add>, %45, %cst_13 [1] : vector<128x3xf32> to vector<128xf32>
    %47 = vector.shape_cast %46 : vector<128xf32> to vector<128x1xf32>
    %c0_14 = arith.constant 0 : index
    %c0_15 = arith.constant 0 : index
    %48 = vector.load %arg6[%c0_14, %c0_15] : memref<144x128xf32, #tpu.memory_space<vmem>>, vector<1x114xf32>
    %49 = vector.broadcast %47 : vector<128x1xf32> to vector<128x114xf32>
    %50 = vector.broadcast %48 : vector<1x114xf32> to vector<128x114xf32>
    %51 = arith.mulf %49, %50 : vector<128x114xf32>
    %52 = arith.addf %43, %51 : vector<128x114xf32>
    %c32 = arith.constant 32 : index
    %c0_16 = arith.constant 0 : index
    %53 = vector.load %arg5[%c32, %c0_16] : memref<496x256xbf16, #tpu.memory_space<vmem>>, vector<4x114xbf16>
    %54 = arith.truncf %5 : vector<128x4xf32> to vector<128x4xbf16>
    %cst_17 = arith.constant dense<0.000000e+00> : vector<128x114xf32>
    %55 = tpu.matmul %54, %53, %cst_17 {dimension_numbers = #tpu.dot_dimension_numbers<[1], [0], [0], [1], [0, 0, 1, 1], [], []>} : vector<128x4xbf16>, vector<4x114xbf16>, vector<128x114xf32> -> vector<128x114xf32>
    %56 = arith.addf %52, %55 : vector<128x114xf32>
    %c8 = arith.constant 8 : index
    %c0_18 = arith.constant 0 : index
    %57 = vector.load %arg6[%c8, %c0_18] : memref<144x128xf32, #tpu.memory_space<vmem>>, vector<1x114xf32>
    %58 = vector.broadcast %57 : vector<1x114xf32> to vector<128x114xf32>
    %59 = arith.addf %56, %58 : vector<128x114xf32>
    %60 = arith.negf %59 : vector<128x114xf32>
    %61 = math.exp %60 : vector<128x114xf32>
    %cst_19 = arith.constant 1.000000e+00 : f32
    %62 = vector.broadcast %cst_19 : f32 to vector<128x114xf32>
    %63 = arith.addf %62, %61 : vector<128x114xf32>
    %64 = arith.divf %62, %63 : vector<128x114xf32>
    %65 = arith.mulf %59, %64 : vector<128x114xf32>
    %c48 = arith.constant 48 : index
    %c0_20 = arith.constant 0 : index
    %66 = vector.load %arg5[%c48, %c0_20] : memref<496x256xbf16, #tpu.memory_space<vmem>>, vector<114x16xbf16>
    %67 = arith.truncf %65 : vector<128x114xf32> to vector<128x114xbf16>
    %cst_21 = arith.constant dense<0.000000e+00> : vector<128x16xf32>
    %68 = tpu.matmul %67, %66, %cst_21 {dimension_numbers = #tpu.dot_dimension_numbers<[1], [0], [0], [1], [0, 0, 1, 1], [], []>} : vector<128x114xbf16>, vector<114x16xbf16>, vector<128x16xf32> -> vector<128x16xf32>
    %c16 = arith.constant 16 : index
    %c0_22 = arith.constant 0 : index
    %69 = vector.load %arg6[%c16, %c0_22] : memref<144x128xf32, #tpu.memory_space<vmem>>, vector<1x16xf32>
    %70 = vector.broadcast %69 : vector<1x16xf32> to vector<128x16xf32>
    %71 = arith.addf %68, %70 : vector<128x16xf32>
    %72 = arith.negf %71 : vector<128x16xf32>
    %73 = math.exp %72 : vector<128x16xf32>
    %cst_23 = arith.constant 1.000000e+00 : f32
    %74 = vector.broadcast %cst_23 : f32 to vector<128x16xf32>
    %75 = arith.addf %74, %73 : vector<128x16xf32>
    %76 = arith.divf %74, %75 : vector<128x16xf32>
    %77 = arith.mulf %71, %76 : vector<128x16xf32>
    %c176 = arith.constant 176 : index
    %c0_24 = arith.constant 0 : index
    %78 = vector.load %arg5[%c176, %c0_24] : memref<496x256xbf16, #tpu.memory_space<vmem>>, vector<16x64xbf16>
    %79 = arith.truncf %77 : vector<128x16xf32> to vector<128x16xbf16>
    %cst_25 = arith.constant dense<0.000000e+00> : vector<128x64xf32>
    %80 = tpu.matmul %79, %78, %cst_25 {dimension_numbers = #tpu.dot_dimension_numbers<[1], [0], [0], [1], [0, 0, 1, 1], [], []>} : vector<128x16xbf16>, vector<16x64xbf16>, vector<128x64xf32> -> vector<128x64xf32>
    %c24 = arith.constant 24 : index
    %c0_26 = arith.constant 0 : index
    %81 = vector.load %arg6[%c24, %c0_26] : memref<144x128xf32, #tpu.memory_space<vmem>>, vector<1x64xf32>
    %82 = vector.broadcast %81 : vector<1x64xf32> to vector<128x64xf32>
    %83 = arith.addf %80, %82 : vector<128x64xf32>
    %84 = arith.negf %83 : vector<128x64xf32>
    %85 = math.exp %84 : vector<128x64xf32>
    %cst_27 = arith.constant 1.000000e+00 : f32
    %86 = vector.broadcast %cst_27 : f32 to vector<128x64xf32>
    %87 = arith.addf %86, %85 : vector<128x64xf32>
    %88 = arith.divf %86, %87 : vector<128x64xf32>
    %89 = arith.mulf %83, %88 : vector<128x64xf32>
    %c32_28 = arith.constant 32 : index
    %c0_29 = arith.constant 0 : index
    %90 = vector.load %arg6[%c32_28, %c0_29] : memref<144x128xf32, #tpu.memory_space<vmem>>, vector<1x64xf32>
    %91 = vector.broadcast %90 : vector<1x64xf32> to vector<128x64xf32>
    %92 = arith.mulf %89, %91 : vector<128x64xf32>
    %cst_30 = arith.constant dense<0.000000e+00> : vector<128xf32>
    %93 = vector.multi_reduction <add>, %92, %cst_30 [1] : vector<128x64xf32> to vector<128xf32>
    %94 = vector.shape_cast %93 : vector<128xf32> to vector<128x1xf32>
    %c40 = arith.constant 40 : index
    %c0_31 = arith.constant 0 : index
    %95 = vector.load %arg6[%c40, %c0_31] : memref<144x128xf32, #tpu.memory_space<vmem>>, vector<1x1xf32>
    %96 = vector.broadcast %95 : vector<1x1xf32> to vector<128x1xf32>
    %97 = arith.addf %94, %96 : vector<128x1xf32>
    %98 = vector.broadcast %97 : vector<128x1xf32> to vector<128x3xf32>
    %99 = arith.mulf %98, %44 : vector<128x3xf32>
    %100 = vector.shape_cast %99 : vector<128x3xf32> to vector<16x8x3xf32>
    %cst_32 = arith.constant dense<0.000000e+00> : vector<16x3xf32>
    %101 = vector.multi_reduction <add>, %100, %cst_32 [1] : vector<16x8x3xf32> to vector<16x3xf32>
    %102 = arith.addf %3, %101 : vector<16x3xf32>
    %103 = vector.shape_cast %77 : vector<128x16xf32> to vector<16x8x16xf32>
    %cst_33 = arith.constant dense<0.000000e+00> : vector<16x16xf32>
    %104 = vector.multi_reduction <add>, %103, %cst_33 [1] : vector<16x8x16xf32> to vector<16x16xf32>
    %c192 = arith.constant 192 : index
    %c0_34 = arith.constant 0 : index
    %105 = vector.load %arg5[%c192, %c0_34] : memref<496x256xbf16, #tpu.memory_space<vmem>>, vector<26x52xbf16>
    %106 = arith.truncf %1 : vector<16x26xf32> to vector<16x26xbf16>
    %cst_35 = arith.constant dense<0.000000e+00> : vector<16x52xf32>
    %107 = tpu.matmul %106, %105, %cst_35 {dimension_numbers = #tpu.dot_dimension_numbers<[1], [0], [0], [1], [0, 0, 1, 1], [], []>} : vector<16x26xbf16>, vector<26x52xbf16>, vector<16x52xf32> -> vector<16x52xf32>
    %c224 = arith.constant 224 : index
    %c0_36 = arith.constant 0 : index
    %108 = vector.load %arg5[%c224, %c0_36] : memref<496x256xbf16, #tpu.memory_space<vmem>>, vector<16x52xbf16>
    %109 = arith.truncf %104 : vector<16x16xf32> to vector<16x16xbf16>
    %cst_37 = arith.constant dense<0.000000e+00> : vector<16x52xf32>
    %110 = tpu.matmul %109, %108, %cst_37 {dimension_numbers = #tpu.dot_dimension_numbers<[1], [0], [0], [1], [0, 0, 1, 1], [], []>} : vector<16x16xbf16>, vector<16x52xbf16>, vector<16x52xf32> -> vector<16x52xf32>
    %111 = arith.addf %107, %110 : vector<16x52xf32>
    %c48_38 = arith.constant 48 : index
    %c0_39 = arith.constant 0 : index
    %112 = vector.load %arg6[%c48_38, %c0_39] : memref<144x128xf32, #tpu.memory_space<vmem>>, vector<1x52xf32>
    %113 = vector.broadcast %112 : vector<1x52xf32> to vector<16x52xf32>
    %114 = arith.addf %111, %113 : vector<16x52xf32>
    %115 = arith.negf %114 : vector<16x52xf32>
    %116 = math.exp %115 : vector<16x52xf32>
    %cst_40 = arith.constant 1.000000e+00 : f32
    %117 = vector.broadcast %cst_40 : f32 to vector<16x52xf32>
    %118 = arith.addf %117, %116 : vector<16x52xf32>
    %119 = arith.divf %117, %118 : vector<16x52xf32>
    %120 = arith.mulf %114, %119 : vector<16x52xf32>
    %c240 = arith.constant 240 : index
    %c0_41 = arith.constant 0 : index
    %121 = vector.load %arg5[%c240, %c0_41] : memref<496x256xbf16, #tpu.memory_space<vmem>>, vector<52x26xbf16>
    %122 = arith.truncf %120 : vector<16x52xf32> to vector<16x52xbf16>
    %cst_42 = arith.constant dense<0.000000e+00> : vector<16x26xf32>
    %123 = tpu.matmul %122, %121, %cst_42 {dimension_numbers = #tpu.dot_dimension_numbers<[1], [0], [0], [1], [0, 0, 1, 1], [], []>} : vector<16x52xbf16>, vector<52x26xbf16>, vector<16x26xf32> -> vector<16x26xf32>
    %124 = arith.addf %1, %123 : vector<16x26xf32>
    %c56 = arith.constant 56 : index
    %c0_43 = arith.constant 0 : index
    %125 = vector.load %arg6[%c56, %c0_43] : memref<144x128xf32, #tpu.memory_space<vmem>>, vector<1x26xf32>
    %126 = vector.broadcast %125 : vector<1x26xf32> to vector<16x26xf32>
    %127 = arith.addf %124, %126 : vector<16x26xf32>
    %c448 = arith.constant 448 : index
    %c0_44 = arith.constant 0 : index
    %128 = vector.load %arg5[%c448, %c0_44] : memref<496x256xbf16, #tpu.memory_space<vmem>>, vector<26x16xbf16>
    %129 = arith.truncf %127 : vector<16x26xf32> to vector<16x26xbf16>
    %cst_45 = arith.constant dense<0.000000e+00> : vector<16x16xf32>
    %130 = tpu.matmul %129, %128, %cst_45 {dimension_numbers = #tpu.dot_dimension_numbers<[1], [0], [0], [1], [0, 0, 1, 1], [], []>} : vector<16x26xbf16>, vector<26x16xbf16>, vector<16x16xf32> -> vector<16x16xf32>
    %c128 = arith.constant 128 : index
    %c0_46 = arith.constant 0 : index
    %131 = vector.load %arg6[%c128, %c0_46] : memref<144x128xf32, #tpu.memory_space<vmem>>, vector<1x16xf32>
    %132 = vector.broadcast %131 : vector<1x16xf32> to vector<16x16xf32>
    %133 = arith.addf %130, %132 : vector<16x16xf32>
    %134 = vector.extract_strided_slice %133 {offsets = [0, 0], sizes = [16, 8], strides = [1, 1]} : vector<16x16xf32> to vector<16x8xf32>
    %135 = vector.extract_strided_slice %133 {offsets = [0, 8], sizes = [16, 8], strides = [1, 1]} : vector<16x16xf32> to vector<16x8xf32>
    %cst_47 = arith.constant 5.000000e-01 : f32
    %136 = vector.broadcast %cst_47 : f32 to vector<16x8xf32>
    %137 = arith.mulf %135, %136 : vector<16x8xf32>
    %138 = math.exp %137 : vector<16x8xf32>
    %139 = arith.mulf %7, %138 : vector<16x8xf32>
    %140 = arith.addf %134, %139 : vector<16x8xf32>
    %c304 = arith.constant 304 : index
    %c0_48 = arith.constant 0 : index
    %141 = vector.load %arg5[%c304, %c0_48] : memref<496x256xbf16, #tpu.memory_space<vmem>>, vector<8x256xbf16>
    %142 = arith.truncf %140 : vector<16x8xf32> to vector<16x8xbf16>
    %cst_49 = arith.constant dense<0.000000e+00> : vector<16x256xf32>
    %143 = tpu.matmul %142, %141, %cst_49 {dimension_numbers = #tpu.dot_dimension_numbers<[1], [0], [0], [1], [0, 0, 1, 1], [], []>} : vector<16x8xbf16>, vector<8x256xbf16>, vector<16x256xf32> -> vector<16x256xf32>
    %144 = vector.extract_strided_slice %143 {offsets = [0, 0], sizes = [16, 42], strides = [1, 1]} : vector<16x256xf32> to vector<16x42xf32>
    %145 = vector.extract_strided_slice %143 {offsets = [0, 128], sizes = [16, 42], strides = [1, 1]} : vector<16x256xf32> to vector<16x42xf32>
    %146 = vector.extract_strided_slice %144 {offsets = [0, 0], sizes = [8, 42], strides = [1, 1]} : vector<16x42xf32> to vector<8x42xf32>
    %147 = vector.extract_strided_slice %145 {offsets = [0, 0], sizes = [8, 42], strides = [1, 1]} : vector<16x42xf32> to vector<8x42xf32>
    %148 = vector.extract_strided_slice %102 {offsets = [0, 0], sizes = [8, 3], strides = [1, 1]} : vector<16x3xf32> to vector<8x3xf32>
    %149 = vector.shape_cast %146 : vector<8x42xf32> to vector<8x1x42xf32>
    %150 = vector.shape_cast %147 : vector<8x42xf32> to vector<1x8x42xf32>
    %151 = vector.broadcast %149 : vector<8x1x42xf32> to vector<8x8x42xf32>
    %152 = vector.broadcast %150 : vector<1x8x42xf32> to vector<8x8x42xf32>
    %153 = arith.addf %151, %152 : vector<8x8x42xf32>
    %154 = vector.shape_cast %153 : vector<8x8x42xf32> to vector<64x42xf32>
    %155 = vector.shape_cast %148 : vector<8x3xf32> to vector<8x1x3xf32>
    %156 = vector.shape_cast %148 : vector<8x3xf32> to vector<1x8x3xf32>
    %157 = vector.broadcast %155 : vector<8x1x3xf32> to vector<8x8x3xf32>
    %158 = vector.broadcast %156 : vector<1x8x3xf32> to vector<8x8x3xf32>
    %159 = arith.subf %157, %158 : vector<8x8x3xf32>
    %160 = vector.shape_cast %159 : vector<8x8x3xf32> to vector<64x3xf32>
    %161 = vector.extract_strided_slice %144 {offsets = [8, 0], sizes = [8, 42], strides = [1, 1]} : vector<16x42xf32> to vector<8x42xf32>
    %162 = vector.extract_strided_slice %145 {offsets = [8, 0], sizes = [8, 42], strides = [1, 1]} : vector<16x42xf32> to vector<8x42xf32>
    %163 = vector.extract_strided_slice %102 {offsets = [8, 0], sizes = [8, 3], strides = [1, 1]} : vector<16x3xf32> to vector<8x3xf32>
    %164 = vector.shape_cast %161 : vector<8x42xf32> to vector<8x1x42xf32>
    %165 = vector.shape_cast %162 : vector<8x42xf32> to vector<1x8x42xf32>
    %166 = vector.broadcast %164 : vector<8x1x42xf32> to vector<8x8x42xf32>
    %167 = vector.broadcast %165 : vector<1x8x42xf32> to vector<8x8x42xf32>
    %168 = arith.addf %166, %167 : vector<8x8x42xf32>
    %169 = vector.shape_cast %168 : vector<8x8x42xf32> to vector<64x42xf32>
    %170 = vector.shape_cast %163 : vector<8x3xf32> to vector<8x1x3xf32>
    %171 = vector.shape_cast %163 : vector<8x3xf32> to vector<1x8x3xf32>
    %172 = vector.broadcast %170 : vector<8x1x3xf32> to vector<8x8x3xf32>
    %173 = vector.broadcast %171 : vector<1x8x3xf32> to vector<8x8x3xf32>
    %174 = arith.subf %172, %173 : vector<8x8x3xf32>
    %175 = vector.shape_cast %174 : vector<8x8x3xf32> to vector<64x3xf32>
    %176 = tpu.concatenate %154, %169 in 0 : vector<64x42xf32>, vector<64x42xf32> -> vector<128x42xf32>
    %177 = tpu.concatenate %160, %175 in 0 : vector<64x3xf32>, vector<64x3xf32> -> vector<128x3xf32>
    %178 = arith.mulf %177, %177 : vector<128x3xf32>
    %cst_50 = arith.constant dense<0.000000e+00> : vector<128xf32>
    %179 = vector.multi_reduction <add>, %178, %cst_50 [1] : vector<128x3xf32> to vector<128xf32>
    %180 = vector.shape_cast %179 : vector<128xf32> to vector<128x1xf32>
    %c64 = arith.constant 64 : index
    %c0_51 = arith.constant 0 : index
    %181 = vector.load %arg6[%c64, %c0_51] : memref<144x128xf32, #tpu.memory_space<vmem>>, vector<1x42xf32>
    %182 = vector.broadcast %180 : vector<128x1xf32> to vector<128x42xf32>
    %183 = vector.broadcast %181 : vector<1x42xf32> to vector<128x42xf32>
    %184 = arith.mulf %182, %183 : vector<128x42xf32>
    %185 = arith.addf %176, %184 : vector<128x42xf32>
    %c320 = arith.constant 320 : index
    %c0_52 = arith.constant 0 : index
    %186 = vector.load %arg5[%c320, %c0_52] : memref<496x256xbf16, #tpu.memory_space<vmem>>, vector<4x42xbf16>
    %187 = arith.truncf %5 : vector<128x4xf32> to vector<128x4xbf16>
    %cst_53 = arith.constant dense<0.000000e+00> : vector<128x42xf32>
    %188 = tpu.matmul %187, %186, %cst_53 {dimension_numbers = #tpu.dot_dimension_numbers<[1], [0], [0], [1], [0, 0, 1, 1], [], []>} : vector<128x4xbf16>, vector<4x42xbf16>, vector<128x42xf32> -> vector<128x42xf32>
    %189 = arith.addf %185, %188 : vector<128x42xf32>
    %c72 = arith.constant 72 : index
    %c0_54 = arith.constant 0 : index
    %190 = vector.load %arg6[%c72, %c0_54] : memref<144x128xf32, #tpu.memory_space<vmem>>, vector<1x42xf32>
    %191 = vector.broadcast %190 : vector<1x42xf32> to vector<128x42xf32>
    %192 = arith.addf %189, %191 : vector<128x42xf32>
    %193 = arith.negf %192 : vector<128x42xf32>
    %194 = math.exp %193 : vector<128x42xf32>
    %cst_55 = arith.constant 1.000000e+00 : f32
    %195 = vector.broadcast %cst_55 : f32 to vector<128x42xf32>
    %196 = arith.addf %195, %194 : vector<128x42xf32>
    %197 = arith.divf %195, %196 : vector<128x42xf32>
    %198 = arith.mulf %192, %197 : vector<128x42xf32>
    %c336 = arith.constant 336 : index
    %c0_56 = arith.constant 0 : index
    %199 = vector.load %arg5[%c336, %c0_56] : memref<496x256xbf16, #tpu.memory_space<vmem>>, vector<42x16xbf16>
    %200 = arith.truncf %198 : vector<128x42xf32> to vector<128x42xbf16>
    %cst_57 = arith.constant dense<0.000000e+00> : vector<128x16xf32>
    %201 = tpu.matmul %200, %199, %cst_57 {dimension_numbers = #tpu.dot_dimension_numbers<[1], [0], [0], [1], [0, 0, 1, 1], [], []>} : vector<128x42xbf16>, vector<42x16xbf16>, vector<128x16xf32> -> vector<128x16xf32>
    %c80 = arith.constant 80 : index
    %c0_58 = arith.constant 0 : index
    %202 = vector.load %arg6[%c80, %c0_58] : memref<144x128xf32, #tpu.memory_space<vmem>>, vector<1x16xf32>
    %203 = vector.broadcast %202 : vector<1x16xf32> to vector<128x16xf32>
    %204 = arith.addf %201, %203 : vector<128x16xf32>
    %205 = arith.negf %204 : vector<128x16xf32>
    %206 = math.exp %205 : vector<128x16xf32>
    %cst_59 = arith.constant 1.000000e+00 : f32
    %207 = vector.broadcast %cst_59 : f32 to vector<128x16xf32>
    %208 = arith.addf %207, %206 : vector<128x16xf32>
    %209 = arith.divf %207, %208 : vector<128x16xf32>
    %210 = arith.mulf %204, %209 : vector<128x16xf32>
    %211 = vector.shape_cast %210 : vector<128x16xf32> to vector<16x8x16xf32>
    %cst_60 = arith.constant dense<0.000000e+00> : vector<16x16xf32>
    %212 = vector.multi_reduction <add>, %211, %cst_60 [1] : vector<16x8x16xf32> to vector<16x16xf32>
    %c400 = arith.constant 400 : index
    %c0_61 = arith.constant 0 : index
    %213 = vector.load %arg5[%c400, %c0_61] : memref<496x256xbf16, #tpu.memory_space<vmem>>, vector<8x16xbf16>
    %214 = arith.truncf %140 : vector<16x8xf32> to vector<16x8xbf16>
    %cst_62 = arith.constant dense<0.000000e+00> : vector<16x16xf32>
    %215 = tpu.matmul %214, %213, %cst_62 {dimension_numbers = #tpu.dot_dimension_numbers<[1], [0], [0], [1], [0, 0, 1, 1], [], []>} : vector<16x8xbf16>, vector<8x16xbf16>, vector<16x16xf32> -> vector<16x16xf32>
    %c416 = arith.constant 416 : index
    %c0_63 = arith.constant 0 : index
    %216 = vector.load %arg5[%c416, %c0_63] : memref<496x256xbf16, #tpu.memory_space<vmem>>, vector<16x16xbf16>
    %217 = arith.truncf %212 : vector<16x16xf32> to vector<16x16xbf16>
    %cst_64 = arith.constant dense<0.000000e+00> : vector<16x16xf32>
    %218 = tpu.matmul %217, %216, %cst_64 {dimension_numbers = #tpu.dot_dimension_numbers<[1], [0], [0], [1], [0, 0, 1, 1], [], []>} : vector<16x16xbf16>, vector<16x16xbf16>, vector<16x16xf32> -> vector<16x16xf32>
    %219 = arith.addf %215, %218 : vector<16x16xf32>
    %c112 = arith.constant 112 : index
    %c0_65 = arith.constant 0 : index
    %220 = vector.load %arg6[%c112, %c0_65] : memref<144x128xf32, #tpu.memory_space<vmem>>, vector<1x16xf32>
    %221 = vector.broadcast %220 : vector<1x16xf32> to vector<16x16xf32>
    %222 = arith.addf %219, %221 : vector<16x16xf32>
    %223 = arith.negf %222 : vector<16x16xf32>
    %224 = math.exp %223 : vector<16x16xf32>
    %cst_66 = arith.constant 1.000000e+00 : f32
    %225 = vector.broadcast %cst_66 : f32 to vector<16x16xf32>
    %226 = arith.addf %225, %224 : vector<16x16xf32>
    %227 = arith.divf %225, %226 : vector<16x16xf32>
    %228 = arith.mulf %222, %227 : vector<16x16xf32>
    %c432 = arith.constant 432 : index
    %c0_67 = arith.constant 0 : index
    %229 = vector.load %arg5[%c432, %c0_67] : memref<496x256xbf16, #tpu.memory_space<vmem>>, vector<16x8xbf16>
    %230 = arith.truncf %228 : vector<16x16xf32> to vector<16x16xbf16>
    %cst_68 = arith.constant dense<0.000000e+00> : vector<16x8xf32>
    %231 = tpu.matmul %230, %229, %cst_68 {dimension_numbers = #tpu.dot_dimension_numbers<[1], [0], [0], [1], [0, 0, 1, 1], [], []>} : vector<16x16xbf16>, vector<16x8xbf16>, vector<16x8xf32> -> vector<16x8xf32>
    %232 = arith.addf %140, %231 : vector<16x8xf32>
    %c120 = arith.constant 120 : index
    %c0_69 = arith.constant 0 : index
    %233 = vector.load %arg6[%c120, %c0_69] : memref<144x128xf32, #tpu.memory_space<vmem>>, vector<1x8xf32>
    %234 = vector.broadcast %233 : vector<1x8xf32> to vector<16x8xf32>
    %235 = arith.addf %232, %234 : vector<16x8xf32>
    %c480 = arith.constant 480 : index
    %c0_70 = arith.constant 0 : index
    %236 = vector.load %arg5[%c480, %c0_70] : memref<496x256xbf16, #tpu.memory_space<vmem>>, vector<8x20xbf16>
    %237 = arith.truncf %235 : vector<16x8xf32> to vector<16x8xbf16>
    %cst_71 = arith.constant dense<0.000000e+00> : vector<16x20xf32>
    %238 = tpu.matmul %237, %236, %cst_71 {dimension_numbers = #tpu.dot_dimension_numbers<[1], [0], [0], [1], [0, 0, 1, 1], [], []>} : vector<16x8xbf16>, vector<8x20xbf16>, vector<16x20xf32> -> vector<16x20xf32>
    %c136 = arith.constant 136 : index
    %c0_72 = arith.constant 0 : index
    %239 = vector.load %arg6[%c136, %c0_72] : memref<144x128xf32, #tpu.memory_space<vmem>>, vector<1x20xf32>
    %240 = vector.broadcast %239 : vector<1x20xf32> to vector<16x20xf32>
    %241 = arith.addf %238, %240 : vector<16x20xf32>
    %242 = vector.shape_cast %241 : vector<16x20xf32> to vector<2x8x20xf32>
    %c0_73 = arith.constant 0 : index
    %c0_74 = arith.constant 0 : index
    %c0_75 = arith.constant 0 : index
    %243 = vector.load %arg7[%c0_73, %c0_74, %c0_75] : memref<2x8x20xf32, #tpu.memory_space<vmem>>, vector<2x8x20xf32>
    tpu.vector_store %arg7[%c0_73, %c0_74, %c0_75], %242 {strides = array<i32>} : memref<2x8x20xf32, #tpu.memory_space<vmem>>, vector<2x8x20xf32>,
    %244 = vector.shape_cast %134 : vector<16x8xf32> to vector<2x8x8xf32>
    %c0_76 = arith.constant 0 : index
    %c0_77 = arith.constant 0 : index
    %c0_78 = arith.constant 0 : index
    %245 = vector.load %arg8[%c0_76, %c0_77, %c0_78] : memref<2x8x8xf32, #tpu.memory_space<vmem>>, vector<2x8x8xf32>
    tpu.vector_store %arg8[%c0_76, %c0_77, %c0_78], %244 {strides = array<i32>} : memref<2x8x8xf32, #tpu.memory_space<vmem>>, vector<2x8x8xf32>,
    %246 = vector.shape_cast %135 : vector<16x8xf32> to vector<2x8x8xf32>
    %c0_79 = arith.constant 0 : index
    %c0_80 = arith.constant 0 : index
    %c0_81 = arith.constant 0 : index
    %247 = vector.load %arg9[%c0_79, %c0_80, %c0_81] : memref<2x8x8xf32, #tpu.memory_space<vmem>>, vector<2x8x8xf32>
    tpu.vector_store %arg9[%c0_79, %c0_80, %c0_81], %246 {strides = array<i32>} : memref<2x8x8xf32, #tpu.memory_space<vmem>>, vector<2x8x8xf32>,
    return
  }
  func.func @transform_0(%arg0: i32) -> (i32, i32, i32) {
    %c0_i32 = arith.constant 0 : i32
    %c0_i32_0 = arith.constant 0 : i32
    %c0_i32_1 = arith.constant 0 : i32
    return %arg0, %c0_i32, %c0_i32_0 : i32, i32, i32
  }
  func.func @transform_1(%arg0: i32) -> (i32, i32, i32) {
    %c0_i32 = arith.constant 0 : i32
    %c0_i32_0 = arith.constant 0 : i32
    %c0_i32_1 = arith.constant 0 : i32
    return %arg0, %c0_i32, %c0_i32_0 : i32, i32, i32
  }
  func.func @transform_2(%arg0: i32) -> (i32, i32, i32) {
    %c0_i32 = arith.constant 0 : i32
    %c0_i32_0 = arith.constant 0 : i32
    %c0_i32_1 = arith.constant 0 : i32
    return %arg0, %c0_i32, %c0_i32_0 : i32, i32, i32
  }
  func.func @transform_3(%arg0: i32) -> (i32, i32, i32) {
    %c0_i32 = arith.constant 0 : i32
    %c0_i32_0 = arith.constant 0 : i32
    %c0_i32_1 = arith.constant 0 : i32
    return %arg0, %c0_i32, %c0_i32_0 : i32, i32, i32
  }
  func.func @transform_4(%arg0: i32) -> (i32, i32) {
    %c0_i32 = arith.constant 0 : i32
    %c0_i32_0 = arith.constant 0 : i32
    %c0_i32_1 = arith.constant 0 : i32
    return %c0_i32, %c0_i32_0 : i32, i32
  }
  func.func @transform_5(%arg0: i32) -> (i32, i32) {
    %c0_i32 = arith.constant 0 : i32
    %c0_i32_0 = arith.constant 0 : i32
    %c0_i32_1 = arith.constant 0 : i32
    return %c0_i32, %c0_i32_0 : i32, i32
  }
  func.func @transform_6(%arg0: i32) -> (i32, i32, i32) {
    %c0_i32 = arith.constant 0 : i32
    %c0_i32_0 = arith.constant 0 : i32
    %c0_i32_1 = arith.constant 0 : i32
    return %arg0, %c0_i32, %c0_i32_0 : i32, i32, i32
  }
  func.func @transform_7(%arg0: i32) -> (i32, i32, i32) {
    %c0_i32 = arith.constant 0 : i32
    %c0_i32_0 = arith.constant 0 : i32
    %c0_i32_1 = arith.constant 0 : i32
    return %arg0, %c0_i32, %c0_i32_0 : i32, i32, i32
  }
  func.func @transform_8(%arg0: i32) -> (i32, i32, i32) {
    %c0_i32 = arith.constant 0 : i32
    %c0_i32_0 = arith.constant 0 : i32
    %c0_i32_1 = arith.constant 0 : i32
    return %arg0, %c0_i32, %c0_i32_0 : i32, i32, i32
  }
}

</mosaic_0001>

<bundles_post_ra>
// kernel: vgae_forward.1
= control target key start
LH: loop header
LB: loop body
LE: loop exit
PB: predicated region body
PF: predicated region fallthrough
CT: control target
= control target key end

     0   :  { %s7331_s0 = inlined_call_operand.vmem [shape: f32[4,8,26], index: 0, kind: input, shape index: {}]   ;;  %s7332_s1 = inlined_call_operand.vmem [shape: f32[4,8,3], index: 1, kind: input, shape index: {}]   ;;  %s7333_s2 = inlined_call_operand.vmem [shape: f32[4,64,4], index: 2, kind: input, shape index: {}]   ;;  %s7334_s3 = inlined_call_operand.vmem [shape: f32[4,8,8], index: 3, kind: input, shape index: {}]   ;;  %s7335_s4 = inlined_call_operand.vmem [shape: bf16[496,256], index: 4, kind: input, shape index: {}]   ;;  %s7336_s5 = inlined_call_operand.vmem [shape: f32[144,128], index: 5, kind: input, shape index: {}]   ;;  %s7337_s6 = inlined_call_operand.hbm [shape: f32[4,8,20], index: 6, kind: output, shape index: {0}]   ;;  %s7338_s7 = inlined_call_operand.hbm [shape: f32[4,8,8], index: 7, kind: output, shape index: {1}]   ;;  %s7339_s8 = inlined_call_operand.hbm [shape: f32[4,8,8], index: 8, kind: output, shape index: {2}]  }
   0x1   :  { %7352 = sst [smem:[#allocation12_spill]] %s7331_s0 }
   0x2   :  { %7353 = sst [smem:[#allocation13_spill]] %s7332_s1 }
   0x3   :  { %7354 = sst [smem:[#allocation14_spill]] %s7333_s2 }
   0x4   :  { %7355 = sst [smem:[#allocation15_spill]] %s7334_s3 }
   0x5   :  { %14 = vsyncpa [#allocation3], 0 }
   0x6   :  { %16 = vsyncpa [#allocation3 + $0x1], 0 }
   0x7   :  { %17 = vsyncpa [#allocation5], 0 }
   0x8   :  { %19 = vsyncpa [#allocation5 + $0x1], 0  ;;  %s5296_s27 = smov 0   ;;  %s5298_s28 = smov 0  }
   0x9   :  { %s5300_s29 = smov 0   ;;  %s5302_s30 = smov 0  }
   0xa LB: > { %s5317_s9 = sadd.s32 4294967295, %s5245_s30   ;;  %s7350_s10 = sadd.s32 4294967294, %s5245_s30   ;;  %s5245_s30 = sphi %s5302_s30, %s7483_s30   ;;  %s5241_s29 = sphi %s5300_s29, %s7482_s29   ;;  %s5237_s28 = sphi %s5298_s28, %s7481_s28   ;;  %s5233_s27 = sphi %s5296_s27, %s7480_s27  }
   0xb   : > { %s5321_s11 = sadd.s32 1, %s5245_s30   ;;  %s178_s12 = sadd.s32 1, %s5241_s29 }
   0xc   : > { %s175_s13 = ssub.s32 %s5245_s30, %s5321_s11  ;;  %p188_p0 = scmp.ne.s32.totalorder %s5241_s29, %s5237_s28 }
   0xd   : > { %p176_p1 = scmp.eq.s32.totalorder %s175_s13, 0  ;;  %p189_p2 = scmp.eq.s32.totalorder %s5317_s9, 1 }
   0xe   : > { %p194_p3 = scmp.ne.s32.totalorder %s5237_s28, %s5233_s27  ;;  %p195_p4 = scmp.eq.s32.totalorder %s7350_s10, 1 }
   0xf   : > { %s5334_s14 = scalar_select %p176_p1, %s5241_s29, %s178_s12  }
  0x10   : > { %p5336_p5 = por %p189_p2, %p188_p0  ;;  %p5340_p6 = por %p195_p4, %p194_p3 }
  0x11   : > { %p4417_p7 = scmp.ge.s32.totalorder %s5245_s30, 1  ;;  %p308_p8 = scmp.lt.s32.totalorder %s5245_s30, 3 }
  0x13   : > { %p309_p9 = pnand %p4417_p7, %p308_p8 }
  0x15   : > { %312 = sbr.rel (%p309_p9) target bundleno = 2336 (0x920), region = 44 }
  0x1a   : > { %v4440_v0 = vld [vmem:[%s7335_s4 + $0x10] sm:$0xf]  ;;  %v4681_v1 = vld [vmem:[%s7335_s4 + $0x14] sm:$0x10]  ;;  %vm446_vm0 = vcmask 1044480   ;;  %vm7345_vm1 = vcmask 1041408  }
  0x1b   : > { %v4441_v2 = vor.u32 %v4681_v1, %v4440_v0  ;;  %v4680_v3 = vld [vmem:[%s7335_s4 + $0x14] sm:$0xf]  ;;  %v4442_v4 = vld [vmem:[%s7335_s4 + $0x18] sm:$0x10]  ;;  %v708_v5 = vld [vmem:[%s7335_s4 + $0x20] sm:$0x3] }
  0x1c   : > { %v4445_v6 = vor.u32 %v4680_v3, %v4442_v4  ;;  %v744_v7 = vsel %vm7345_vm1, %v708_v5, 0  ;;  %v4432_v8 = vld [vmem:[%s7335_s4] sm:$0xf]  ;;  %v4679_v9 = vld [vmem:[%s7335_s4 + $0x4] sm:$0xf0]  ;;  %s4421_s19 = sshll.u32 %s5317_s9, 1 }
  0x1d   : > { %v448_v10 = vsel %vm446_vm0, %v4441_v2, 0  ;;  %4706 = vmatpush.bf16.msra.mxu2 %v744_v7  ;;  %v4678_v11 = vld [vmem:[%s7335_s4 + $0x4] sm:$0xf]  ;;  %v4434_v12 = vld [vmem:[%s7335_s4 + $0x8] sm:$0xf0]  ;;  %p369_p10 = scmp.lt.s32.totalorder %s4421_s19, 3  ;;  %v4433_v14 = vor.u32 %v4679_v9, %v4432_v8 }
  0x1e   : > { %459 = vmatpush.bf16.msra.mxu0 %v448_v10  ;;  %v451_v13 = vsel %vm446_vm0, %v4445_v6, 0  ;;  %v4437_v15 = vor.u32 %v4678_v11, %v4434_v12  ;;  %s7358_s2 = sld [smem:[#allocation14_spill]]  ;;  %vm7343_vm2 = vcmask 31744   ;;  %vm442_vm3 = vcmask 211968   ;;  %s7351_s12 = sand.u32 1, %s5237_s28  }
  0x1f   : > { %473 = vmatpush.bf16.msra.mxu3 %v451_v13  ;;  %s7485_s19 = smov (!%p369_p10, %s4421_s19), 3  ;;  %s7359_s0 = sld [smem:[#allocation12_spill]]  ;;  %vm7344_vm4 = vcmask 23552   ;;  %vm1244_vm5 = vcmask 1040384   ;;  %vm1219_vm14 = vcmask 932864  }
  0x20   : > { %s4677_s24 = sshll.u32 %s7485_s19, 6  ;;  %s5377_s25 = sshll.u32 %s7485_s19, 3 }
  0x21   : > { %s7360_s1 = sld [smem:[#allocation13_spill]]  ;;  %s6353_s18 = sshll.u32 %s7351_s12, 4 }
  0x22   : > { %460 = vmatpush.bf16.msra.mxu0 %v4433_v14  ;;  %s5248_s19 = smov 120   ;;  %s7383_s3 = sld [smem:[#allocation15_spill]] }
  0x23   : > { %474 = vmatpush.bf16.msra.mxu3 %v4437_v15  ;;  %s4198_s17 = sand.u32 1, %s5317_s9  }
  0x24   : > { %s5382_s13 = scalar_lea.vmem %s7358_s2, %s4677_s24  ;;  %s7255_s10 = scalar_lea.sflag [#allocation5], %s4198_s17 }
  0x25   : > { %s5388_s20 = scalar_lea.vmem %s7359_s0, %s5377_s25  ;;  %v405_v16 = vld [vmem:[%s5382_s13 + $0x20] sm:$0xff]  ;;  %v406_v17 = vld [vmem:[%s5382_s13 + $0x28] sm:$0xff]  ;;  %v407_v52 = vld [vmem:[%s5382_s13 + $0x30] sm:$0xff] }
  0x26   : > { %v397_v18 = vld [vmem:[%s5388_s20] sm:$0xff]  ;;  %753 = vmatpush.bf16.msrb.mxu0 %v744_v7  ;;  %v5399_v19 = vpack.c.bf16 %v406_v17, %v405_v16  ;;  %v398_v20 = vld [vmem:[%s5388_s20 + $0x8] sm:$0xff]  ;;  %v408_v55 = vld [vmem:[%s5382_s13 + $0x38] sm:$0xff] }
  0x27   : > { %s5396_s22 = scalar_lea.vmem %s7360_s1, %s5377_s25  ;;  %v5403_v22 = vpack.c.bf16 %v398_v20, %v397_v18  ;;  %v401_v56 = vld [vmem:[%s5382_s13] sm:$0xff]  ;;  %v402_v57 = vld [vmem:[%s5382_s13 + $0x8] sm:$0xff]  ;;  %v5451_v63 = vpack.c.bf16 %v408_v55, %v407_v52  ;;  %s5143_s1 = scalar_lea.hbm %s7338_s7, 32 }
  0x28   : > { %v399_v21 = vld [vmem:[%s5396_s22] sm:$0xff]  ;;  %4450 = vmatmul.msk.bf16.vlgmr.msra.gmra.mxu2 %vm7343_vm2, %v5399_v19  ;;  %v5424_v41 = vld [vmem:[%s5396_s22 + $0x8] sm:$0xff]  ;;  %v5453_v0 = vpack.c.bf16 %v402_v57, %v401_v56  ;;  %s391_s21 = scalar_lea.vmem %s7383_s3, %s5377_s25 }
  0x29   : > { %v521_v23 = vperm.slane %v399_v21, 0  ;;  %v517_v24 = vrot.slane %v399_v21, 4  ;;  %v515_v25 = vrot.slane %v399_v21, 2  ;;  %v514_v26 = vrot.slane %v399_v21, 1  ;;  %4446 = vmatmul.msk.bf16.vlgmr.msra.gmra.mxu0 %vm442_vm3, %v5403_v22  ;;  %4447 = vmatmul.msk.bf16.vlgmr.msra.gmra.mxu3 %vm442_vm3, %v5403_v22 }
  0x2a   : > { %v518_v27 = vrot.slane %v399_v21, 5  ;;  %v516_v28 = vrot.slane %v399_v21, 3  ;;  %v519_v35 = vrot.slane %v399_v21, 6  ;;  %v520_v50 = vrot.slane %v399_v21, 7 }
  0x2b   : > { %v5411_v29 = vsub.f32 %v521_v23, %v399_v21  ;;  %v525_v30 = vperm.slane %v517_v24, 0  ;;  %v523_v31 = vperm.slane %v515_v25, 0  ;;  %v522_v32 = vperm.slane %v514_v26, 0  ;;  %v409_v25 = vld [vmem:[%s5382_s13 + $0x40] sm:$0xff] }
  0x2c   : > { %v526_v33 = vperm.slane %v518_v27, 0  ;;  %v524_v34 = vperm.slane %v516_v28, 0  ;;  %v527_v46 = vperm.slane %v519_v35, 0  ;;  %v585_v53 = vperm.slane %v5424_v41, 0  ;;  %v410_v28 = vld [vmem:[%s5382_s13 + $0x48] sm:$0xff] }
  0x2d   : > { %v609_v36 = vmul.f32 %v5411_v29, %v5411_v29  ;;  %v5415_v37 = vsub.f32 %v525_v30, %v399_v21  ;;  %v5417_v38 = vsub.f32 %v523_v31, %v399_v21  ;;  %v5419_v39 = vsub.f32 %v522_v32, %v399_v21  ;;  %v403_v30 = vld [vmem:[%s5382_s13 + $0x10] sm:$0xff]  ;;  %v404_v31 = vld [vmem:[%s5382_s13 + $0x18] sm:$0xff] }
  0x2e   : > { %v5421_v40 = vsub.f32 %v526_v33, %v399_v21  ;;  %v5431_v45 = vsub.f32 %v524_v34, %v399_v21  ;;  %v528_v58 = vperm.slane %v520_v50, 0  ;;  %v5447_v60 = vsub.f32 %v527_v46, %v399_v21 }
  0x2f   : > { %v626_v42 = vsel %vm7344_vm4, %v609_v36, 0.0  ;;  %v613_v43 = vmul.f32 %v5415_v37, %v5415_v37  ;;  %v611_v44 = vmul.f32 %v5417_v38, %v5417_v38  ;;  %v610_v49 = vmul.f32 %v5419_v39, %v5419_v39 }
  0x30   : > { %627 = vadd.xlane.f32.xlu0 %v626_v42  ;;  %v614_v51 = vmul.f32 %v5421_v40, %v5421_v40  ;;  %v612_v54 = vmul.f32 %v5431_v45, %v5431_v45  ;;  %v578_v61 = vrot.slane %v5424_v41, 1  ;;  %v5456_v1 = vsub.f32 %v585_v53, %v5424_v41 }
  0x31   : > { %v638_v47 = vsel %vm7344_vm4, %v613_v43, 0.0  ;;  %v632_v48 = vsel %vm7344_vm4, %v611_v44, 0.0  ;;  %v629_v59 = vsel %vm7344_vm4, %v610_v49, 0.0  ;;  %v5459_v3 = vsub.f32 %v528_v58, %v399_v21  ;;  %v411_v58 = vld [vmem:[%s5382_s13 + $0x50] sm:$0xff] }
  0x32   : > { %639 = vadd.xlane.f32.xlu2 %v638_v47  ;;  %633 = vadd.xlane.f32.xlu1 %v632_v48  ;;  %v641_v62 = vsel %vm7344_vm4, %v614_v51, 0.0  ;;  %v635_v2 = vsel %vm7344_vm4, %v612_v54, 0.0  ;;  %v580_v4 = vrot.slane %v5424_v41, 3  ;;  %v579_v5 = vrot.slane %v5424_v41, 2 }
  0x33   : > { %v615_v6 = vmul.f32 %v5447_v60, %v5447_v60  ;;  %v586_v7 = vperm.slane %v578_v61, 0  ;;  %v617_v8 = vmul.f32 %v5456_v1, %v5456_v1  ;;  %v616_v9 = vmul.f32 %v5459_v3, %v5459_v3 }
  0x34   : > { %v588_v10 = vperm.slane %v580_v4, 0  ;;  %v587_v11 = vperm.slane %v579_v5, 0  ;;  %v581_v14 = vrot.slane %v5424_v41, 4  ;;  %v583_v16 = vrot.slane %v5424_v41, 6  ;;  %v415_v5 = vld [vmem:[%s5382_s13 + $0x70] sm:$0xff] }
  0x35   : > { %v644_v12 = vsel %vm7344_vm4, %v615_v6, 0.0  ;;  %v5475_v13 = vsub.f32 %v586_v7, %v5424_v41  ;;  %v650_v15 = vsel %vm7344_vm4, %v617_v8, 0.0  ;;  %v647_v17 = vsel %vm7344_vm4, %v616_v9, 0.0  ;;  %v416_v6 = vld [vmem:[%s5382_s13 + $0x78] sm:$0xff]  ;;  %v1163_v8 = vld [vmem:[%s7335_s4 + $0xa0] sm:$0x1] }
  0x36   : > { %v5482_v18 = vsub.f32 %v588_v10, %v5424_v41  ;;  %v5485_v20 = vsub.f32 %v587_v11, %v5424_v41  ;;  %v582_v21 = vrot.slane %v5424_v41, 5  ;;  %v589_v24 = vperm.slane %v581_v14, 0  ;;  %v4498_v14 = vld [vmem:[%s7335_s4 + $0x90] sm:$0xf] }
  0x37   : > { %v618_v23 = vmul.f32 %v5475_v13, %v5475_v13  ;;  %v591_v32 = vperm.slane %v583_v16, 0  ;;  %v584_v36 = vrot.slane %v5424_v41, 7  ;;  %v5503_v42 = vpack.c.bf16 %v410_v28, %v409_v25 }
  0x38   : > { %630 = vadd.xlane.f32.xlu0 %v629_v59  ;;  %4451 = vmatmul.msk.bf16.gmra.mxu2 %vm7343_vm2, %v5451_v63  ;;  %7361 = vst [vmem:[#allocation9_spill] sm:$0xff] %v5482_v18  ;;  %v620_v26 = vmul.f32 %v5482_v18, %v5482_v18  ;;  %v619_v27 = vmul.f32 %v5485_v20, %v5485_v20  ;;  %v590_v33 = vperm.slane %v582_v21, 0  ;;  %v412_v59 = vld [vmem:[%s5382_s13 + $0x58] sm:$0xff]  ;;  %v1203_v9 = vunpack.c.l.b16 %v1163_v8 }
  0x39   : > { %4448 = vmatmul.msk.bf16.vlgmr.msrb.gmra.mxu0 %vm7343_vm2, %v5453_v0  ;;  %v653_v34 = vsel %vm7344_vm4, %v618_v23, 0.0  ;;  %v5500_v35 = vsub.f32 %v589_v24, %v5424_v41  ;;  %v5505_v43 = vpack.c.bf16 %v404_v31, %v403_v30  ;;  %v5510_v47 = vsub.f32 %v591_v32, %v5424_v41  ;;  %v4494_v30 = vld [vmem:[%s7335_s4 + $0x80] sm:$0xf]  ;;  %v4687_v31 = vld [vmem:[%s7335_s4 + $0x84] sm:$0xf0] }
  0x3a   : > { %642 = vadd.xlane.f32.xlu2 %v641_v62  ;;  %636 = vadd.xlane.f32.xlu1 %v635_v2  ;;  %v659_v44 = vsel %vm7344_vm4, %v620_v26, 0.0  ;;  %v656_v46 = vsel %vm7344_vm4, %v619_v27, 0.0  ;;  %v5513_v48 = vsub.f32 %v590_v33, %v5424_v41  ;;  %v592_v50 = vperm.slane %v584_v36, 0  ;;  %v414_v2 = vld [vmem:[%s5382_s13 + $0x68] sm:$0xff]  ;;  %v4490_v36 = vld [vmem:[%s7335_s4 + $0x70] sm:$0xf] }
  0x3b   : > { %7362 = vst [vmem:[#allocation10_spill] sm:$0xff] %v5510_v47  ;;  %v621_v49 = vmul.f32 %v5500_v35, %v5500_v35  ;;  %v623_v51 = vmul.f32 %v5510_v47, %v5510_v47  ;;  %v5536_v62 = vpack.c.bf16 %v412_v59, %v411_v58  ;;  %v5548_v7 = vpack.c.bf16 %v416_v6, %v415_v5 }
  0x3c   : > { %v622_v52 = vmul.f32 %v5513_v48, %v5513_v48  ;;  %v5527_v54 = vsub.f32 %v592_v50, %v5424_v41  ;;  %v413_v41 = vld [vmem:[%s5382_s13 + $0x60] sm:$0xff]  ;;  %v1211_v11 = vpack.c.b16 %v1203_v9, %v1203_v9  ;;  %v4495_v32 = vor.u32 %v4687_v31, %v4494_v30  ;;  %v4482_v9 = vld [vmem:[%s7335_s4 + $0x50] sm:$0xf] }
  0x3d   : > { %v662_v53 = vsel %vm7344_vm4, %v621_v49, 0.0  ;;  %v668_v55 = vsel %vm7344_vm4, %v623_v51, 0.0  ;;  %v5542_v4 = vpack.c.bf16 %v414_v2, %v413_v41  ;;  %v5595_v51 = vld [vmem:[%s7336_s5 + $0x8] ss:$0 sm:$0xff]  ;;  %v4478_v31 = vld [vmem:[%s7335_s4 + $0x40] sm:$0xf] }
  0x3e   : > { %7363 = vst [vmem:[#allocation11_spill] sm:$0xff] %v5527_v54  ;;  %v665_v56 = vsel %vm7344_vm4, %v622_v52, 0.0  ;;  %v624_v57 = vmul.f32 %v5527_v54, %v5527_v54  ;;  %v4685_v41 = vld [vmem:[%s7335_s4 + $0x64] sm:$0xf0] }
  0x40   : > { %645 = vadd.xlane.f32.xlu0 %v644_v12  ;;  %v671_v61 = vsel %vm7344_vm4, %v624_v57, 0.0  ;;  %v1246_v12 = vsel %vm1244_vm5, %v1211_v11, 0  ;;  %v4684_v11 = vld [vmem:[%s7335_s4 + $0x54] sm:$0xf0] }
  0x41   : > { %1248 = vmatpush.bf16.msrb.mxu3 %v1246_v12 }
  0x42   : > { %651 = vadd.xlane.f32.xlu2 %v650_v15  ;;  %648 = vadd.xlane.f32.xlu1 %v647_v17  ;;  %v4688_v15 = vld [vmem:[%s7335_s4 + $0x94] sm:$0xf0]  ;;  %v5566_v17 = vld [vmem:[%s7336_s5] ss:$0 sm:$0xff] }
  0x43   : > { %v4499_v16 = vor.u32 %v4688_v15, %v4498_v14  ;;  %v4483_v14 = vor.u32 %v4684_v11, %v4482_v9 }
  0x45   : > { %1249 = vmatpush.bf16.msrb.mxu3 %v4499_v16 }
  0x48   : > { %654 = vadd.xlane.f32.xlu0 %v653_v34  ;;  %4452 = vmatmul.msk.bf16.gmra.mxu2 %vm7343_vm2, %v5503_v42 }
  0x49   : > { %4449 = vmatmul.msk.bf16.gmra.mxu0 %vm7343_vm2, %v5505_v43  ;;  %1250 = vmatpush.bf16.msrb.mxu3 %v4495_v32  ;;  %v4683_v32 = vld [vmem:[%s7335_s4 + $0x44] sm:$0xf0] }
  0x4a   : > { %660 = vadd.xlane.f32.xlu2 %v659_v44  ;;  %657 = vadd.xlane.f32.xlu1 %v656_v46  ;;  %v4686_v44 = vld [vmem:[%s7335_s4 + $0x74] sm:$0xf0] }
  0x4b   : > { %v4491_v49 = vor.u32 %v4686_v44, %v4490_v36  ;;  %v4479_v36 = vor.u32 %v4683_v32, %v4478_v31 }
  0x4d   : > { %1251 = vmatpush.bf16.msrb.mxu3 %v4491_v49 }
  0x50   : > { %663 = vadd.xlane.f32.xlu0 %v662_v53 }
  0x52   : > { %669 = vadd.xlane.f32.xlu2 %v668_v55  ;;  %666 = vadd.xlane.f32.xlu1 %v665_v56 }
  0x58   : > { %672 = vadd.xlane.f32.xlu0 %v671_v61  ;;  %4453 = vmatmul.msk.bf16.gmra.mxu2 %vm7343_vm2, %v5536_v62  ;;  %v4486_v61 = vld [vmem:[%s7335_s4 + $0x60] sm:$0xf] }
  0x59   : > { %v4487_v2 = vor.u32 %v4685_v41, %v4486_v61 }
  0x5b   : > { %1252 = vmatpush.bf16.msrb.mxu3 %v4487_v2  ;;  %v4474_v2 = vld [vmem:[%s7335_s4 + $0x30] sm:$0xf] }
  0x5f   : > { %1253 = vmatpush.bf16.msrb.mxu3 %v4483_v14 }
  0x63   : > { %1254 = vmatpush.bf16.msrb.mxu3 %v4479_v36 }
  0x68   : > { %4454 = vmatmul.msk.bf16.gmra.mxu2 %vm7343_vm2, %v5542_v4 }
  0x78   : > { %4455 = vmatmul.msk.bf16.gmra.mxu2 %vm7343_vm2, %v5548_v7 }
  0xa3   : > { %v628_v21 = vpop.xlane.xlu0 %627 }
  0xa4   : > { %v676_v27 = vmul.f32 %v5566_v17, %v628_v21 }
  0xa5   : > { %v640_v56 = vpop.xlane.xlu2 %639 }
  0xa6   : > { %v5555_v10 = vpop.f32.mrf.mxu0 }
  0xa7   : > { %v489_v26 = vperm.slane %v5555_v10, 0  ;;  %v482_v33 = vrot.slane %v5555_v10, 1  ;;  %v483_v6 = vrot.slane %v5555_v10, 2  ;;  %v486_v15 = vrot.slane %v5555_v10, 5 }
  0xa8   : > { %v485_v21 = vrot.slane %v5555_v10, 4 }
  0xa9   : > { %v490_v53 = vperm.slane %v482_v33, 0  ;;  %v494_v49 = vperm.slane %v486_v15, 0 }
  0xab   : > { %v5568_v23 = vpop.f32.mrf.mxu2  ;;  %v631_v55 = vpop.xlane.xlu0 %630 }
  0xac   : > { %v5570_v24 = vpop.f32.mrf.mxu3  ;;  %v677_v57 = vmul.f32 %v5566_v17, %v631_v55  ;;  %v680_v55 = vmul.f32 %v5566_v17, %v640_v56 }
  0xad   : > { %v505_v28 = vadd.f32 %v489_v26, %v5570_v24  ;;  %v506_v59 = vadd.f32 %v490_v53, %v5570_v24  ;;  %v634_v26 = vpop.xlane.xlu1 %633  ;;  %v493_v53 = vperm.slane %v485_v21, 0  ;;  %v510_v61 = vadd.f32 %v494_v49, %v5570_v24 }
  0xae   : > { %v5572_v25 = vpop.f32.mrf.mxu0  ;;  %v678_v33 = vmul.f32 %v5566_v17, %v634_v26 }
  0xaf   : > { %v692_v34 = vadd.f32 %v676_v27, %v505_v28  ;;  %v693_v8 = vadd.f32 %v677_v57, %v506_v59  ;;  %v491_v27 = vperm.slane %v483_v6, 0  ;;  %v484_v59 = vrot.slane %v5555_v10, 3 }
  0xb0   : > { %v509_v56 = vadd.f32 %v493_v53, %v5570_v24 }
  0xb1   : > { %v492_v14 = vperm.slane %v484_v59, 0  ;;  %v487_v59 = vrot.slane %v5555_v10, 6 }
  0xb2   : > { %v696_v15 = vadd.f32 %v680_v55, %v509_v56 }
  0xb3   : > { %v5590_v50 = vpop.f32.mrf.mxu2 }
  0xb6   : > { %v755_v46 = vpop.f32.mrf.mxu0 }
  0xb7   : > { %v795_v52 = vadd.f32 %v755_v46, %v692_v34  ;;  %v507_v34 = vadd.f32 %v491_v27, %v5570_v24  ;;  %v643_v46 = vpop.xlane.xlu2 %642 }
  0xb8   : > { %v681_v57 = vmul.f32 %v5566_v17, %v643_v46  ;;  %v799_v46 = vadd.f32 %v5568_v23, %v696_v15 }
  0xb9   : > { %v5599_v58 = vadd.f32 %v5595_v51, %v795_v52  ;;  %v694_v6 = vadd.f32 %v678_v33, %v507_v34  ;;  %v508_v33 = vadd.f32 %v492_v14, %v5570_v24 }
  0xbb   : > { %v4456_v5 = vmul.f32 -1.442695, %v5599_v58  ;;  %v5618_v28 = vpop.f32.mrf.mxu2 }
  0xbd   : > { %4778 = vpow2.f32 %v4456_v5  ;;  %v4682_v5 = vld [vmem:[%s7335_s4 + $0x34] sm:$0xf0] }
  0xbe   : > { %v757_v12 = vpop.f32.mrf.mxu0  ;;  %v4475_v9 = vor.u32 %v4682_v5, %v4474_v2  ;;  %v5663_v2 = vadd.f32 %v5595_v51, %v799_v46 }
  0xbf   : > { %v796_v16 = vadd.f32 %v757_v12, %v693_v8  ;;  %v697_v12 = vadd.f32 %v681_v57, %v510_v61 }
  0xc0   : > { %1255 = vmatpush.bf16.msrb.mxu3 %v4475_v9  ;;  %v4460_v14 = vmul.f32 -1.442695, %v5663_v2 }
  0xc1   : > { %v5621_v30 = vadd.f32 %v5595_v51, %v796_v16  ;;  %v637_v16 = vpop.xlane.xlu1 %636  ;;  %v800_v31 = vadd.f32 %v5590_v50, %v697_v12  ;;  %v488_v50 = vrot.slane %v5555_v10, 7  ;;  %v646_v10 = vpop.xlane.xlu0 %645 }
  0xc2   : > { %v679_v27 = vmul.f32 %v5566_v17, %v637_v16 }
  0xc3   : > { %v4779_v44 = vpop.eup %4778  ;;  %v4457_v52 = vmul.f32 -1.442695, %v5621_v30  ;;  %v5651_v32 = vpop.f32.mrf.mxu2  ;;  %v5658_v53 = vadd.f32 %v5595_v51, %v800_v31 }
  0xc4   : > { %v5636_v41 = vadd.f32 1.0, %v4779_v44  ;;  %v695_v55 = vadd.f32 %v679_v27, %v508_v33 }
  0xc5   : > { %4780 = vpow2.f32 %v4457_v52  ;;  %v4461_v23 = vmul.f32 -1.442695, %v5658_v53 }
  0xc6   : > { %v760_v8 = vpop.f32.mrf.mxu0  ;;  %4782 = vrcp.f32 %v5636_v41  ;;  %v904_v33 = vand.u32 2147483648, %v5636_v41  ;;  %vm898_vm7 = vweird.f32 %v5636_v41  ;;  %v902_v46 = vand.u32 2147483647, %v5636_v41 }
  0xc7   : > { %v797_v11 = vadd.f32 %v760_v8, %v694_v6  ;;  %v496_v8 = vperm.slane %v488_v50, 0 }
  0xc8   : > { %vm903_vm10 = vcmp.eq.f32.partialorder %v902_v46, 8.507059e+37 }
  0xc9   : > { %v5647_v21 = vadd.f32 %v5595_v51, %v797_v11  ;;  %v649_v6 = vpop.xlane.xlu1 %648  ;;  %v495_v11 = vperm.slane %v487_v59, 0  ;;  %v512_v16 = vadd.f32 %v496_v8, %v5570_v24 }
  0xca   : > { %v683_v31 = vmul.f32 %v5566_v17, %v649_v6 }
  0xcb   : > { %v4781_v26 = vpop.eup %4780  ;;  %v4458_v44 = vmul.f32 -1.442695, %v5647_v21  ;;  %v5669_v12 = vpop.f32.mrf.mxu2 }
  0xcc   : > { %v4783_v34 = vpop.eup %4782  ;;  %v878_v36 = vadd.f32 1.0, %v4781_v26  ;;  %v699_v6 = vadd.f32 %v683_v31, %v512_v16 }
  0xcd   : > { %v894_v49 = vmul.f32 %v4783_v34, %v5636_v41  ;;  %vm899_vm6 = vweird.f32 %v4783_v34  ;;  %v905_v41 = vor.u32 1.1754944e-38, %v904_v33 }
  0xce   : > { %v762_v52 = vpop.f32.mrf.mxu0  ;;  %4784 = vrcp.f32 %v878_v36  ;;  %vm5681_vm8 = vmor %vm898_vm7, %vm899_vm6  ;;  %v919_v59 = vand.u32 2147483648, %v878_v36  ;;  %vm913_vm11 = vweird.f32 %v878_v36 }
  0xcf   : > { %v895_v57 = vsub.f32 1.0, %v894_v49  ;;  %4786 = vpow2.f32 %v4458_v44  ;;  %v798_v61 = vadd.f32 %v762_v52, %v695_v55  ;;  %v682_v55 = vmul.f32 %v5566_v17, %v646_v10 }
  0xd0   : > { %4788 = vpow2.f32 %v4461_v23  ;;  %v511_v23 = vadd.f32 %v495_v11, %v5570_v24 }
  0xd1   : > { %v896_v5 = vmul.f32 %v4783_v34, %v895_v57  ;;  %v5667_v56 = vadd.f32 %v5595_v51, %v798_v61  ;;  %v917_v57 = vand.u32 2147483647, %v878_v36  ;;  %4790 = vpow2.f32 %v4460_v14 }
  0xd2   : > { %v698_v14 = vadd.f32 %v682_v55, %v511_v23  ;;  %v5710_v55 = vpop.f32.mrf.mxu3 }
  0xd3   : > { %v897_v26 = vadd.f32 %v4783_v34, %v896_v5  ;;  %v4459_v44 = vmul.f32 -1.442695, %v5667_v56  ;;  %vm918_vm13 = vcmp.eq.f32.partialorder %v917_v57, 8.507059e+37  ;;  %v777_v50 = vpop.f32.mrf.mxu2 }
  0xd4   : > { %v4785_v9 = vpop.eup %4784 }
  0xd5   : > { %v4787_v15 = vpop.eup %4786  ;;  %v909_v27 = vmul.f32 %v4785_v9, %v878_v36  ;;  %v901_v61 = vsel %vm5681_vm8, %v4783_v34, %v897_v26  ;;  %vm914_vm9 = vweird.f32 %v4785_v9  ;;  %v802_v34 = vadd.f32 %v5651_v32, %v699_v6 }
  0xd6   : > { %v5678_v52 = vadd.f32 1.0, %v4787_v15  ;;  %v4789_v15 = vpop.eup %4788  ;;  %v906_v10 = vsel %vm903_vm10, %v905_v41, %v901_v61  ;;  %vm915_vm12 = vmor %vm913_vm11, %vm914_vm9  ;;  %v801_v36 = vadd.f32 %v5618_v28, %v698_v14  ;;  %v553_v61 = vperm.slane %v5572_v25, 0 }
  0xd7   : > { %v910_v49 = vsub.f32 1.0, %v909_v27  ;;  %v920_v27 = vor.u32 1.1754944e-38, %v919_v59  ;;  %v4791_v26 = vpop.eup %4790  ;;  %v5692_v24 = vadd.f32 1.0, %v4789_v15  ;;  %v1133_v11 = vmul.f32 %v906_v10, %v5599_v58 }
  0xd8   : > { %4792 = vrcp.f32 %v5678_v52  ;;  %v5704_v46 = vadd.f32 %v5595_v51, %v801_v36  ;;  %v546_v58 = vrot.slane %v5572_v25, 1  ;;  %v5708_v28 = vadd.f32 1.0, %v4791_v26 }
  0xd9   : > { %v911_v5 = vmul.f32 %v4785_v9, %v910_v49  ;;  %4794 = vpow2.f32 %v4459_v44  ;;  %v569_v15 = vadd.f32 %v553_v61, %v5710_v55  ;;  %vm928_vm5 = vweird.f32 %v5678_v52 }
  0xda   : > { %4796 = vrcp.f32 %v5692_v24  ;;  %v4462_v23 = vmul.f32 -1.442695, %v5704_v46  ;;  %v554_v6 = vperm.slane %v546_v58, 0 }
  0xdb   : > { %v912_v8 = vadd.f32 %v4785_v9, %v911_v5  ;;  %v652_v5 = vpop.xlane.xlu2 %651  ;;  %v5719_v10 = vpop.f32.mrf.mxu2 }
  0xdd   : > { %v916_v47 = vsel %vm915_vm12, %v4785_v9, %v912_v8  ;;  %v5698_v9 = vadd.f32 %v5595_v51, %v802_v34  ;;  %v684_v8 = vmul.f32 %v5566_v17, %v652_v5  ;;  %v570_v34 = vadd.f32 %v554_v6, %v5710_v55 }
  0xde   : > { %v921_v49 = vsel %vm918_vm13, %v920_v27, %v916_v47  ;;  %v5690_v33 = vpop.eup %4792  ;;  %v932_v5 = vand.u32 2147483647, %v5678_v52  ;;  %vm973_vm13 = vweird.f32 %v5692_v24 }
  0xdf   : > { %v1134_v16 = vmul.f32 %v921_v49, %v5621_v30  ;;  %v4795_v31 = vpop.eup %4794  ;;  %v924_v47 = vmul.f32 %v5690_v33, %v5678_v52  ;;  %v655_v30 = vpop.xlane.xlu0 %654  ;;  %v4463_v57 = vmul.f32 -1.442695, %v5698_v9  ;;  %vm929_vm15 = vweird.f32 %v5690_v33 }
  0xe0   : > { %v880_v32 = vadd.f32 1.0, %v4795_v31  ;;  %v685_v41 = vmul.f32 %v5566_v17, %v655_v30  ;;  %v5721_v27 = vpop.eup %4796  ;;  %v934_v30 = vand.u32 2147483648, %v5678_v52  ;;  %vm5735_vm7 = vmor %vm928_vm5, %vm929_vm15  ;;  %vm933_vm10 = vcmp.eq.f32.partialorder %v932_v5, 8.507059e+37 }
  0xe1   : > { %v1164_v44 = vpack.c.bf16 %v1134_v16, %v1133_v11  ;;  %v925_v59 = vsub.f32 1.0, %v924_v47  ;;  %v969_v36 = vmul.f32 %v5721_v27, %v5692_v24  ;;  %v700_v16 = vadd.f32 %v684_v8, %v569_v15 }
  0xe2   : > { %4798 = vrcp.f32 %v880_v32  ;;  %v701_v11 = vadd.f32 %v685_v41, %v570_v34  ;;  %v548_v8 = vrot.slane %v5572_v25, 3  ;;  %vm943_vm8 = vweird.f32 %v880_v32 }
  0xe3   : > { %4500 = vmatmul.msk.bf16.vlgmr.msrb.gmra.mxu3 %vm1219_vm14, %v1164_v44  ;;  %4800 = vrcp.f32 %v5708_v28  ;;  %v926_v14 = vmul.f32 %v5690_v33, %v925_v59  ;;  %v949_v59 = vand.u32 2147483648, %v880_v32  ;;  %v970_v34 = vsub.f32 1.0, %v969_v36  ;;  %v661_v6 = vpop.xlane.xlu2 %660  ;;  %v658_v36 = vpop.xlane.xlu1 %657 }
  0xe4   : > { %4802 = vpow2.f32 %v4463_v57  ;;  %v804_v58 = vadd.f32 %v777_v50, %v701_v11  ;;  %v803_v57 = vadd.f32 %v5669_v12, %v700_v16  ;;  %v935_v11 = vor.u32 1.1754944e-38, %v934_v30 }
  0xe5   : > { %4804 = vpow2.f32 %v4462_v23  ;;  %v927_v44 = vadd.f32 %v5690_v33, %v926_v14  ;;  %v947_v23 = vand.u32 2147483647, %v880_v32  ;;  %v950_v16 = vor.u32 1.1754944e-38, %v949_v59 }
  0xe6   : > { %v5746_v52 = vadd.f32 %v5595_v51, %v804_v58  ;;  %v5751_v54 = vadd.f32 %v5595_v51, %v803_v57  ;;  %v547_v58 = vrot.slane %v5572_v25, 2  ;;  %v971_v5 = vmul.f32 %v5721_v27, %v970_v34 }
  0xe7   : > { %v931_v12 = vsel %vm5735_vm7, %v5690_v33, %v927_v44  ;;  %vm948_vm11 = vcmp.eq.f32.partialorder %v947_v23, 8.507059e+37  ;;  %v556_v23 = vperm.slane %v548_v8, 0  ;;  %vm974_vm12 = vweird.f32 %v5721_v27 }
  0xe8   : > { %v4799_v26 = vpop.eup %4798  ;;  %v4465_v30 = vmul.f32 -1.442695, %v5746_v52  ;;  %vm5777_vm15 = vmor %vm973_vm13, %vm974_vm12 }
  0xe9   : > { %v939_v49 = vmul.f32 %v4799_v26, %v880_v32  ;;  %v5727_v31 = vpop.eup %4800  ;;  %vm944_vm6 = vweird.f32 %v4799_v26  ;;  %v936_v32 = vsel %vm933_vm10, %v935_v11, %v931_v12  ;;  %v979_v11 = vand.u32 2147483648, %v5692_v24 }
  0xea   : > { %v4803_v61 = vpop.eup %4802  ;;  %v954_v50 = vmul.f32 %v5727_v31, %v5708_v28  ;;  %vm945_vm9 = vmor %vm943_vm8, %vm944_vm6  ;;  %v1135_v57 = vmul.f32 %v936_v32, %v5647_v21  ;;  %vm959_vm5 = vweird.f32 %v5727_v31  ;;  %vm958_vm6 = vweird.f32 %v5708_v28 }
  0xeb   : > { %v940_v47 = vsub.f32 1.0, %v939_v49  ;;  %v4805_v15 = vpop.eup %4804  ;;  %v5748_v49 = vadd.f32 1.0, %v4803_v61  ;;  %vm5795_vm7 = vmor %vm958_vm6, %vm959_vm5 }
  0xec   : > { %v5753_v33 = vadd.f32 1.0, %v4805_v15  ;;  %v955_v59 = vsub.f32 1.0, %v954_v50  ;;  %v555_v15 = vperm.slane %v547_v58, 0 }
  0xed   : > { %v941_v41 = vmul.f32 %v4799_v26, %v940_v47  ;;  %v782_v47 = vpop.f32.mrf.mxu2  ;;  %4806 = vrcp.f32 %v5748_v49  ;;  %vm1003_vm12 = vweird.f32 %v5748_v49 }
  0xee   : > { %4808 = vrcp.f32 %v5753_v33  ;;  %v956_v12 = vmul.f32 %v5727_v31, %v955_v59  ;;  %v571_v21 = vadd.f32 %v555_v15, %v5710_v55  ;;  %v964_v59 = vand.u32 2147483648, %v5708_v28 }
  0xef   : > { %v942_v14 = vadd.f32 %v4799_v26, %v941_v41  ;;  %v4464_v41 = vmul.f32 -1.442695, %v5751_v54  ;;  %4810 = vpow2.f32 %v4465_v30  ;;  %vm988_vm13 = vweird.f32 %v5753_v33 }
  0xf1   : > { %v946_v18 = vsel %vm945_vm9, %v4799_v26, %v942_v14  ;;  %v687_v26 = vmul.f32 %v5566_v17, %v661_v6  ;;  %v972_v14 = vadd.f32 %v5721_v27, %v971_v5  ;;  %4812 = vpow2.f32 %v4464_v41 }
  0xf2   : > { %v951_v44 = vsel %vm948_vm11, %v950_v16, %v946_v18  ;;  %v686_v18 = vmul.f32 %v5566_v17, %v658_v36  ;;  %v957_v36 = vadd.f32 %v5727_v31, %v956_v12 }
  0xf3   : > { %v1136_v61 = vmul.f32 %v951_v44, %v5667_v56  ;;  %v572_v56 = vadd.f32 %v556_v23, %v5710_v55  ;;  %v5771_v8 = vpop.eup %4806  ;;  %v977_v44 = vand.u32 2147483647, %v5692_v24  ;;  %v976_v30 = vsel %vm5777_vm15, %v5721_v27, %v972_v14 }
  0xf4   : > { %v702_v16 = vadd.f32 %v686_v18, %v571_v21  ;;  %v962_v24 = vand.u32 2147483647, %v5708_v28  ;;  %v550_v28 = vrot.slane %v5572_v25, 5  ;;  %v667_v21 = vpop.xlane.xlu1 %666  ;;  %vm1004_vm10 = vweird.f32 %v5771_v8 }
  0xf5   : > { %v1165_v50 = vpack.c.bf16 %v1136_v61, %v1135_v57  ;;  %v703_v34 = vadd.f32 %v687_v26, %v572_v56  ;;  %v5775_v6 = vpop.f32.mrf.mxu2  ;;  %v5784_v61 = vpop.eup %4808  ;;  %v999_v26 = vmul.f32 %v5771_v8, %v5748_v49  ;;  %vm978_vm8 = vcmp.eq.f32.partialorder %v977_v44, 8.507059e+37  ;;  %vm5844_vm15 = vmor %vm1003_vm12, %vm1004_vm10 }
  0xf6   : > { %v4811_v5 = vpop.eup %4810  ;;  %v805_v57 = vadd.f32 %v5719_v10, %v702_v16  ;;  %v984_v27 = vmul.f32 %v5784_v61, %v5753_v33  ;;  %v961_v10 = vsel %vm5795_vm7, %v5727_v31, %v957_v36  ;;  %vm963_vm9 = vcmp.eq.f32.partialorder %v962_v24, 8.507059e+37  ;;  %v664_v44 = vpop.xlane.xlu0 %663 }
  0xf7   : > { %4501 = vmatmul.msk.bf16.gmra.mxu3 %vm1219_vm14, %v1165_v50  ;;  %v806_v58 = vadd.f32 %v782_v47, %v703_v34  ;;  %v980_v47 = vor.u32 1.1754944e-38, %v979_v11  ;;  %v4813_v23 = vpop.eup %4812  ;;  %v5807_v56 = vadd.f32 1.0, %v4811_v5  ;;  %v965_v50 = vor.u32 1.1754944e-38, %v964_v59 }
  0xf8   : > { %v1000_v12 = vsub.f32 1.0, %v999_v26  ;;  %v5811_v14 = vadd.f32 %v5595_v51, %v805_v57  ;;  %v5813_v34 = vadd.f32 1.0, %v4813_v23  ;;  %v549_v11 = vrot.slane %v5572_v25, 4 }
  0xf9   : > { %v5802_v18 = vadd.f32 %v5595_v51, %v806_v58  ;;  %v981_v15 = vsel %vm978_vm8, %v980_v47, %v976_v30  ;;  %v966_v16 = vsel %vm963_vm9, %v965_v50, %v961_v10  ;;  %v985_v31 = vsub.f32 1.0, %v984_v27 }
  0xfa   : > { %v1138_v32 = vmul.f32 %v981_v15, %v5658_v53  ;;  %4814 = vrcp.f32 %v5807_v56  ;;  %v558_v36 = vperm.slane %v550_v28, 0  ;;  %v689_v59 = vmul.f32 %v5566_v17, %v667_v21 }
  0xfb   : > { %v4467_v58 = vmul.f32 -1.442695, %v5802_v18  ;;  %v1001_v5 = vmul.f32 %v5771_v8, %v1000_v12  ;;  %v4466_v26 = vmul.f32 -1.442695, %v5811_v14  ;;  %v1137_v57 = vmul.f32 %v966_v16, %v5663_v2 }
  0xfc   : > { %v688_v24 = vmul.f32 %v5566_v17, %v664_v44  ;;  %4816 = vrcp.f32 %v5813_v34  ;;  %v557_v53 = vperm.slane %v549_v11, 0  ;;  %v986_v47 = vmul.f32 %v5784_v61, %v985_v31 }
  0xfd   : > { %v787_v30 = vpop.f32.mrf.mxu2  ;;  %4818 = vpow2.f32 %v4467_v58  ;;  %v574_v41 = vadd.f32 %v558_v36, %v5710_v55  ;;  %v1166_v23 = vpack.c.bf16 %v1138_v32, %v1137_v57  ;;  %v1002_v10 = vadd.f32 %v5771_v8, %v1001_v5 }
  0xfe   : > { %v573_v27 = vadd.f32 %v557_v53, %v5710_v55  ;;  %4820 = vpow2.f32 %v4466_v26  ;;  %vm989_vm11 = vweird.f32 %v5784_v61  ;;  %v1009_v28 = vand.u32 2147483648, %v5748_v49 }
  0xff   : > { %v705_v15 = vadd.f32 %v689_v59, %v574_v41  ;;  %v987_v12 = vadd.f32 %v5784_v61, %v986_v47  ;;  %v1007_v21 = vand.u32 2147483647, %v5748_v49  ;;  %v994_v32 = vand.u32 2147483648, %v5753_v33  ;;  %vm5857_vm5 = vmor %vm988_vm13, %vm989_vm11 }
 0x100   : > { %v5831_v2 = vpop.eup %4814  ;;  %v704_v50 = vadd.f32 %v688_v24, %v573_v27  ;;  %v992_v58 = vand.u32 2147483647, %v5753_v33  ;;  %v1006_v49 = vsel %vm5844_vm15, %v5771_v8, %v1002_v10  ;;  %v1010_v5 = vor.u32 1.1754944e-38, %v1009_v28 }
 0x101   : > { %v808_v11 = vadd.f32 %v787_v30, %v705_v15  ;;  %v1029_v36 = vmul.f32 %v5831_v2, %v5807_v56  ;;  %v991_v33 = vsel %vm5857_vm5, %v5784_v61, %v987_v12  ;;  %vm1008_vm6 = vcmp.eq.f32.partialorder %v1007_v21, 8.507059e+37  ;;  %v673_v61 = vpop.xlane.xlu0 %672 }
 0x102   : > { %v5838_v16 = vpop.eup %4816  ;;  %v807_v30 = vadd.f32 %v5775_v6, %v704_v50  ;;  %v995_v6 = vor.u32 1.1754944e-38, %v994_v32  ;;  %v1011_v53 = vsel %vm1008_vm6, %v1010_v5, %v1006_v49  ;;  %v552_v41 = vrot.slane %v5572_v25, 7  ;;  %v670_v50 = vpop.xlane.xlu2 %669 }
 0x103   : > { %v4819_v44 = vpop.eup %4818  ;;  %v1014_v8 = vmul.f32 %v5838_v16, %v5813_v34  ;;  %v5867_v24 = vadd.f32 %v5595_v51, %v808_v11  ;;  %vm993_vm7 = vcmp.eq.f32.partialorder %v992_v58, 8.507059e+37  ;;  %v551_v28 = vrot.slane %v5572_v25, 6 }
 0x104   : > { %v4821_v57 = vpop.eup %4820  ;;  %v5869_v47 = vadd.f32 1.0, %v4819_v44  ;;  %v5873_v27 = vadd.f32 %v5595_v51, %v807_v30  ;;  %v996_v10 = vsel %vm993_vm7, %v995_v6, %v991_v33  ;;  %v1140_v12 = vmul.f32 %v1011_v53, %v5698_v9 }
 0x105   : > { %v790_v26 = vpop.f32.mrf.mxu2  ;;  %v5875_v15 = vadd.f32 1.0, %v4821_v57  ;;  %v1015_v21 = vsub.f32 1.0, %v1014_v8  ;;  %v4469_v11 = vmul.f32 -1.442695, %v5867_v24  ;;  %v560_v32 = vperm.slane %v552_v41, 0 }
 0x106   : > { %4822 = vrcp.f32 %v5869_v47  ;;  %v1139_v31 = vmul.f32 %v996_v10, %v5704_v46  ;;  %v691_v44 = vmul.f32 %v5566_v17, %v673_v61  ;;  %v4468_v49 = vmul.f32 -1.442695, %v5873_v27 }
 0x107   : > { %4502 = vmatmul.msk.bf16.gmra.mxu3 %vm1219_vm14, %v1166_v23  ;;  %v1030_v23 = vsub.f32 1.0, %v1029_v36  ;;  %v690_v36 = vmul.f32 %v5566_v17, %v670_v50  ;;  %4824 = vrcp.f32 %v5875_v15  ;;  %v559_v25 = vperm.slane %v551_v28, 0 }
 0x108   : > { %v1016_v9 = vmul.f32 %v5838_v16, %v1015_v21  ;;  %4826 = vpow2.f32 %v4469_v11  ;;  %v576_v30 = vadd.f32 %v560_v32, %v5710_v55  ;;  %v1167_v59 = vpack.c.bf16 %v1140_v12, %v1139_v31 }
 0x109   : > { %v1031_v58 = vmul.f32 %v5831_v2, %v1030_v23  ;;  %v575_v5 = vadd.f32 %v559_v25, %v5710_v55  ;;  %vm1034_vm8 = vweird.f32 %v5831_v2  ;;  %4828 = vpow2.f32 %v4468_v49 }
 0x10a   : > { %v707_v33 = vadd.f32 %v691_v44, %v576_v30  ;;  %vm1019_vm9 = vweird.f32 %v5838_v16  ;;  %v1039_v8 = vand.u32 2147483648, %v5807_v56  ;;  %v1017_v53 = vadd.f32 %v5838_v16, %v1016_v9 }
 0x10b   : > { %v1032_v57 = vadd.f32 %v5831_v2, %v1031_v58  ;;  %v706_v6 = vadd.f32 %v690_v36, %v575_v5  ;;  %vm1033_vm10 = vweird.f32 %v5807_v56  ;;  %v1037_v55 = vand.u32 2147483647, %v5807_v56 }
 0x10c   : > { %v5893_v17 = vpop.eup %4822  ;;  %vm1018_vm11 = vweird.f32 %v5813_v34  ;;  %v1024_v10 = vand.u32 2147483648, %v5813_v34  ;;  %vm1035_vm12 = vmor %vm1033_vm10, %vm1034_vm8  ;;  %v1022_v28 = vand.u32 2147483647, %v5813_v34  ;;  %v1040_v56 = vor.u32 1.1754944e-38, %v1039_v8 }
 0x10d   : > { %v792_v46 = vpop.f32.mrf.mxu2  ;;  %v5900_v23 = vpop.eup %4824  ;;  %v1036_v50 = vsel %vm1035_vm12, %v5831_v2, %v1032_v57  ;;  %v1059_v12 = vmul.f32 %v5893_v17, %v5869_v47  ;;  %v809_v21 = vadd.f32 %v790_v26, %v706_v6  ;;  %vm1020_vm13 = vmor %vm1018_vm11, %vm1019_vm9  ;;  %vm1038_vm15 = vcmp.eq.f32.partialorder %v1037_v55, 8.507059e+37 }
 0x10e   : > { %v810_v41 = vadd.f32 %v792_v46, %v707_v33  ;;  %v4827_v61 = vpop.eup %4826  ;;  %v1021_v32 = vsel %vm1020_vm13, %v5838_v16, %v1017_v53  ;;  %v1044_v31 = vmul.f32 %v5900_v23, %v5875_v15  ;;  %v1025_v34 = vor.u32 1.1754944e-38, %v1024_v10 }
 0x10f   : > { %v4829_v11 = vpop.eup %4828  ;;  %v1041_v2 = vsel %vm1038_vm15, %v1040_v56, %v1036_v50  ;;  %v5918_v58 = vadd.f32 1.0, %v4827_v61  ;;  %vm1023_vm5 = vcmp.eq.f32.partialorder %v1022_v28, 8.507059e+37  ;;  %v1060_v26 = vsub.f32 1.0, %v1059_v12 }
 0x110   : > { %v5916_v44 = vadd.f32 %v5595_v51, %v810_v41  ;;  %v5921_v49 = vadd.f32 %v5595_v51, %v809_v21  ;;  %v1026_v36 = vsel %vm1023_vm5, %v1025_v34, %v1021_v32  ;;  %v5923_v25 = vadd.f32 1.0, %v4829_v11 }
 0x111   : > { %v1142_v16 = vmul.f32 %v1041_v2, %v5746_v52  ;;  %v1045_v9 = vsub.f32 1.0, %v1044_v31  ;;  %4830 = vrcp.f32 %v5918_v58  ;;  %v1061_v5 = vmul.f32 %v5893_v17, %v1060_v26 }
 0x112   : > { %v4471_v30 = vmul.f32 -1.442695, %v5916_v44  ;;  %v4470_v46 = vmul.f32 -1.442695, %v5921_v49  ;;  %4832 = vrcp.f32 %v5923_v25  ;;  %vm1064_vm6 = vweird.f32 %v5893_v17 }
 0x113   : > { %v1046_v51 = vmul.f32 %v5900_v23, %v1045_v9  ;;  %v1062_v33 = vadd.f32 %v5893_v17, %v1061_v5  ;;  %vm1049_vm7 = vweird.f32 %v5900_v23  ;;  %vm1063_vm8 = vweird.f32 %v5869_v47 }
 0x114   : > { %4834 = vpow2.f32 %v4471_v30  ;;  %v1067_v6 = vand.u32 2147483647, %v5869_v47  ;;  %v1054_v55 = vand.u32 2147483648, %v5875_v15  ;;  %vm1065_vm9 = vmor %vm1063_vm8, %vm1064_vm6  ;;  %vm1048_vm10 = vweird.f32 %v5875_v15 }
 0x115   : > { %4836 = vpow2.f32 %v4470_v46  ;;  %v1047_v8 = vadd.f32 %v5900_v23, %v1046_v51  ;;  %v1052_v10 = vand.u32 2147483647, %v5875_v15  ;;  %v1066_v61 = vsel %vm1065_vm9, %v5893_v17, %v1062_v33  ;;  %vm1050_vm11 = vmor %vm1048_vm10, %vm1049_vm7 }
 0x116   : > { %vm1068_vm12 = vcmp.eq.f32.partialorder %v1067_v6, 8.507059e+37  ;;  %v1055_v56 = vor.u32 1.1754944e-38, %v1054_v55  ;;  %vm1093_vm6 = vweird.f32 %v5918_v58  ;;  %vm1078_vm8 = vweird.f32 %v5923_v25 }
 0x117   : > { %4503 = vmatmul.msk.bf16.gmra.mxu3 %vm1219_vm14, %v1167_v59  ;;  %v1141_v59 = vmul.f32 %v1026_v36, %v5751_v54  ;;  %v4831_v52 = vpop.eup %4830  ;;  %v1069_v54 = vand.u32 2147483648, %v5869_v47  ;;  %v1051_v21 = vsel %vm1050_vm11, %v5900_v23, %v1047_v8  ;;  %vm1053_vm13 = vcmp.eq.f32.partialorder %v1052_v10, 8.507059e+37 }
 0x118   : > { %v4833_v53 = vpop.eup %4832  ;;  %v1089_v28 = vmul.f32 %v4831_v52, %v5918_v58  ;;  %v1056_v34 = vsel %vm1053_vm13, %v1055_v56, %v1051_v21  ;;  %vm1094_vm15 = vweird.f32 %v4831_v52  ;;  %v1082_v51 = vand.u32 2147483647, %v5923_v25 }
 0x119   : > { %v1168_v57 = vpack.c.bf16 %v1142_v16, %v1141_v59  ;;  %v1070_v50 = vor.u32 1.1754944e-38, %v1069_v54  ;;  %v1074_v47 = vmul.f32 %v4833_v53, %v5923_v25  ;;  %v1143_v26 = vmul.f32 %v1056_v34, %v5811_v14  ;;  %vm1095_vm7 = vmor %vm1093_vm6, %vm1094_vm15 }
 0x11a   : > { %v4835_v41 = vpop.eup %4834  ;;  %v1090_v31 = vsub.f32 1.0, %v1089_v28  ;;  %v1099_v59 = vand.u32 2147483648, %v5918_v58  ;;  %vm1079_vm5 = vweird.f32 %v4833_v53  ;;  %v1084_v14 = vand.u32 2147483648, %v5923_v25 }
 0x11b   : > { %v4837_v12 = vpop.eup %4836  ;;  %v1071_v11 = vsel %vm1068_vm12, %v1070_v50, %v1066_v61  ;;  %v892_v32 = vadd.f32 1.0, %v4835_v41  ;;  %v1075_v17 = vsub.f32 1.0, %v1074_v47  ;;  %vm1080_vm9 = vmor %vm1078_vm8, %vm1079_vm5  ;;  %vm1083_vm11 = vcmp.eq.f32.partialorder %v1082_v51, 8.507059e+37 }
 0x11c   : > { %v891_v2 = vadd.f32 1.0, %v4837_v12  ;;  %v1144_v15 = vmul.f32 %v1071_v11, %v5802_v18  ;;  %v1091_v36 = vmul.f32 %v4831_v52, %v1090_v31  ;;  %v1097_v18 = vand.u32 2147483647, %v5918_v58 }
 0x11d   : > { %4838 = vrcp.f32 %v892_v32  ;;  %v1076_v16 = vmul.f32 %v4833_v53, %v1075_v17  ;;  %v1100_v54 = vor.u32 1.1754944e-38, %v1099_v59  ;;  %v1085_v55 = vor.u32 1.1754944e-38, %v1084_v14 }
 0x11e   : > { %4840 = vrcp.f32 %v891_v2  ;;  %v1169_v23 = vpack.c.bf16 %v1144_v15, %v1143_v26  ;;  %v1092_v9 = vadd.f32 %v4831_v52, %v1091_v36  ;;  %vm1098_vm10 = vcmp.eq.f32.partialorder %v1097_v18, 8.507059e+37 }
 0x11f   : > { %v1077_v5 = vadd.f32 %v4833_v53, %v1076_v16  ;;  %vm1123_vm15 = vweird.f32 %v892_v32  ;;  %v1127_v56 = vand.u32 2147483647, %v892_v32  ;;  %v1114_v11 = vand.u32 2147483648, %v891_v2 }
 0x120   : > { %vm1108_vm6 = vweird.f32 %v891_v2  ;;  %v1112_v31 = vand.u32 2147483647, %v891_v2 }
 0x121   : > { %v1081_v8 = vsel %vm1080_vm9, %v4833_v53, %v1077_v5  ;;  %v1129_v53 = vand.u32 2147483648, %v892_v32  ;;  %vm1128_vm8 = vcmp.eq.f32.partialorder %v1127_v56, 8.507059e+37  ;;  %v1115_v15 = vor.u32 1.1754944e-38, %v1114_v11 }
 0x122   : > { %v1086_v58 = vsel %vm1083_vm11, %v1085_v55, %v1081_v8  ;;  %vm1113_vm9 = vcmp.eq.f32.partialorder %v1112_v31, 8.507059e+37 }
 0x123   : > { %v4839_v30 = vpop.eup %4838  ;;  %v1145_v50 = vmul.f32 %v1086_v58, %v5873_v27  ;;  %v1130_v34 = vor.u32 1.1754944e-38, %v1129_v53 }
 0x124   : > { %v4841_v46 = vpop.eup %4840  ;;  %v1119_v33 = vmul.f32 %v4839_v30, %v892_v32  ;;  %vm1124_vm12 = vweird.f32 %v4839_v30  ;;  %v5966_v32 = vld [vmem:[%s7336_s5 + $0x10] ss:$0 sm:$0xff] }
 0x125   : > { %v1104_v6 = vmul.f32 %v4841_v46, %v891_v2  ;;  %vm1109_vm13 = vweird.f32 %v4841_v46  ;;  %vm1125_vm5 = vmor %vm1123_vm15, %vm1124_vm12 }
 0x126   : > { %v1120_v10 = vsub.f32 1.0, %v1119_v33 }
 0x127   : > { %4504 = vmatmul.msk.bf16.gmra.mxu3 %vm1219_vm14, %v1168_v57  ;;  %v1096_v57 = vsel %vm1095_vm7, %v4831_v52, %v1092_v9  ;;  %v1105_v28 = vsub.f32 1.0, %v1104_v6  ;;  %vm1110_vm7 = vmor %vm1108_vm6, %vm1109_vm13  ;;  %vm7346_vm13 = vcmask 130048  }
 0x128   : > { %v1101_v41 = vsel %vm1098_vm10, %v1100_v54, %v1096_v57  ;;  %v1121_v12 = vmul.f32 %v4839_v30, %v1120_v10 }
 0x129   : > { %v1146_v61 = vmul.f32 %v1101_v41, %v5867_v24  ;;  %v1106_v21 = vmul.f32 %v4841_v46, %v1105_v28 }
 0x12a   : > { %v1122_v52 = vadd.f32 %v4839_v30, %v1121_v12 }
 0x12b   : > { %v1170_v25 = vpack.c.bf16 %v1146_v61, %v1145_v50  ;;  %v1107_v47 = vadd.f32 %v4841_v46, %v1106_v21 }
 0x12c   : > { %v1126_v24 = vsel %vm1125_vm5, %v4839_v30, %v1122_v52 }
 0x12d   : > { %v1111_v27 = vsel %vm1110_vm7, %v4841_v46, %v1107_v47  ;;  %v1131_v17 = vsel %vm1128_vm8, %v1130_v34, %v1126_v24 }
 0x12e   : > { %v1116_v26 = vsel %vm1113_vm9, %v1115_v15, %v1111_v27  ;;  %v1148_v36 = vmul.f32 %v1131_v17, %v5916_v44 }
 0x12f   : > { %v1147_v16 = vmul.f32 %v1116_v26, %v5921_v49 }
 0x137   : > { %4505 = vmatmul.msk.bf16.gmra.mxu3 %vm1219_vm14, %v1169_v23  ;;  %v1171_v23 = vpack.c.bf16 %v1148_v36, %v1147_v16 }
 0x147   : > { %4506 = vmatmul.msk.bf16.gmra.mxu3 %vm1219_vm14, %v1170_v25 }
 0x157   : > { %4507 = vmatmul.msk.bf16.gmra.mxu3 %vm1219_vm14, %v1171_v23 }
 0x166   : > { %v1257_v2 = vpop.f32.mrf.mxu3 }
 0x167   : > { %v1258_v9 = vadd.f32 %v5966_v32, %v1257_v2 }
 0x169   : > { %v4508_v30 = vmul.f32 -1.442695, %v1258_v9 }
 0x16b   : > { %4842 = vpow2.f32 %v4508_v30 }
 0x16e   : > { %v1259_v18 = vpop.f32.mrf.mxu3 }
 0x16f   : > { %v1260_v44 = vadd.f32 %v5966_v32, %v1259_v18 }
 0x171   : > { %v4843_v59 = vpop.eup %4842  ;;  %v4509_v49 = vmul.f32 -1.442695, %v1260_v44 }
 0x172   : > { %v1345_v5 = vadd.f32 1.0, %v4843_v59 }
 0x174   : > { %4844 = vrcp.f32 %v1345_v5  ;;  %v1372_v57 = vand.u32 2147483648, %v1345_v5  ;;  %v1370_v54 = vand.u32 2147483647, %v1345_v5  ;;  %vm1366_vm10 = vweird.f32 %v1345_v5 }
 0x175   : > { %4846 = vpow2.f32 %v4509_v49 }
 0x176   : > { %v1373_v10 = vor.u32 1.1754944e-38, %v1372_v57  ;;  %vm1371_vm12 = vcmp.eq.f32.partialorder %v1370_v54, 8.507059e+37  ;;  %v4689_v54 = vld [vmem:[%s7335_s4 + $0xb4] sm:$0xf0] }
 0x17a   : > { %v4845_v46 = vpop.eup %4844  ;;  %v1262_v8 = vpop.f32.mrf.mxu3 }
 0x17b   : > { %v1362_v14 = vmul.f32 %v4845_v46, %v1345_v5  ;;  %vm1367_vm14 = vweird.f32 %v4845_v46  ;;  %v4847_v6 = vpop.eup %4846  ;;  %v5971_v41 = vadd.f32 %v5966_v32, %v1262_v8 }
 0x17c   : > { %vm1368_vm11 = vmor %vm1366_vm10, %vm1367_vm14  ;;  %v1346_v58 = vadd.f32 1.0, %v4847_v6 }
 0x17d   : > { %v1363_v51 = vsub.f32 1.0, %v1362_v14  ;;  %v4510_v28 = vmul.f32 -1.442695, %v5971_v41 }
 0x17e   : > { %4848 = vrcp.f32 %v1346_v58  ;;  %v1387_v15 = vand.u32 2147483648, %v1346_v58  ;;  %v1385_v26 = vand.u32 2147483647, %v1346_v58  ;;  %vm1381_vm5 = vweird.f32 %v1346_v58 }
 0x17f   : > { %v1364_v33 = vmul.f32 %v4845_v46, %v1363_v51  ;;  %4850 = vpow2.f32 %v4510_v28 }
 0x180   : > { %vm1386_vm7 = vcmp.eq.f32.partialorder %v1385_v26, 8.507059e+37 }
 0x181   : > { %v1365_v55 = vadd.f32 %v4845_v46, %v1364_v33  ;;  %v4526_v33 = vld [vmem:[%s7335_s4 + $0xb0] sm:$0xf] }
 0x182   : > { %v1264_v52 = vpop.f32.mrf.mxu3  ;;  %v4527_v28 = vor.u32 %v4689_v54, %v4526_v33 }
 0x183   : > { %v1369_v61 = vsel %vm1368_vm11, %v4845_v46, %v1365_v55  ;;  %v5979_v53 = vadd.f32 %v5966_v32, %v1264_v52 }
 0x184   : > { %v1374_v50 = vsel %vm1371_vm12, %v1373_v10, %v1369_v61  ;;  %v4849_v47 = vpop.eup %4848  ;;  %1667 = vmatpush.bf16.msra.mxu0 %v4527_v28  ;;  %vm2338_vm12 = vcmask 1041409  }
 0x185   : > { %v5974_v12 = vmul.f32 %v1374_v50, %v1258_v9  ;;  %v4851_v56 = vpop.eup %4850  ;;  %v1377_v11 = vmul.f32 %v4849_v47, %v1346_v58  ;;  %v4511_v31 = vmul.f32 -1.442695, %v5979_v53  ;;  %vm1382_vm15 = vweird.f32 %v4849_v47 }
 0x186   : > { %v1347_v34 = vadd.f32 1.0, %v4851_v56  ;;  %vm1383_vm6 = vmor %vm1381_vm5, %vm1382_vm15  ;;  %v1388_v9 = vor.u32 1.1754944e-38, %v1387_v15 }
 0x187   : > { %v2363_v21 = vsel %vm7346_vm13, %v5974_v12, 0.0  ;;  %v1378_v27 = vsub.f32 1.0, %v1377_v11  ;;  %4852 = vpow2.f32 %v4511_v31 }
 0x188   : > { %v2364_v25 = vrot.slane %v2363_v21, 4  ;;  %4854 = vrcp.f32 %v1347_v34  ;;  %v1400_v55 = vand.u32 2147483647, %v1347_v34  ;;  %v1402_v61 = vand.u32 2147483648, %v1347_v34 }
 0x189   : > { %v1379_v17 = vmul.f32 %v4849_v47, %v1378_v27  ;;  %vm1396_vm9 = vweird.f32 %v1347_v34 }
 0x18a   : > { %v2365_v24 = vadd.f32 %v2364_v25, %v2363_v21  ;;  %v1267_v16 = vpop.f32.mrf.mxu3  ;;  %v1403_v15 = vor.u32 1.1754944e-38, %v1402_v61  ;;  %vm1401_vm10 = vcmp.eq.f32.partialorder %v1400_v55, 8.507059e+37 }
 0x18b   : > { %v1380_v23 = vadd.f32 %v4849_v47, %v1379_v17  ;;  %v5983_v2 = vadd.f32 %v5966_v32, %v1267_v16 }
 0x18c   : > { %v2366_v36 = vrot.slane %v2365_v24, 2 }
 0x18d   : > { %v4853_v30 = vpop.eup %4852  ;;  %v1384_v59 = vsel %vm1383_vm6, %v4849_v47, %v1380_v23  ;;  %v4512_v5 = vmul.f32 -1.442695, %v5983_v2 }
 0x18e   : > { %v4855_v18 = vpop.eup %4854  ;;  %v2367_v49 = vadd.f32 %v2366_v36, %v2365_v24  ;;  %v1389_v46 = vsel %vm1386_vm7, %v1388_v9, %v1384_v59  ;;  %v5986_v14 = vadd.f32 1.0, %v4853_v30 }
 0x18f   : > { %v1602_v51 = vmul.f32 %v1389_v46, %v1260_v44  ;;  %v1392_v57 = vmul.f32 %v4855_v18, %v1347_v34  ;;  %4856 = vpow2.f32 %v4512_v5  ;;  %vm1397_vm8 = vweird.f32 %v4855_v18 }
 0x190   : > { %4858 = vrcp.f32 %v5986_v14  ;;  %v2368_v10 = vrot.slane %v2367_v49, 1  ;;  %vm1398_vm14 = vmor %vm1396_vm9, %vm1397_vm8  ;;  %v1417_v9 = vand.u32 2147483648, %v5986_v14  ;;  %v1415_v46 = vand.u32 2147483647, %v5986_v14 }
 0x191   : > { %v2370_v8 = vsel %vm7346_vm13, %v1602_v51, 0.0  ;;  %v1393_v6 = vsub.f32 1.0, %v1392_v57  ;;  %v1619_v50 = vpack.c.bf16 %v1602_v51, %v5974_v12  ;;  %vm1411_vm15 = vweird.f32 %v5986_v14 }
 0x192   : > { %v2371_v58 = vrot.slane %v2370_v8, 4  ;;  %v1269_v44 = vpop.f32.mrf.mxu3  ;;  %v2369_v24 = vadd.f32 %v2368_v10, %v2367_v49  ;;  %vm1416_vm6 = vcmp.eq.f32.partialorder %v1415_v46, 8.507059e+37 }
 0x193   : > { %v1394_v21 = vmul.f32 %v4855_v18, %v1393_v6  ;;  %v5998_v25 = vadd.f32 %v5966_v32, %v1269_v44  ;;  %4528 = vmatmul.msk.bf16.vlgmr.msra.gmra.mxu0 %vm7346_vm13, %v1619_v50 }
 0x194   : > { %v2372_v52 = vadd.f32 %v2371_v58, %v2370_v8  ;;  %v2481_v30 = vpack.c.bf16 %v2369_v24, %v2369_v24  ;;  %v1418_v8 = vor.u32 1.1754944e-38, %v1417_v9 }
 0x195   : > { %v4857_v47 = vpop.eup %4856  ;;  %v1395_v56 = vadd.f32 %v4855_v18, %v1394_v21  ;;  %v4513_v11 = vmul.f32 -1.442695, %v5998_v25 }
 0x196   : > { %v4859_v31 = vpop.eup %4858  ;;  %v2373_v27 = vrot.slane %v2372_v52, 2  ;;  %v6001_v17 = vadd.f32 1.0, %v4857_v47  ;;  %v2513_v44 = vunpack.c.l.b16 %v2481_v30  ;;  %v4692_v30 = vld [vmem:[%s7335_s4 + $0xe4] sm:$0xf0] }
 0x197   : > { %v1399_v12 = vsel %vm1398_vm14, %v4855_v18, %v1395_v56  ;;  %v1407_v26 = vmul.f32 %v4859_v31, %v5986_v14  ;;  %4860 = vpow2.f32 %v4513_v11  ;;  %vm1412_vm11 = vweird.f32 %v4859_v31 }
 0x198   : > { %v2374_v36 = vadd.f32 %v2373_v27, %v2372_v52  ;;  %v1404_v16 = vsel %vm1401_vm10, %v1403_v15, %v1399_v12  ;;  %4862 = vrcp.f32 %v6001_v17  ;;  %vm1413_vm5 = vmor %vm1411_vm15, %vm1412_vm11  ;;  %v1430_v11 = vand.u32 2147483647, %v6001_v17 }
 0x199   : > { %v6007_v34 = vmul.f32 %v1404_v16, %v5971_v41  ;;  %v1408_v23 = vsub.f32 1.0, %v1407_v26  ;;  %v1432_v15 = vand.u32 2147483648, %v6001_v17  ;;  %vm1426_vm8 = vweird.f32 %v6001_v17 }
 0x19a   : > { %v2375_v59 = vrot.slane %v2374_v36, 1  ;;  %v1272_v5 = vpop.f32.mrf.mxu3  ;;  %vm1431_vm14 = vcmp.eq.f32.partialorder %v1430_v11, 8.507059e+37  ;;  %vm2340_vm10 = vcmask 1042434  }
 0x19b   : > { %v2377_v18 = vsel %vm7346_vm13, %v6007_v34, 0.0  ;;  %v1409_v49 = vmul.f32 %v4859_v31, %v1408_v23  ;;  %v6014_v33 = vadd.f32 %v5966_v32, %v1272_v5 }
 0x19c   : > { %v2376_v51 = vadd.f32 %v2375_v59, %v2374_v36  ;;  %v2378_v57 = vrot.slane %v2377_v18, 4 }
 0x19d   : > { %v4861_v41 = vpop.eup %4860  ;;  %v1410_v54 = vadd.f32 %v4859_v31, %v1409_v49  ;;  %v4514_v61 = vmul.f32 -1.442695, %v6014_v33 }
 0x19e   : > { %v4863_v6 = vpop.eup %4862  ;;  %v2482_v55 = vpack.c.bf16 %v2376_v51, %v2376_v51  ;;  %v2379_v10 = vadd.f32 %v2378_v57, %v2377_v18  ;;  %v6017_v58 = vadd.f32 1.0, %v4861_v41  ;;  %v1433_v51 = vor.u32 1.1754944e-38, %v1432_v15 }
 0x19f   : > { %v1414_v28 = vsel %vm1413_vm5, %v4859_v31, %v1410_v54  ;;  %v1422_v50 = vmul.f32 %v4863_v6, %v6001_v17  ;;  %vm1427_vm7 = vweird.f32 %v4863_v6 }
 0x1a0   : > { %v2514_v21 = vunpack.c.l.b16 %v2482_v55  ;;  %v2380_v52 = vrot.slane %v2379_v10, 2  ;;  %v1419_v47 = vsel %vm1416_vm6, %v1418_v8, %v1414_v28  ;;  %4864 = vrcp.f32 %v6017_v58  ;;  %vm1428_vm9 = vmor %vm1426_vm8, %vm1427_vm7 }
 0x1a1   : > { %v1604_v14 = vmul.f32 %v1419_v47, %v5979_v53  ;;  %v1423_v56 = vsub.f32 1.0, %v1422_v50  ;;  %4866 = vpow2.f32 %v4514_v61  ;;  %v4554_v53 = vld [vmem:[%s7335_s4 + $0xe0] sm:$0xf]  ;;  %vm1441_vm15 = vweird.f32 %v6017_v58 }
 0x1a2   : > { %v2529_v24 = vsel %vm2338_vm12, %v2514_v21, %v2513_v44  ;;  %v2381_v27 = vadd.f32 %v2380_v52, %v2379_v10  ;;  %v1274_v31 = vpop.f32.mrf.mxu3  ;;  %v4555_v57 = vor.u32 %v4692_v30, %v4554_v53  ;;  %v1447_v21 = vand.u32 2147483648, %v6017_v58 }
 0x1a3   : > { %v2384_v12 = vsel %vm7346_vm13, %v1604_v14, 0.0  ;;  %v1424_v26 = vmul.f32 %v4863_v6, %v1423_v56  ;;  %v6028_v36 = vadd.f32 %v5966_v32, %v1274_v31  ;;  %v1620_v5 = vpack.c.bf16 %v1604_v14, %v6007_v34 }
 0x1a4   : > { %v2382_v16 = vrot.slane %v2381_v27, 1  ;;  %v2385_v23 = vrot.slane %v2384_v12, 4  ;;  %2560 = vmatpush.bf16.msra.mxu3 %v4555_v57  ;;  %vm2342_vm7 = vcmask 1043459   ;;  %vm2344_vm8 = vcmask 1044484  }
 0x1a5   : > { %v1425_v9 = vadd.f32 %v4863_v6, %v1424_v26  ;;  %v4515_v59 = vmul.f32 -1.442695, %v6028_v36  ;;  %4529 = vmatmul.msk.bf16.gmra.mxu0 %vm7346_vm13, %v1620_v5 }
 0x1a6   : > { %v4865_v18 = vpop.eup %4864  ;;  %v2383_v49 = vadd.f32 %v2382_v16, %v2381_v27  ;;  %v2386_v46 = vadd.f32 %v2385_v23, %v2384_v12  ;;  %v1448_v16 = vor.u32 1.1754944e-38, %v1447_v21 }
 0x1a7   : > { %v1429_v41 = vsel %vm1428_vm9, %v4863_v6, %v1425_v9  ;;  %v1437_v54 = vmul.f32 %v4865_v18, %v6017_v58  ;;  %4868 = vpow2.f32 %v4515_v59  ;;  %v4867_v17 = vpop.eup %4866  ;;  %v1445_v6 = vand.u32 2147483647, %v6017_v58 }
 0x1a8   : > { %v2483_v8 = vpack.c.bf16 %v2383_v49, %v2383_v49  ;;  %v2387_v55 = vrot.slane %v2386_v46, 2  ;;  %v1434_v10 = vsel %vm1431_vm14, %v1433_v51, %v1429_v41  ;;  %v1351_v44 = vadd.f32 1.0, %v4867_v17 }
 0x1a9   : > { %v1605_v34 = vmul.f32 %v1434_v10, %v5983_v2  ;;  %v1438_v61 = vsub.f32 1.0, %v1437_v54  ;;  %vm1442_vm11 = vweird.f32 %v4865_v18  ;;  %vm1446_vm6 = vcmp.eq.f32.partialorder %v1445_v6, 8.507059e+37 }
 0x1aa   : > { %v2515_v28 = vunpack.c.l.b16 %v2483_v8  ;;  %v2388_v50 = vadd.f32 %v2387_v55, %v2386_v46  ;;  %v1277_v52 = vpop.f32.mrf.mxu3  ;;  %4870 = vrcp.f32 %v1351_v44  ;;  %vm1443_vm5 = vmor %vm1441_vm15, %vm1442_vm11  ;;  %v1460_v54 = vand.u32 2147483647, %v1351_v44 }
 0x1ab   : > { %v2391_v47 = vsel %vm7346_vm13, %v1605_v34, 0.0  ;;  %v1439_v14 = vmul.f32 %v4865_v18, %v1438_v61  ;;  %v6048_v31 = vadd.f32 %v5966_v32, %v1277_v52  ;;  %vm1456_vm14 = vweird.f32 %v1351_v44 }
 0x1ac   : > { %v2530_v56 = vsel %vm2340_vm10, %v2515_v28, %v2529_v24  ;;  %v2389_v11 = vrot.slane %v2388_v50, 1  ;;  %v2392_v27 = vrot.slane %v2391_v47, 4  ;;  %vm6060_vm11 = vcmp.eq.f32.partialorder %v1460_v54, 8.507059e+37 }
 0x1ad   : > { %v4869_v15 = vpop.eup %4868  ;;  %v1440_v2 = vadd.f32 %v4865_v18, %v1439_v14  ;;  %v4516_v9 = vmul.f32 -1.442695, %v6048_v31 }
 0x1ae   : > { %v2390_v12 = vadd.f32 %v2389_v11, %v2388_v50  ;;  %v2393_v26 = vadd.f32 %v2392_v27, %v2391_v47  ;;  %v6050_v23 = vadd.f32 1.0, %v4869_v15 }
 0x1af   : > { %v1444_v53 = vsel %vm1443_vm5, %v4865_v18, %v1440_v2  ;;  %v1462_v18 = vand.u32 2147483648, %v1351_v44 }
 0x1b0   : > { %v2484_v24 = vpack.c.bf16 %v2390_v12, %v2390_v12  ;;  %v2394_v30 = vrot.slane %v2393_v26, 2  ;;  %v1449_v59 = vsel %vm1446_vm6, %v1448_v16, %v1444_v53  ;;  %4872 = vrcp.f32 %v6050_v23  ;;  %v4871_v5 = vpop.eup %4870 }
 0x1b1   : > { %v1606_v58 = vmul.f32 %v1449_v59, %v5998_v25  ;;  %v1452_v51 = vmul.f32 %v4871_v5, %v1351_v44  ;;  %4874 = vpow2.f32 %v4516_v9  ;;  %vm1457_vm9 = vweird.f32 %v4871_v5 }
 0x1b2   : > { %v2516_v49 = vunpack.c.l.b16 %v2484_v24  ;;  %v2395_v46 = vadd.f32 %v2394_v30, %v2393_v26  ;;  %v1279_v57 = vpop.f32.mrf.mxu3  ;;  %vm1458_vm15 = vmor %vm1456_vm14, %vm1457_vm9  ;;  %v1475_v12 = vand.u32 2147483647, %v6050_v23  ;;  %v1477_v44 = vand.u32 2147483648, %v6050_v23 }
 0x1b3   : > { %v2398_v41 = vsel %vm7346_vm13, %v1606_v58, 0.0  ;;  %v1453_v10 = vsub.f32 1.0, %v1452_v51  ;;  %v6058_v61 = vadd.f32 %v5966_v32, %v1279_v57  ;;  %v1621_v28 = vpack.c.bf16 %v1606_v58, %v1605_v34 }
 0x1b4   : > { %v2531_v17 = vsel %vm2342_vm7, %v2516_v49, %v2530_v56  ;;  %v2396_v8 = vrot.slane %v2395_v46, 1  ;;  %v2399_v55 = vrot.slane %v2398_v41, 4  ;;  %v1463_v34 = vor.u32 1.1754944e-38, %v1462_v18 }
 0x1b5   : > { %v1454_v21 = vmul.f32 %v4871_v5, %v1453_v10  ;;  %v4517_v14 = vmul.f32 -1.442695, %v6058_v61  ;;  %4530 = vmatmul.msk.bf16.gmra.mxu0 %vm7346_vm13, %v1621_v28  ;;  %vm1471_vm6 = vweird.f32 %v6050_v23  ;;  %v1478_v54 = vor.u32 1.1754944e-38, %v1477_v44 }
 0x1b6   : > { %v4873_v25 = vpop.eup %4872  ;;  %v2397_v50 = vadd.f32 %v2396_v8, %v2395_v46  ;;  %v2400_v6 = vadd.f32 %v2399_v55, %v2398_v41  ;;  %vm1476_vm14 = vcmp.eq.f32.partialorder %v1475_v12, 8.507059e+37 }
 0x1b7   : > { %v1467_v47 = vmul.f32 %v4873_v25, %v6050_v23  ;;  %v1455_v27 = vadd.f32 %v4871_v5, %v1454_v21  ;;  %v4875_v15 = vpop.eup %4874  ;;  %4876 = vpow2.f32 %v4517_v14  ;;  %vm1472_vm5 = vweird.f32 %v4873_v25 }
 0x1b8   : > { %v2485_v56 = vpack.c.bf16 %v2397_v50, %v2397_v50  ;;  %v2401_v11 = vrot.slane %v2400_v6, 2  ;;  %v6069_v9 = vadd.f32 1.0, %v4875_v15  ;;  %vm1473_vm9 = vmor %vm1471_vm6, %vm1472_vm5 }
 0x1b9   : > { %v1468_v2 = vsub.f32 1.0, %v1467_v47  ;;  %v1459_v53 = vsel %vm1458_vm15, %v4871_v5, %v1455_v27  ;;  %vm7348_vm15 = vcmask 1046534  }
 0x1ba   : > { %v2517_v26 = vunpack.c.l.b16 %v2485_v56  ;;  %v2402_v16 = vadd.f32 %v2401_v11, %v2400_v6  ;;  %v1282_v24 = vpop.f32.mrf.mxu3  ;;  %v1464_v30 = vsel %vm6060_vm11, %v1463_v34, %v1459_v53  ;;  %4878 = vrcp.f32 %v6069_v9 }
 0x1bb   : > { %v1469_v59 = vmul.f32 %v4873_v25, %v1468_v2  ;;  %v6074_v58 = vadd.f32 %v5966_v32, %v1282_v24  ;;  %v1607_v51 = vmul.f32 %v1464_v30, %v6014_v33  ;;  %vm2346_vm11 = vcmask 1045509  }
 0x1bc   : > { %v2532_v49 = vsel %vm2344_vm8, %v2517_v26, %v2531_v17  ;;  %v2403_v46 = vrot.slane %v2402_v16, 1  ;;  %vm1486_vm5 = vweird.f32 %v6069_v9 }
 0x1bd   : > { %v1470_v57 = vadd.f32 %v4873_v25, %v1469_v59  ;;  %v2405_v41 = vsel %vm7346_vm13, %v1607_v51, 0.0  ;;  %v4518_v18 = vmul.f32 -1.442695, %v6074_v58  ;;  %v4877_v8 = vpop.eup %4876 }
 0x1be   : > { %v2404_v5 = vadd.f32 %v2403_v46, %v2402_v16  ;;  %v2406_v55 = vrot.slane %v2405_v41, 4  ;;  %v6082_v50 = vadd.f32 1.0, %v4877_v8  ;;  %v1492_v8 = vand.u32 2147483648, %v6069_v9 }
 0x1bf   : > { %v1474_v10 = vsel %vm1473_vm9, %v4873_v25, %v1470_v57  ;;  %4880 = vpow2.f32 %v4518_v18 }
 0x1c0   : > { %v2486_v17 = vpack.c.bf16 %v2404_v5, %v2404_v5  ;;  %v1479_v28 = vsel %vm1476_vm14, %v1478_v54, %v1474_v10  ;;  %v2407_v33 = vadd.f32 %v2406_v55, %v2405_v41  ;;  %v4879_v6 = vpop.eup %4878  ;;  %4882 = vrcp.f32 %v6082_v50 }
 0x1c1   : > { %v1608_v23 = vmul.f32 %v1479_v28, %v6028_v36  ;;  %v1482_v25 = vmul.f32 %v4879_v6, %v6069_v9  ;;  %vm1487_vm6 = vweird.f32 %v4879_v6  ;;  %v1507_v55 = vand.u32 2147483648, %v6082_v50 }
 0x1c2   : > { %v2518_v21 = vunpack.c.l.b16 %v2486_v17  ;;  %v1284_v52 = vpop.f32.mrf.mxu3  ;;  %v2408_v47 = vrot.slane %v2407_v33, 2  ;;  %v1505_v28 = vand.u32 2147483647, %v6082_v50  ;;  %vm6105_vm14 = vmor %vm1486_vm5, %vm1487_vm6  ;;  %vm1501_vm2 = vweird.f32 %v6082_v50 }
 0x1c3   : > { %v2412_v14 = vsel %vm7346_vm13, %v1608_v23, 0.0  ;;  %v1483_v34 = vsub.f32 1.0, %v1482_v25  ;;  %v6090_v15 = vadd.f32 %v5966_v32, %v1284_v52  ;;  %v1622_v2 = vpack.c.bf16 %v1608_v23, %v1607_v51 }
 0x1c4   : > { %v2533_v56 = vsel %vm2346_vm11, %v2518_v21, %v2532_v49  ;;  %v2413_v11 = vrot.slane %v2412_v14, 4  ;;  %v2409_v27 = vadd.f32 %v2408_v47, %v2407_v33  ;;  %v1490_v51 = vand.u32 2147483647, %v6069_v9 }
 0x1c5   : > { %v4881_v36 = vpop.eup %4880  ;;  %v1484_v26 = vmul.f32 %v4879_v6, %v1483_v34  ;;  %4531 = vmatmul.msk.bf16.gmra.mxu0 %vm7346_vm13, %v1622_v2  ;;  %v4519_v30 = vmul.f32 -1.442695, %v6090_v15  ;;  %v1508_v9 = vor.u32 1.1754944e-38, %v1507_v55  ;;  %vm1506_vm6 = vcmp.eq.f32.partialorder %v1505_v28, 8.507059e+37 }
 0x1c6   : > { %v2414_v12 = vadd.f32 %v2413_v11, %v2412_v14  ;;  %v2410_v44 = vrot.slane %v2409_v27, 1  ;;  %v6092_v16 = vadd.f32 1.0, %v4881_v36  ;;  %v4883_v53 = vpop.eup %4882  ;;  %vm1491_vm5 = vcmp.eq.f32.partialorder %v1490_v51, 8.507059e+37 }
 0x1c7   : > { %v1497_v49 = vmul.f32 %v4883_v53, %v6082_v50  ;;  %v1485_v41 = vadd.f32 %v4879_v6, %v1484_v26  ;;  %vm1502_vm9 = vweird.f32 %v4883_v53 }
 0x1c8   : > { %v2415_v24 = vrot.slane %v2414_v12, 2  ;;  %v2411_v59 = vadd.f32 %v2410_v44, %v2409_v27  ;;  %4884 = vrcp.f32 %v6092_v16  ;;  %v1493_v27 = vor.u32 1.1754944e-38, %v1492_v8  ;;  %vm1503_vm4 = vmor %vm1501_vm2, %vm1502_vm9 }
 0x1c9   : > { %v1498_v54 = vsub.f32 1.0, %v1497_v49  ;;  %4886 = vpow2.f32 %v4519_v30  ;;  %v1489_v47 = vsel %vm6105_vm14, %v4879_v6, %v1485_v41  ;;  %vm7347_vm2 = vcmask 1047559  }
 0x1ca   : > { %v2416_v46 = vadd.f32 %v2415_v24, %v2414_v12  ;;  %v1287_v57 = vpop.f32.mrf.mxu3  ;;  %v2487_v5 = vpack.c.bf16 %v2411_v59, %v2411_v59  ;;  %v1494_v12 = vsel %vm1491_vm5, %v1493_v27, %v1489_v47  ;;  %v1522_v55 = vand.u32 2147483648, %v6092_v16 }
 0x1cb   : > { %v1499_v17 = vmul.f32 %v4883_v53, %v1498_v54  ;;  %v6110_v21 = vadd.f32 %v5966_v32, %v1287_v57  ;;  %vm1516_vm9 = vweird.f32 %v6092_v16  ;;  %v1520_v28 = vand.u32 2147483647, %v6092_v16 }
 0x1cc   : > { %v2417_v18 = vrot.slane %v2416_v46, 1  ;;  %v2519_v10 = vunpack.c.l.b16 %v2487_v5 }
 0x1cd   : > { %v1500_v14 = vadd.f32 %v4883_v53, %v1499_v17  ;;  %v4520_v34 = vmul.f32 -1.442695, %v6110_v21 }
 0x1ce   : > { %v2418_v33 = vadd.f32 %v2417_v18, %v2416_v46  ;;  %v2534_v52 = vsel %vm7348_vm15, %v2519_v10, %v2533_v56  ;;  %v6116_v25 = vpop.eup %4884 }
 0x1cf   : > { %v1504_v2 = vsel %vm1503_vm4, %v4883_v53, %v1500_v14  ;;  %v1512_v56 = vmul.f32 %v6116_v25, %v6092_v16  ;;  %v4887_v36 = vpop.eup %4886  ;;  %4888 = vpow2.f32 %v4520_v34  ;;  %v6128_v53 = vmul.f32 %v1494_v12, %v6048_v31 }
 0x1d0   : > { %v2488_v11 = vpack.c.bf16 %v2418_v33, %v2418_v33  ;;  %v1509_v6 = vsel %vm1506_vm6, %v1508_v9, %v1504_v2  ;;  %v1356_v24 = vadd.f32 1.0, %v4887_v36  ;;  %vm1517_vm4 = vweird.f32 %v6116_v25 }
 0x1d1   : > { %v6122_v26 = vmul.f32 %v1509_v6, %v6058_v61  ;;  %v1513_v59 = vsub.f32 1.0, %v1512_v56  ;;  %vm6147_vm14 = vmor %vm1516_vm9, %vm1517_vm4  ;;  %v1523_v34 = vor.u32 1.1754944e-38, %v1522_v55  ;;  %vm1521_vm4 = vcmp.eq.f32.partialorder %v1520_v28, 8.507059e+37 }
 0x1d2   : > { %v1289_v44 = vpop.f32.mrf.mxu3  ;;  %v2520_v50 = vunpack.c.l.b16 %v2488_v11  ;;  %4890 = vrcp.f32 %v1356_v24  ;;  %v1537_v33 = vand.u32 2147483648, %v1356_v24  ;;  %v1535_v14 = vand.u32 2147483647, %v1356_v24 }
 0x1d3   : > { %v6125_v30 = vadd.f32 %v5966_v32, %v1289_v44  ;;  %v1623_v46 = vpack.c.bf16 %v6122_v26, %v6128_v53  ;;  %v1514_v57 = vmul.f32 %v6116_v25, %v1513_v59  ;;  %vm1531_vm6 = vweird.f32 %v1356_v24 }
 0x1d4   : > { %v6134_v51 = vsel %vm7347_vm2, %v2520_v50, %v2534_v52  ;;  %v1538_v36 = vor.u32 1.1754944e-38, %v1537_v33  ;;  %vm1536_vm1 = vcmp.eq.f32.partialorder %v1535_v14, 8.507059e+37 }
 0x1d5   : > { %v4521_v49 = vmul.f32 -1.442695, %v6125_v30  ;;  %v4889_v61 = vpop.eup %4888  ;;  %4532 = vmatmul.msk.bf16.gmra.mxu0 %vm7346_vm13, %v1623_v46  ;;  %v1515_v18 = vadd.f32 %v6116_v25, %v1514_v57 }
 0x1d6   : > { %v1357_v5 = vadd.f32 1.0, %v4889_v61 }
 0x1d7   : > { %4892 = vpow2.f32 %v4521_v49  ;;  %v1519_v9 = vsel %vm6147_vm14, %v6116_v25, %v1515_v18 }
 0x1d8   : > { %v4891_v31 = vpop.eup %4890  ;;  %4894 = vrcp.f32 %v1357_v5  ;;  %v1524_v12 = vsel %vm1521_vm4, %v1523_v34, %v1519_v9  ;;  %v1552_v59 = vand.u32 2147483648, %v1357_v5 }
 0x1d9   : > { %v1527_v54 = vmul.f32 %v4891_v31, %v1356_v24  ;;  %vm1532_vm5 = vweird.f32 %v4891_v31  ;;  %v1550_v24 = vand.u32 2147483647, %v1357_v5  ;;  %v1611_v57 = vmul.f32 %v1524_v12, %v6074_v58 }
 0x1da   : > { %v1292_v41 = vpop.f32.mrf.mxu3  ;;  %vm1533_vm9 = vmor %vm1531_vm6, %vm1532_vm5  ;;  %vm1546_vm5 = vweird.f32 %v1357_v5  ;;  %v1553_v55 = vor.u32 1.1754944e-38, %v1552_v59  ;;  %v2419_v58 = vsel %vm7346_vm13, %v6128_v53, 0.0 }
 0x1db   : > { %v6141_v8 = vadd.f32 %v5966_v32, %v1292_v41  ;;  %v1528_v10 = vsub.f32 1.0, %v1527_v54  ;;  %vm1551_vm6 = vcmp.eq.f32.partialorder %v1550_v24, 8.507059e+37  ;;  %v2420_v34 = vrot.slane %v2419_v58, 4 }
 0x1dd   : > { %v4893_v17 = vpop.eup %4892  ;;  %v4522_v23 = vmul.f32 -1.442695, %v6141_v8  ;;  %v1529_v47 = vmul.f32 %v4891_v31, %v1528_v10 }
 0x1de   : > { %v6151_v11 = vadd.f32 1.0, %v4893_v17  ;;  %v4895_v27 = vpop.eup %4894 }
 0x1df   : > { %4896 = vpow2.f32 %v4522_v23  ;;  %v1530_v16 = vadd.f32 %v4891_v31, %v1529_v47  ;;  %v1542_v2 = vmul.f32 %v4895_v27, %v1357_v5  ;;  %vm1547_vm14 = vweird.f32 %v4895_v27 }
 0x1e0   : > { %4898 = vrcp.f32 %v6151_v11  ;;  %v2426_v5 = vsel %vm7346_vm13, %v6122_v26, 0.0  ;;  %v2433_v23 = vsel %vm7346_vm13, %v1611_v57, 0.0  ;;  %v1567_v52 = vand.u32 2147483648, %v6151_v11 }
 0x1e1   : > { %v1534_v6 = vsel %vm1533_vm9, %v4891_v31, %v1530_v16  ;;  %v1543_v44 = vsub.f32 1.0, %v1542_v2  ;;  %v2427_v16 = vrot.slane %v2426_v5, 4  ;;  %vm1561_vm9 = vweird.f32 %v6151_v11 }
 0x1e2   : > { %v1294_v56 = vpop.f32.mrf.mxu3  ;;  %v1539_v50 = vsel %vm1536_vm1, %v1538_v36, %v1534_v6  ;;  %vm1548_vm1 = vmor %vm1546_vm5, %vm1547_vm14  ;;  %v1568_v12 = vor.u32 1.1754944e-38, %v1567_v52 }
 0x1e3   : > { %v6158_v49 = vadd.f32 %v5966_v32, %v1294_v56  ;;  %v1612_v25 = vmul.f32 %v1539_v50, %v6090_v15  ;;  %v1544_v46 = vmul.f32 %v4895_v27, %v1543_v44  ;;  %v2434_v56 = vrot.slane %v2433_v23, 4 }
 0x1e4   : > { %v2421_v50 = vadd.f32 %v2420_v34, %v2419_v58 }
 0x1e5   : > { %v4897_v61 = vpop.eup %4896  ;;  %v4523_v41 = vmul.f32 -1.442695, %v6158_v49  ;;  %v1545_v54 = vadd.f32 %v4895_v27, %v1544_v46  ;;  %v1624_v32 = vpack.c.bf16 %v1612_v25, %v1611_v57  ;;  %v2440_v47 = vsel %vm7346_vm13, %v1612_v25, 0.0 }
 0x1e6   : > { %v6163_v31 = vadd.f32 1.0, %v4897_v61  ;;  %v4899_v18 = vpop.eup %4898  ;;  %v2441_v36 = vrot.slane %v2440_v47, 4  ;;  %v2428_v46 = vadd.f32 %v2427_v16, %v2426_v5  ;;  %v2435_v61 = vadd.f32 %v2434_v56, %v2433_v23 }
 0x1e7   : > { %4900 = vpow2.f32 %v4523_v41  ;;  %v1549_v10 = vsel %vm1548_vm1, %v4895_v27, %v1545_v54  ;;  %v1557_v15 = vmul.f32 %v4899_v18, %v6151_v11  ;;  %4533 = vmatmul.msk.bf16.gmra.mxu0 %vm7346_vm13, %v1624_v32  ;;  %vm1562_vm4 = vweird.f32 %v4899_v18  ;;  %v4563_v54 = vld [vmem:[%s7335_s4 + $0xd0] sm:$0xf] }
 0x1e8   : > { %v1554_v17 = vsel %vm1551_vm6, %v1553_v55, %v1549_v10  ;;  %4902 = vrcp.f32 %v6163_v31  ;;  %v1565_v27 = vand.u32 2147483647, %v6151_v11  ;;  %vm1563_vm14 = vmor %vm1561_vm9, %vm1562_vm4  ;;  %v2442_v57 = vadd.f32 %v2441_v36, %v2440_v47 }
 0x1e9   : > { %v1613_v28 = vmul.f32 %v1554_v17, %v6110_v21  ;;  %v1558_v33 = vsub.f32 1.0, %v1557_v15  ;;  %v1582_v41 = vand.u32 2147483648, %v6163_v31  ;;  %v1580_v10 = vand.u32 2147483647, %v6163_v31 }
 0x1ea   : > { %vm1566_vm5 = vcmp.eq.f32.partialorder %v1565_v27, 8.507059e+37  ;;  %vm1576_vm6 = vweird.f32 %v6163_v31  ;;  %v2436_v47 = vrot.slane %v2435_v61, 2  ;;  %v2443_v34 = vrot.slane %v2442_v57, 2 }
 0x1eb   : > { %v1559_v14 = vmul.f32 %v4899_v18, %v1558_v33  ;;  %v2447_v53 = vsel %vm7346_vm13, %v1613_v28, 0.0  ;;  %v2429_v33 = vrot.slane %v2428_v46, 2  ;;  %v1583_v27 = vor.u32 1.1754944e-38, %v1582_v41 }
 0x1ec   : > { %v2448_v59 = vrot.slane %v2447_v53, 4  ;;  %vm1581_vm9 = vcmp.eq.f32.partialorder %v1580_v10, 8.507059e+37 }
 0x1ed   : > { %v4901_v9 = vpop.eup %4900  ;;  %v1560_v2 = vadd.f32 %v4899_v18, %v1559_v14  ;;  %v2430_v36 = vadd.f32 %v2429_v33, %v2428_v46 }
 0x1ee   : > { %v6179_v21 = vadd.f32 1.0, %v4901_v9  ;;  %v4903_v26 = vpop.eup %4902  ;;  %v2449_v15 = vadd.f32 %v2448_v59, %v2447_v53 }
 0x1ef   : > { %v1564_v6 = vsel %vm1563_vm14, %v4899_v18, %v1560_v2  ;;  %v1572_v44 = vmul.f32 %v4903_v26, %v6163_v31  ;;  %v4691_v18 = vld [vmem:[%s7335_s4 + $0xd4] sm:$0x10]  ;;  %vm1577_vm1 = vweird.f32 %v4903_v26  ;;  %v2431_v46 = vrot.slane %v2430_v36, 1 }
 0x1f0   : > { %4904 = vrcp.f32 %v6179_v21  ;;  %v1569_v25 = vsel %vm1566_vm5, %v1568_v12, %v1564_v6  ;;  %v4564_v52 = vor.u32 %v4691_v18, %v4563_v54  ;;  %vm1578_vm4 = vmor %vm1576_vm6, %vm1577_vm1  ;;  %v2450_v53 = vrot.slane %v2449_v15, 2 }
 0x1f1   : > { %v1614_v24 = vmul.f32 %v1569_v25, %v6125_v30  ;;  %v1573_v11 = vsub.f32 1.0, %v1572_v44  ;;  %v2422_v30 = vrot.slane %v2421_v50, 2  ;;  %v1597_v6 = vand.u32 2147483648, %v6179_v21 }
 0x1f2   : > { %v2579_v2 = vsel %vm446_vm0, %v4564_v52, 0  ;;  %v2437_v44 = vadd.f32 %v2436_v47, %v2435_v61  ;;  %v2451_v41 = vadd.f32 %v2450_v53, %v2449_v15  ;;  %vm1591_vm5 = vweird.f32 %v6179_v21 }
 0x1f3   : > { %v2454_v55 = vsel %vm7346_vm13, %v1614_v24, 0.0  ;;  %v1574_v32 = vmul.f32 %v4903_v26, %v1573_v11  ;;  %v1625_v58 = vpack.c.bf16 %v1614_v24, %v1613_v28  ;;  %2587 = vmatpush.bf16.msra.mxu1 %v2579_v2  ;;  %v2423_v25 = vadd.f32 %v2422_v30, %v2421_v50 }
 0x1f4   : > { %v2455_v17 = vrot.slane %v2454_v55, 4  ;;  %v2444_v24 = vadd.f32 %v2443_v34, %v2442_v57  ;;  %v2452_v50 = vrot.slane %v2451_v41, 1  ;;  %v2432_v15 = vadd.f32 %v2431_v46, %v2430_v36  ;;  %v4559_v46 = vld [vmem:[%s7335_s4 + $0xc0] sm:$0xf] }
 0x1f5   : > { %v1575_v23 = vadd.f32 %v4903_v26, %v1574_v32  ;;  %v2438_v32 = vrot.slane %v2437_v44, 1 }
 0x1f6   : > { %v4905_v5 = vpop.eup %4904  ;;  %v2456_v14 = vadd.f32 %v2455_v17, %v2454_v55  ;;  %v2424_v17 = vrot.slane %v2423_v25, 1  ;;  %v2453_v34 = vadd.f32 %v2452_v50, %v2451_v41  ;;  %v2490_v2 = vpack.c.bf16 %v2432_v15, %v2432_v15 }
 0x1f7   : > { %v1587_v9 = vmul.f32 %v4905_v5, %v6179_v21  ;;  %v1579_v16 = vsel %vm1578_vm4, %v4903_v26, %v1575_v23  ;;  %4534 = vmatmul.msk.bf16.gmra.mxu0 %vm7346_vm13, %v1625_v58  ;;  %vm1592_vm14 = vweird.f32 %v4905_v5  ;;  %v1595_v26 = vand.u32 2147483647, %v6179_v21 }
 0x1f8   : > { %v1584_v56 = vsel %vm1581_vm9, %v1583_v27, %v1579_v16  ;;  %v2457_v31 = vrot.slane %v2456_v14, 2  ;;  %vm1593_vm1 = vmor %vm1591_vm5, %vm1592_vm14  ;;  %v2445_v58 = vrot.slane %v2444_v24, 1  ;;  %v2439_v52 = vadd.f32 %v2438_v32, %v2437_v44 }
 0x1f9   : > { %v1588_v28 = vsub.f32 1.0, %v1587_v9  ;;  %v1615_v12 = vmul.f32 %v1584_v56, %v6141_v8  ;;  %v1598_v8 = vor.u32 1.1754944e-38, %v1597_v6  ;;  %vm1596_vm6 = vcmp.eq.f32.partialorder %v1595_v26, 8.507059e+37 }
 0x1fa   : > { %v2458_v55 = vadd.f32 %v2457_v31, %v2456_v14  ;;  %v2425_v14 = vadd.f32 %v2424_v17, %v2423_v25  ;;  %v2446_v27 = vadd.f32 %v2445_v58, %v2444_v24  ;;  %v2493_v36 = vpack.c.bf16 %v2453_v34, %v2453_v34 }
 0x1fb   : > { %v1589_v59 = vmul.f32 %v4905_v5, %v1588_v28  ;;  %v2461_v11 = vsel %vm7346_vm13, %v1615_v12, 0.0  ;;  %v2491_v28 = vpack.c.bf16 %v2439_v52, %v2439_v52  ;;  %v2522_v44 = vunpack.c.l.b16 %v2490_v2 }
 0x1fc   : > { %v2462_v54 = vrot.slane %v2461_v11, 4  ;;  %v2459_v23 = vrot.slane %v2458_v55, 1  ;;  %v2489_v6 = vpack.c.bf16 %v2425_v14, %v2425_v14 }
 0x1fd   : > { %v1590_v18 = vadd.f32 %v4905_v5, %v1589_v59  ;;  %v2492_v59 = vpack.c.bf16 %v2446_v27, %v2446_v27  ;;  %v2523_v25 = vunpack.c.l.b16 %v2491_v28 }
 0x1fe   : > { %v2463_v10 = vadd.f32 %v2462_v54, %v2461_v11  ;;  %v2460_v53 = vadd.f32 %v2459_v23, %v2458_v55  ;;  %v2521_v54 = vunpack.c.l.b16 %v2489_v6  ;;  %v4690_v55 = vld [vmem:[%s7335_s4 + $0xc4] sm:$0xf0] }
 0x1ff   : > { %v1594_v61 = vsel %vm1593_vm1, %v4905_v5, %v1590_v18  ;;  %v2524_v41 = vunpack.c.l.b16 %v2492_v59  ;;  %vm2047_vm1 = vcmask 523264  }
 0x200   : > { %v1599_v33 = vsel %vm1596_vm6, %v1598_v8, %v1594_v61  ;;  %v2464_v57 = vrot.slane %v2463_v10, 2  ;;  %v2494_v26 = vpack.c.bf16 %v2460_v53, %v2460_v53  ;;  %v2536_v8 = vsel %vm2338_vm12, %v2522_v44, %v2521_v54 }
 0x201   : > { %v1616_v30 = vmul.f32 %v1599_v33, %v6158_v49  ;;  %v4560_v61 = vor.u32 %v4690_v55, %v4559_v46  ;;  %v2537_v17 = vsel %vm2340_vm10, %v2523_v25, %v2536_v8  ;;  %v6216_v33 = vld [vmem:[%s7336_s5 + $0x18] ss:$0 sm:$0xff]  ;;  %v6238_v55 = vld [vmem:[%s7336_s5 + $0x20] ss:$0 sm:$0xff] }
 0x202   : > { %v2465_v47 = vadd.f32 %v2464_v57, %v2463_v10  ;;  %v2526_v32 = vunpack.c.l.b16 %v2494_v26  ;;  %v2538_v50 = vsel %vm2342_vm7, %v2524_v41, %v2537_v17 }
 0x203   : > { %v2468_v21 = vsel %vm7346_vm13, %v1616_v30, 0.0  ;;  %v1626_v5 = vpack.c.bf16 %v1616_v30, %v1615_v12  ;;  %v2525_v12 = vunpack.c.l.b16 %v2493_v36  ;;  %2588 = vmatpush.bf16.msra.mxu1 %v4560_v61 }
 0x204   : > { %v2469_v9 = vrot.slane %v2468_v21, 4  ;;  %v2466_v16 = vrot.slane %v2465_v47, 1 }
 0x205   : > { %v2539_v30 = vsel %vm2344_vm8, %v2525_v12, %v2538_v50 }
 0x206   : > { %v2470_v56 = vadd.f32 %v2469_v9, %v2468_v21  ;;  %v2467_v31 = vadd.f32 %v2466_v16, %v2465_v47  ;;  %v2540_v15 = vsel %vm2346_vm11, %v2526_v32, %v2539_v30  ;;  %4565 = vmatmul.msk.bf16.vlgmr.msra.gmra.mxu1 %vm442_vm3, %v5403_v22 }
 0x207   : > { %4535 = vmatmul.msk.bf16.gmra.mxu0 %vm7346_vm13, %v1626_v5 }
 0x208   : > { %v2471_v49 = vrot.slane %v2470_v56, 2  ;;  %v2495_v24 = vpack.c.bf16 %v2467_v31, %v2467_v31 }
 0x20a   : > { %v2472_v11 = vadd.f32 %v2471_v49, %v2470_v56  ;;  %v2527_v58 = vunpack.c.l.b16 %v2495_v24 }
 0x20c   : > { %v2473_v18 = vrot.slane %v2472_v11, 1  ;;  %v2541_v47 = vsel %vm7348_vm15, %v2527_v58, %v2540_v15 }
 0x20e   : > { %v2474_v10 = vadd.f32 %v2473_v18, %v2472_v11 }
 0x210   : > { %v2496_v57 = vpack.c.bf16 %v2474_v10, %v2474_v10  ;;  %v1669_v52 = vpop.f32.mrf.mxu0 }
 0x211   : > { %v1670_v21 = vadd.f32 %v6216_v33, %v1669_v52 }
 0x212   : > { %v2528_v23 = vunpack.c.l.b16 %v2496_v57 }
 0x213   : > { %v4536_v27 = vmul.f32 -1.442695, %v1670_v21 }
 0x214   : > { %v2542_v14 = vsel %vm7347_vm2, %v2528_v23, %v2541_v47 }
 0x215   : > { %v2543_v9 = vpack.c.b16 %v2542_v14, %v6134_v51  ;;  %4906 = vpow2.f32 %v4536_v27 }
 0x217   : > { %4556 = vmatmul.msk.bf16.vlgmr.msra.gmra.mxu3 %vm7346_vm13, %v2543_v9 }
 0x218   : > { %v1671_v34 = vpop.f32.mrf.mxu0 }
 0x219   : > { %v1672_v16 = vadd.f32 %v6216_v33, %v1671_v34 }
 0x21b   : > { %v4907_v5 = vpop.eup %4906  ;;  %v4537_v2 = vmul.f32 -1.442695, %v1672_v16 }
 0x21c   : > { %v1757_v53 = vadd.f32 1.0, %v4907_v5 }
 0x21d   : > { %4908 = vpow2.f32 %v4537_v2 }
 0x21e   : > { %4910 = vrcp.f32 %v1757_v53  ;;  %v1784_v36 = vand.u32 2147483648, %v1757_v53  ;;  %v1782_v11 = vand.u32 2147483647, %v1757_v53  ;;  %vm1778_vm9 = vweird.f32 %v1757_v53 }
 0x220   : > { %v1785_v41 = vor.u32 1.1754944e-38, %v1784_v36  ;;  %vm1783_vm5 = vcmp.eq.f32.partialorder %v1782_v11, 8.507059e+37 }
 0x222   : > { %v1674_v56 = vpop.f32.mrf.mxu0 }
 0x223   : > { %v6230_v28 = vadd.f32 %v6216_v33, %v1674_v56  ;;  %v4909_v22 = vpop.eup %4908 }
 0x224   : > { %v4911_v6 = vpop.eup %4910  ;;  %v1758_v51 = vadd.f32 1.0, %v4909_v22 }
 0x225   : > { %v4538_v31 = vmul.f32 -1.442695, %v6230_v28  ;;  %v1774_v59 = vmul.f32 %v4911_v6, %v1757_v53  ;;  %vm1779_vm4 = vweird.f32 %v4911_v6 }
 0x226   : > { %vm1780_vm14 = vmor %vm1778_vm9, %vm1779_vm4  ;;  %v1799_v61 = vand.u32 2147483648, %v1758_v51  ;;  %v1797_v50 = vand.u32 2147483647, %v1758_v51  ;;  %vm1793_vm4 = vweird.f32 %v1758_v51 }
 0x227   : > { %4912 = vpow2.f32 %v4538_v31  ;;  %v1775_v49 = vsub.f32 1.0, %v1774_v59 }
 0x228   : > { %4914 = vrcp.f32 %v1758_v51  ;;  %v1800_v52 = vor.u32 1.1754944e-38, %v1799_v61 }
 0x229   : > { %v1776_v26 = vmul.f32 %v4911_v6, %v1775_v49 }
 0x22a   : > { %v6233_v44 = vpop.f32.mrf.mxu0 }
 0x22b   : > { %v1777_v24 = vadd.f32 %v4911_v6, %v1776_v26 }
 0x22d   : > { %v4913_v25 = vpop.eup %4912  ;;  %v1781_v12 = vsel %vm1780_vm14, %v4911_v6, %v1777_v24  ;;  %vm1798_vm14 = vcmp.eq.f32.partialorder %v1797_v50, 8.507059e+37 }
 0x22e   : > { %v4915_v54 = vpop.eup %4914  ;;  %v1759_v18 = vadd.f32 1.0, %v4913_v25  ;;  %v1786_v8 = vsel %vm1783_vm5, %v1785_v41, %v1781_v12 }
 0x22f   : > { %v1789_v46 = vmul.f32 %v4915_v54, %v1758_v51  ;;  %v2013_v32 = vmul.f32 %v1786_v8, %v1670_v21  ;;  %vm1794_vm6 = vweird.f32 %v4915_v54 }
 0x230   : > { %4916 = vrcp.f32 %v1759_v18  ;;  %vm1795_vm9 = vmor %vm1793_vm4, %vm1794_vm6  ;;  %v1812_v34 = vand.u32 2147483647, %v1759_v18  ;;  %v1814_v5 = vand.u32 2147483648, %v1759_v18  ;;  %vm1808_vm13 = vweird.f32 %v1759_v18 }
 0x231   : > { %v1790_v10 = vsub.f32 1.0, %v1789_v46  ;;  %v2031_v57 = vmul.f32 %v6238_v55, %v2013_v32 }
 0x232   : > { %v6240_v17 = vpop.f32.mrf.mxu0  ;;  %v1815_v59 = vor.u32 1.1754944e-38, %v1814_v5  ;;  %vm1813_vm4 = vcmp.eq.f32.partialorder %v1812_v34, 8.507059e+37 }
 0x233   : > { %v1791_v58 = vmul.f32 %v4915_v54, %v1790_v10  ;;  %v2048_v15 = vsel %vm2047_vm1, %v2031_v57, 0.0 }
 0x234   : > { %2049 = vadd.xlane.f32.xlu0 %v2048_v15 }
 0x235   : > { %v1792_v30 = vadd.f32 %v4915_v54, %v1791_v58 }
 0x236   : > { %v4917_v23 = vpop.eup %4916 }
 0x237   : > { %v1796_v47 = vsel %vm1795_vm9, %v4915_v54, %v1792_v30  ;;  %v1804_v21 = vmul.f32 %v4917_v23, %v1759_v18  ;;  %vm1809_vm5 = vweird.f32 %v4917_v23 }
 0x238   : > { %v1801_v14 = vsel %vm1798_vm14, %v1800_v52, %v1796_v47  ;;  %vm1810_vm6 = vmor %vm1808_vm13, %vm1809_vm5 }
 0x239   : > { %v2014_v27 = vmul.f32 %v1801_v14, %v1672_v16  ;;  %v1805_v9 = vsub.f32 1.0, %v1804_v21 }
 0x23a   : > { %v1681_v2 = vpop.f32.mrf.mxu0 }
 0x23b   : > { %v1806_v53 = vmul.f32 %v4917_v23, %v1805_v9  ;;  %v1682_v56 = vadd.f32 %v6216_v33, %v1681_v2  ;;  %v2032_v22 = vmul.f32 %v6238_v55, %v2014_v27 }
 0x23d   : > { %v1807_v31 = vadd.f32 %v4917_v23, %v1806_v53  ;;  %v4541_v6 = vmul.f32 -1.442695, %v1682_v56  ;;  %v2051_v51 = vsel %vm2047_vm1, %v2032_v22, 0.0 }
 0x23e   : > { %2052 = vadd.xlane.f32.xlu0 %v2051_v51 }
 0x23f   : > { %v1811_v49 = vsel %vm1810_vm6, %v4917_v23, %v1807_v31  ;;  %4918 = vpow2.f32 %v4541_v6 }
 0x240   : > { %v1816_v16 = vsel %vm1813_vm4, %v1815_v59, %v1811_v49 }
 0x241   : > { %v2015_v36 = vmul.f32 %v1816_v16, %v6230_v28 }
 0x242   : > { %v1684_v26 = vpop.f32.mrf.mxu0 }
 0x243   : > { %v1685_v11 = vadd.f32 %v6216_v33, %v1684_v26  ;;  %v2033_v25 = vmul.f32 %v6238_v55, %v2015_v36 }
 0x245   : > { %v4919_v24 = vpop.eup %4918  ;;  %v4542_v54 = vmul.f32 -1.442695, %v1685_v11  ;;  %v2054_v41 = vsel %vm2047_vm1, %v2033_v25, 0.0 }
 0x246   : > { %v1762_v18 = vadd.f32 1.0, %v4919_v24  ;;  %2055 = vadd.xlane.f32.xlu0 %v2054_v41 }
 0x247   : > { %4920 = vpow2.f32 %v4542_v54 }
 0x248   : > { %4922 = vrcp.f32 %v1762_v18  ;;  %v1859_v50 = vand.u32 2147483648, %v1762_v18  ;;  %v1857_v30 = vand.u32 2147483647, %v1762_v18  ;;  %vm1853_vm9 = vweird.f32 %v1762_v18 }
 0x24a   : > { %v1686_v12 = vpop.f32.mrf.mxu0  ;;  %v1860_v47 = vor.u32 1.1754944e-38, %v1859_v50  ;;  %vm1858_vm5 = vcmp.eq.f32.partialorder %v1857_v30, 8.507059e+37  ;;  %v4768_v30 = vld [vmem:[%s7336_s5 + $0x30] ss:$0 sm:$0xff] }
 0x24b   : > { %v1687_v46 = vadd.f32 %v6216_v33, %v1686_v12 }
 0x24d   : > { %v4921_v8 = vpop.eup %4920  ;;  %v4543_v32 = vmul.f32 -1.442695, %v1687_v46 }
 0x24e   : > { %v4923_v10 = vpop.eup %4922  ;;  %v1763_v28 = vadd.f32 1.0, %v4921_v8 }
 0x24f   : > { %v1849_v61 = vmul.f32 %v4923_v10, %v1762_v18  ;;  %4924 = vpow2.f32 %v4543_v32  ;;  %vm1854_vm13 = vweird.f32 %v4923_v10 }
 0x250   : > { %4926 = vrcp.f32 %v1763_v28  ;;  %vm1855_vm14 = vmor %vm1853_vm9, %vm1854_vm13  ;;  %v1874_v2 = vand.u32 2147483648, %v1763_v28  ;;  %v1872_v22 = vand.u32 2147483647, %v1763_v28  ;;  %vm1868_vm4 = vweird.f32 %v1763_v28 }
 0x251   : > { %v1850_v58 = vsub.f32 1.0, %v1849_v61 }
 0x252   : > { %v1875_v49 = vor.u32 1.1754944e-38, %v1874_v2  ;;  %vm1873_vm9 = vcmp.eq.f32.partialorder %v1872_v22, 8.507059e+37  ;;  %v6258_v50 = vpop.f32.mrf.mxu0  ;;  %v5247_v2 = vmov 0  }
 0x253   : > { %v1851_v57 = vmul.f32 %v4923_v10, %v1850_v58  ;;  %4760 = vset.pattern.permute.xlu0 %v5247_v2  ;;  %4762 = vset.pattern.permute.xlu1 %v5247_v2 }
 0x254   : > { %4761 = vset.pattern.permute.xlu2 %v5247_v2 }
 0x255   : > { %v4925_v15 = vpop.eup %4924  ;;  %v1852_v23 = vadd.f32 %v4923_v10, %v1851_v57 }
 0x256   : > { %v4927_v52 = vpop.eup %4926  ;;  %v1764_v21 = vadd.f32 1.0, %v4925_v15 }
 0x257   : > { %v1856_v14 = vsel %vm1855_vm14, %v4923_v10, %v1852_v23  ;;  %v1864_v27 = vmul.f32 %v4927_v52, %v1763_v28  ;;  %vm1869_vm6 = vweird.f32 %v4927_v52 }
 0x258   : > { %v1861_v9 = vsel %vm1858_vm5, %v1860_v47, %v1856_v14  ;;  %4928 = vrcp.f32 %v1764_v21  ;;  %vm1870_vm13 = vmor %vm1868_vm4, %vm1869_vm6  ;;  %v1889_v24 = vand.u32 2147483648, %v1764_v21  ;;  %v1887_v41 = vand.u32 2147483647, %v1764_v21 }
 0x259   : > { %v2018_v34 = vmul.f32 %v1861_v9, %v1682_v56  ;;  %v1865_v5 = vsub.f32 1.0, %v1864_v27  ;;  %vm1883_vm5 = vweird.f32 %v1764_v21 }
 0x25a   : > { %v1890_v32 = vor.u32 1.1754944e-38, %v1889_v24  ;;  %vm1888_vm6 = vcmp.eq.f32.partialorder %v1887_v41, 8.507059e+37  ;;  %v4574_v24 = vld [vmem:[%s7335_s4 + $0x100] sm:$0xf] }
 0x25b   : > { %v1866_v53 = vmul.f32 %v4927_v52, %v1865_v5  ;;  %v2036_v31 = vmul.f32 %v6238_v55, %v2018_v34  ;;  %v2645_v34 = vld [vmem:[%s7335_s4 + $0x120] sm:$0x3] }
 0x25d   : > { %v1867_v6 = vadd.f32 %v4927_v52, %v1866_v53  ;;  %v2063_v51 = vsel %vm2047_vm1, %v2036_v31, 0.0  ;;  %v2660_v53 = vunpack.c.l.b16 %v2645_v34 }
 0x25e   : > { %v4929_v59 = vpop.eup %4928  ;;  %2064 = vadd.xlane.f32.xlu0 %v2063_v51 }
 0x25f   : > { %v1871_v16 = vsel %vm1870_vm13, %v4927_v52, %v1867_v6  ;;  %v1879_v36 = vmul.f32 %v4929_v59, %v1764_v21  ;;  %vm1884_vm14 = vweird.f32 %v4929_v59  ;;  %v6263_v52 = vpop.f32.mrf.mxu0  ;;  %v6279_v6 = vld [vmem:[%s7336_s5 + $0x28] ss:$0 sm:$0xff] }
 0x260   : > { %v1876_v26 = vsel %vm1873_vm9, %v1875_v49, %v1871_v16  ;;  %vm1885_vm2 = vmor %vm1883_vm5, %vm1884_vm14  ;;  %v4578_v16 = vld [vmem:[%s7335_s4 + $0x110] sm:$0xf] }
 0x261   : > { %v2019_v56 = vmul.f32 %v1876_v26, %v1685_v11  ;;  %v1880_v25 = vsub.f32 1.0, %v1879_v36  ;;  %v4695_v36 = vld [vmem:[%s7335_s4 + $0x114] sm:$0xf0] }
 0x263   : > { %v1881_v54 = vmul.f32 %v4929_v59, %v1880_v25  ;;  %v2037_v18 = vmul.f32 %v6238_v55, %v2019_v56  ;;  %v4579_v25 = vor.u32 %v4695_v36, %v4578_v16 }
 0x265   : > { %v1882_v12 = vadd.f32 %v4929_v59, %v1881_v54  ;;  %v2066_v8 = vsel %vm2047_vm1, %v2037_v18, 0.0  ;;  %v4694_v54 = vld [vmem:[%s7335_s4 + $0x104] sm:$0xf0] }
 0x266   : > { %2067 = vadd.xlane.f32.xlu0 %v2066_v8 }
 0x267   : > { %v1886_v10 = vsel %vm1885_vm2, %v4929_v59, %v1882_v12  ;;  %v6273_v5 = vpop.f32.mrf.mxu0  ;;  %v2664_v59 = vpack.c.b16 %v2660_v53, %v2660_v53  ;;  %vm7382_vm2 = vcmask 1041408  }
 0x268   : > { %v1891_v28 = vsel %vm1888_vm6, %v1890_v32, %v1886_v10  ;;  %v4575_v32 = vor.u32 %v4694_v54, %v4574_v24 }
 0x269   : > { %v2020_v61 = vmul.f32 %v1891_v28, %v1687_v46  ;;  %v2673_v56 = vsel %vm7382_vm2, %v2664_v59, 0  ;;  %v4570_v28 = vld [vmem:[%s7335_s4 + $0xf0] sm:$0xf] }
 0x26a   : > { %2679 = vmatpush.bf16.msrb.mxu1 %v2673_v56 }
 0x26b   : > { %v2038_v11 = vmul.f32 %v6238_v55, %v2020_v61  ;;  %v4693_v61 = vld [vmem:[%s7335_s4 + $0xf4] sm:$0xf0] }
 0x26d   : > { %v2069_v58 = vsel %vm2047_vm1, %v2038_v11, 0.0 }
 0x26e   : > { %2070 = vadd.xlane.f32.xlu0 %v2069_v58  ;;  %2680 = vmatpush.bf16.msrb.mxu1 %v4579_v25  ;;  %v4571_v58 = vor.u32 %v4693_v61, %v4570_v28 }
 0x26f   : > { %v1696_v12 = vpop.f32.mrf.mxu0 }
 0x272   : > { %2681 = vmatpush.bf16.msrb.mxu1 %v4575_v32 }
 0x276   : > { %2682 = vmatpush.bf16.msrb.mxu1 %v4571_v58 }
 0x283   : > { %v2590_v57 = vpop.f32.mrf.mxu1 }
 0x28b   : > { %v2592_v21 = vpop.f32.mrf.mxu1 }
 0x29a   : > { %v2562_v15 = vpop.f32.mrf.mxu3 }
 0x29b   : > { %v2591_v23 = vadd.f32 %v2590_v57, %v2562_v15 }
 0x29d   : > { %v6265_v47 = vadd.f32 %v4768_v30, %v2591_v23 }
 0x29f   : > { %v4566_v46 = vmul.f32 -1.442695, %v6265_v47 }
 0x2a1   : > { %4930 = vpow2.f32 %v4566_v46  ;;  %v6301_v46 = vpop.f32.mrf.mxu0 }
 0x2a2   : > { %v2564_v14 = vpop.f32.mrf.mxu3 }
 0x2a3   : > { %v2593_v27 = vadd.f32 %v2592_v21, %v2564_v14 }
 0x2a5   : > { %v6268_v9 = vadd.f32 %v4768_v30, %v2593_v27 }
 0x2a7   : > { %v4931_v22 = vpop.eup %4930  ;;  %v4567_v31 = vmul.f32 -1.442695, %v6268_v9  ;;  %v2050_v49 = vpop.xlane.xlu0 %2049 }
 0x2a8   : > { %v2605_v51 = vadd.f32 1.0, %v4931_v22  ;;  %v2098_v26 = vadd.f32 %v6279_v6, %v2050_v49 }
 0x2a9   : > { %4932 = vpow2.f32 %v4567_v31  ;;  %v6309_v54 = vpop.f32.mrf.mxu0 }
 0x2aa   : > { %4934 = vrcp.f32 %v2605_v51  ;;  %2116 = vperm.xlu0 %4760, %v2098_v26   ;;  %v2618_v21 = vand.u32 2147483648, %v2605_v51  ;;  %vm2612_vm13 = vweird.f32 %v2605_v51  ;;  %v2616_v14 = vand.u32 2147483647, %v2605_v51 }
 0x2ab   : > { %v1690_v26 = vadd.f32 %v6216_v33, %v6258_v50 }
 0x2ac   : > { %v2619_v31 = vor.u32 1.1754944e-38, %v2618_v21  ;;  %vm2617_vm5 = vcmp.eq.f32.partialorder %v2616_v14, 8.507059e+37 }
 0x2af   : > { %v4933_v41 = vpop.eup %4932 }
 0x2b0   : > { %v4935_v18 = vpop.eup %4934  ;;  %v2606_v8 = vadd.f32 1.0, %v4933_v41  ;;  %v4544_v41 = vmul.f32 -1.442695, %v1690_v26 }
 0x2b1   : > { %v2608_v10 = vmul.f32 %v4935_v18, %v2605_v51  ;;  %vm2613_vm4 = vweird.f32 %v4935_v18  ;;  %v6303_v49 = vpop.xlane.xlu0 %2052  ;;  %v1704_v50 = vpop.f32.mrf.mxu0 }
 0x2b2   : > { %4936 = vrcp.f32 %v2606_v8  ;;  %vm2614_vm9 = vmor %vm2612_vm13, %vm2613_vm4  ;;  %v2633_v34 = vand.u32 2147483648, %v2606_v8  ;;  %v2631_v22 = vand.u32 2147483647, %v2606_v8  ;;  %vm2627_vm6 = vweird.f32 %v2606_v8 }
 0x2b3   : > { %v2609_v11 = vsub.f32 1.0, %v2608_v10  ;;  %vm2668_vm4 = vcmask 424960   ;;  %4938 = vpow2.f32 %v4544_v41  ;;  %v6315_v61 = vadd.f32 %v6216_v33, %v1704_v50 }
 0x2b4   : > { %v2634_v36 = vor.u32 1.1754944e-38, %v2633_v34  ;;  %vm2632_vm15 = vcmp.eq.f32.partialorder %v2631_v22, 8.507059e+37 }
 0x2b5   : > { %v2610_v57 = vmul.f32 %v4935_v18, %v2609_v11  ;;  %v4550_v58 = vmul.f32 -1.442695, %v6315_v61 }
 0x2b7   : > { %v2611_v15 = vadd.f32 %v4935_v18, %v2610_v57 }
 0x2b8   : > { %v4937_v30 = vpop.eup %4936 }
 0x2b9   : > { %v2623_v23 = vmul.f32 %v4937_v30, %v2606_v8  ;;  %v2615_v2 = vsel %vm2614_vm9, %v4935_v18, %v2611_v15  ;;  %vm2628_vm14 = vweird.f32 %v4937_v30  ;;  %v1697_v8 = vadd.f32 %v6216_v33, %v1696_v12  ;;  %v6312_v32 = vpop.xlane.xlu0 %2055  ;;  %v4939_v28 = vpop.eup %4938 }
 0x2ba   : > { %v2620_v16 = vsel %vm2617_vm5, %v2619_v31, %v2615_v2  ;;  %vm2629_vm2 = vmor %vm2627_vm6, %vm2628_vm14 }
 0x2bb   : > { %v2624_v27 = vsub.f32 1.0, %v2623_v23  ;;  %v2637_v25 = vmul.f32 %v2620_v16, %v6265_v47  ;;  %v4547_v10 = vmul.f32 -1.442695, %v1697_v8 }
 0x2bd   : > { %v2625_v53 = vmul.f32 %v4937_v30, %v2624_v27  ;;  %4940 = vpow2.f32 %v4547_v10 }
 0x2bf   : > { %v2626_v59 = vadd.f32 %v4937_v30, %v2625_v53 }
 0x2c1   : > { %v2630_v51 = vsel %vm2629_vm2, %v4937_v30, %v2626_v59 }
 0x2c2   : > { %v2635_v56 = vsel %vm2632_vm15, %v2634_v36, %v2630_v51 }
 0x2c3   : > { %v2638_v24 = vmul.f32 %v2635_v56, %v6268_v9  ;;  %v1765_v9 = vadd.f32 1.0, %v4939_v28  ;;  %v4941_v57 = vpop.eup %4940 }
 0x2c4   : > { %v1768_v12 = vadd.f32 1.0, %v4941_v57 }
 0x2c5   : > { %v2646_v18 = vpack.c.bf16 %v2638_v24, %v2637_v25  ;;  %4942 = vrcp.f32 %v1765_v9  ;;  %v1904_v59 = vand.u32 2147483648, %v1765_v9  ;;  %vm1898_vm13 = vweird.f32 %v1765_v9 }
 0x2c6   : > { %4944 = vpow2.f32 %v4550_v58  ;;  %v1902_v16 = vand.u32 2147483647, %v1765_v9  ;;  %v1949_v10 = vand.u32 2147483648, %v1768_v12  ;;  %vm1943_vm6 = vweird.f32 %v1768_v12 }
 0x2c7   : > { %4580 = vmatmul.msk.bf16.vlgmr.msrb.gmra.mxu1 %vm2668_vm4, %v2646_v18  ;;  %4946 = vrcp.f32 %v1768_v12  ;;  %v1905_v25 = vor.u32 1.1754944e-38, %v1904_v59  ;;  %v1947_v28 = vand.u32 2147483647, %v1768_v12  ;;  %v4697_v59 = vld [vmem:[%s7335_s4 + $0x1d4] sm:$0x10] }
 0x2c8   : > { %vm1903_vm14 = vcmp.eq.f32.partialorder %v1902_v16, 8.507059e+37  ;;  %v1950_v58 = vor.u32 1.1754944e-38, %v1949_v10 }
 0x2c9   : > { %vm1948_vm4 = vcmp.eq.f32.partialorder %v1947_v28, 8.507059e+37 }
 0x2cb   : > { %v4943_v30 = vpop.eup %4942 }
 0x2cc   : > { %v4945_v15 = vpop.eup %4944  ;;  %v1894_v23 = vmul.f32 %v4943_v30, %v1765_v9  ;;  %vm1899_vm15 = vweird.f32 %v4943_v30 }
 0x2cd   : > { %v1771_v21 = vadd.f32 1.0, %v4945_v15  ;;  %v4947_v27 = vpop.eup %4946  ;;  %vm1900_vm9 = vmor %vm1898_vm13, %vm1899_vm15 }
 0x2ce   : > { %v1895_v14 = vsub.f32 1.0, %v1894_v23  ;;  %v1939_v2 = vmul.f32 %v4947_v27, %v1768_v12  ;;  %vm1944_vm5 = vweird.f32 %v4947_v27 }
 0x2cf   : > { %4948 = vrcp.f32 %v1771_v21  ;;  %vm1945_vm2 = vmor %vm1943_vm6, %vm1944_vm5  ;;  %v1994_v15 = vand.u32 2147483648, %v1771_v21  ;;  %vm1988_vm13 = vweird.f32 %v1771_v21  ;;  %vm2758_vm5 = vcmask 64512  }
 0x2d0   : > { %v1896_v34 = vmul.f32 %v4943_v30, %v1895_v14  ;;  %v1940_v22 = vsub.f32 1.0, %v1939_v2  ;;  %v1992_v14 = vand.u32 2147483647, %v1771_v21 }
 0x2d1   : > { %v2065_v47 = vpop.xlane.xlu0 %2064  ;;  %v1995_v12 = vor.u32 1.1754944e-38, %v1994_v15 }
 0x2d2   : > { %v2103_v11 = vadd.f32 %v6279_v6, %v2065_v47  ;;  %v1897_v53 = vadd.f32 %v4943_v30, %v1896_v34  ;;  %v1941_v51 = vmul.f32 %v4947_v27, %v1940_v22 }
 0x2d4   : > { %2141 = vperm.xlu0 %4760, %v2103_v11   ;;  %v1901_v36 = vsel %vm1900_vm9, %v4943_v30, %v1897_v53  ;;  %v1942_v41 = vadd.f32 %v4947_v27, %v1941_v51  ;;  %v4696_v51 = vld [vmem:[%s7335_s4 + $0x1c4] sm:$0xf0] }
 0x2d5   : > { %v4949_v31 = vpop.eup %4948  ;;  %v1906_v24 = vsel %vm1903_vm14, %v1905_v25, %v1901_v36  ;;  %vm1993_vm14 = vcmp.eq.f32.partialorder %v1992_v14, 8.507059e+37  ;;  %v4583_v36 = vld [vmem:[%s7335_s4 + $0x1c0] sm:$0xf]  ;;  %v1677_v14 = vadd.f32 %v6216_v33, %v6233_v44 }
 0x2d6   : > { %v1984_v56 = vmul.f32 %v4949_v31, %v1771_v21  ;;  %v2021_v50 = vmul.f32 %v1906_v24, %v1690_v26  ;;  %v1946_v47 = vsel %vm1945_vm2, %v4947_v27, %v1942_v41  ;;  %vm1989_vm15 = vweird.f32 %v4949_v31  ;;  %v5118_v24 = vld [vmem:[%s5388_s20] sm:$0xff] }
 0x2d7   : > { %v1951_v57 = vsel %vm1948_vm4, %v1950_v58, %v1946_v47  ;;  %vm1990_vm9 = vmor %vm1988_vm13, %vm1989_vm15 }
 0x2d8   : > { %v1985_v18 = vsub.f32 1.0, %v1984_v56  ;;  %v2039_v9 = vmul.f32 %v6238_v55, %v2021_v50  ;;  %v2024_v23 = vmul.f32 %v1951_v57, %v1697_v8  ;;  %v4584_v56 = vor.u32 %v4696_v51, %v4583_v36  ;;  %v5119_v50 = vld [vmem:[%s5388_s20 + $0x8] sm:$0xff]  ;;  %v4771_v57 = vld [vmem:[%s7336_s5 + $0x80] ss:$0 sm:$0xff]  ;;  %s6361_s20 = scalar_lea.vmem [#allocation4], %s6353_s18 }
 0x2d9   : > { %s4233_s13 = sshll.u32 %s6361_s20, 4  ;;  %s4234_s13 = int_to_ptr.vmem [resolvable:$true] %s4233_s13 }
 0x2da   : > { %v1986_v11 = vmul.f32 %v4949_v31, %v1985_v18  ;;  %v2072_v34 = vsel %vm2047_vm1, %v2039_v9, 0.0  ;;  %v2042_v27 = vmul.f32 %v6238_v55, %v2024_v23  ;;  %v4770_v18 = vld [vmem:[%s7336_s5 + $0x38] ss:$0 sm:$0xff]  ;;  %v1680_v9 = vadd.f32 %v6216_v33, %v6240_v17 }
 0x2dc   : > { %v1987_v30 = vadd.f32 %v4949_v31, %v1986_v11  ;;  %v2081_v22 = vsel %vm2047_vm1, %v2042_v27, 0.0 }
 0x2de   : > { %v1991_v26 = vsel %vm1990_vm9, %v4949_v31, %v1987_v30  ;;  %v4587_v31 = vld [vmem:[%s7335_s4 + $0x1d0] sm:$0xf]  ;;  %v4540_v30 = vmul.f32 -1.442695, %v1680_v9 }
 0x2df   : > { %v1996_v2 = vsel %vm1993_vm14, %v1995_v12, %v1991_v26  ;;  %v4588_v16 = vor.u32 %v4697_v59, %v4587_v31  ;;  %v4539_v26 = vmul.f32 -1.442695, %v1677_v14 }
 0x2e0   : > { %v2027_v53 = vmul.f32 %v1996_v2, %v6315_v61  ;;  %4950 = vpow2.f32 %v4540_v30 }
 0x2e1   : > { %v2717_v61 = vsel %vm446_vm0, %v4588_v16, 0 }
 0x2e2   : > { %v2045_v8 = vmul.f32 %v6238_v55, %v2027_v53  ;;  %2725 = vmatpush.bf16.msra.mxu1 %v2717_v61 }
 0x2e4   : > { %v2090_v21 = vsel %vm2047_vm1, %v2045_v8, 0.0 }
 0x2e6   : > { %2726 = vmatpush.bf16.msra.mxu1 %v4584_v56  ;;  %v4951_v27 = vpop.eup %4950 }
 0x2e7   : > { %v1761_v53 = vadd.f32 1.0, %v4951_v27 }
 0x2e9   : > { %vm1838_vm6 = vweird.f32 %v1761_v53 }
 0x2fe   : > { %2073 = vadd.xlane.f32.xlu0 %v2072_v34 }
 0x306   : > { %2082 = vadd.xlane.f32.xlu0 %v2081_v22 }
 0x30e   : > { %2091 = vadd.xlane.f32.xlu0 %v2090_v21 }
 0x344   : > { %v2684_v25 = vpop.f32.mrf.mxu1 }
 0x345   : > { %v2689_v41 = vadd.f32 %v5118_v24, %v2684_v25 }
 0x347   : > { %v2693_v47 = vadd.f32 %v4770_v18, %v2689_v41 }
 0x34c   : > { %v2686_v10 = vpop.f32.mrf.mxu1 }
 0x34d   : > { %v2690_v28 = vadd.f32 %v5119_v50, %v2686_v10  ;;  %v1842_v10 = vand.u32 2147483647, %v1761_v53 }
 0x34f   : > { %v2694_v11 = vadd.f32 %v4770_v18, %v2690_v28  ;;  %v1844_v18 = vand.u32 2147483648, %v1761_v53  ;;  %vm1843_vm4 = vcmp.eq.f32.partialorder %v1842_v10, 8.507059e+37 }
 0x351   : > { %v2699_v58 = vpack.c.bf16 %v2694_v11, %v2693_v47  ;;  %v1845_v47 = vor.u32 1.1754944e-38, %v1844_v18 }
 0x353   : > { %4589 = vmatmul.msk.bf16.vlgmr.msra.gmra.mxu1 %vm442_vm3, %v2699_v58 }
 0x3d0   : > { %v2728_v15 = vpop.f32.mrf.mxu1 }
 0x3d1   : > { %v6355_v23 = vadd.f32 %v4771_v57, %v2728_v15 }
 0x3d3   : > { %v2733_v34 = vmul.f32 0.5, %v6355_v23  ;;  %4181 = vst.msk [vmem:[%s6361_s20] sm:$0xff] %vm2758_vm5, %v6355_v23 }
 0x3d5   : > { %v2735_v17 = vmul.f32 1.442695, %v2733_v34 }
 0x3d7   : > { %4952 = vpow2.f32 %v2735_v17 }
 0x3d8   : > { %v2730_v12 = vpop.f32.mrf.mxu1  ;;  %4954 = vpow2.f32 %v4539_v26 }
 0x3d9   : > { %v6366_v2 = vadd.f32 %v4771_v57, %v2730_v12 }
 0x3db   : > { %v2734_v44 = vmul.f32 0.5, %v6366_v2  ;;  %4182 = vst.msk [vmem:[%s6361_s20 + $0x8] sm:$0xff] %vm2758_vm5, %v6366_v2 }
 0x3dd   : > { %v4953_v22 = vpop.eup %4952  ;;  %v2737_v8 = vmul.f32 1.442695, %v2734_v44 }
 0x3de   : > { %2741 = vrot.lane.b32.xlu1 %v4953_v22, %s5248_s19  ;;  %v4955_v21 = vpop.eup %4954 }
 0x3df   : > { %4956 = vpow2.f32 %v2737_v8  ;;  %v1760_v31 = vadd.f32 1.0, %v4955_v21  ;;  %v2100_v8 = vadd.f32 %v6279_v6, %v6312_v32  ;;  %v3972_v21 = vld [vmem:[%s7335_s4 + $0x190] sm:$0xf] }
 0x3e0   : > { %4958 = vrcp.f32 %v1761_v53 }
 0x3e1   : > { %4960 = vrcp.f32 %v1760_v31  ;;  %v1829_v57 = vand.u32 2147483648, %v1760_v31  ;;  %vm1823_vm13 = vweird.f32 %v1760_v31  ;;  %v1827_v30 = vand.u32 2147483647, %v1760_v31 }
 0x3e3   : > { %v1830_v17 = vor.u32 1.1754944e-38, %v1829_v57  ;;  %vm1828_vm14 = vcmp.eq.f32.partialorder %v1827_v30, 8.507059e+37  ;;  %v6413_v57 = vadd.f32 %v6216_v33, %v6263_v52  ;;  %v6417_v30 = vadd.f32 %v6216_v33, %v6309_v54 }
 0x3e5   : > { %v4957_v59 = vpop.eup %4956 }
 0x3e6   : > { %v4959_v16 = vpop.eup %4958  ;;  %2743 = vrot.lane.b32.xlu2 %v4957_v59, %s5248_s19 }
 0x3e7   : > { %v1834_v61 = vmul.f32 %v4959_v16, %v1761_v53  ;;  %v4961_v36 = vpop.eup %4960  ;;  %vm1839_vm3 = vweird.f32 %v4959_v16 }
 0x3e8   : > { %v1819_v56 = vmul.f32 %v4961_v36, %v1760_v31  ;;  %vm1840_vm2 = vmor %vm1838_vm6, %vm1839_vm3  ;;  %vm1824_vm15 = vweird.f32 %v4961_v36  ;;  %vm7349_vm3 = vcmask 1043456  }
 0x3e9   : > { %v1835_v51 = vsub.f32 1.0, %v1834_v61  ;;  %vm1825_vm9 = vmor %vm1823_vm13, %vm1824_vm15  ;;  %v4062_v59 = vsel %vm7349_vm3, %v3972_v21, 0 }
 0x3ea   : > { %v1820_v24 = vsub.f32 1.0, %v1819_v56  ;;  %4071 = vmatpush.bf16.msrb.mxu3 %v4062_v59 }
 0x3eb   : > { %v1836_v25 = vmul.f32 %v4959_v16, %v1835_v51  ;;  %v418_v51 = vld [vmem:[%s391_s21 + $0x8] sm:$0xff] }
 0x3ec   : > { %v1821_v50 = vmul.f32 %v4961_v36, %v1820_v24 }
 0x3ed   : > { %v1837_v41 = vadd.f32 %v4959_v16, %v1836_v25  ;;  %v417_v25 = vld [vmem:[%s391_s21] sm:$0xff]  ;;  %s7248_s21 = sshll.u32 %s5317_s9, 4 }
 0x3ee   : > { %v1822_v11 = vadd.f32 %v4961_v36, %v1821_v50 }
 0x3ef   : > { %v1841_v28 = vsel %vm1840_vm2, %v4959_v16, %v1837_v41 }
 0x3f0   : > { %v1846_v58 = vsel %vm1843_vm4, %v1845_v47, %v1841_v28  ;;  %v1826_v34 = vsel %vm1825_vm9, %v4961_v36, %v1822_v11  ;;  %v6408_v47 = vadd.f32 %v6216_v33, %v6273_v5  ;;  %v4549_v5 = vmul.f32 -1.442695, %v6417_v30 }
 0x3f1   : > { %v2017_v15 = vmul.f32 %v1846_v58, %v1680_v9  ;;  %v1831_v26 = vsel %vm1828_vm14, %v1830_v17, %v1826_v34  ;;  %v2099_v9 = vadd.f32 %v6279_v6, %v6303_v49  ;;  %v2068_v58 = vpop.xlane.xlu0 %2067  ;;  %v4545_v34 = vmul.f32 -1.442695, %v6413_v57 }
 0x3f2   : > { %v2016_v27 = vmul.f32 %v1831_v26, %v1677_v14  ;;  %v2751_v14 = vld [vmem:[%s7335_s4 + $0x130] sm:$0xff]  ;;  %v4546_v11 = vmul.f32 -1.442695, %v6408_v47 }
 0x3f3   : > { %v2035_v12 = vmul.f32 %v6238_v55, %v2017_v15  ;;  %v2754_v31 = vunpack.c.l.b16 %v2751_v14  ;;  %v2755_v32 = vunpack.c.h.b16 %v2751_v14 }
 0x3f4   : > { %v2034_v53 = vmul.f32 %v6238_v55, %v2016_v27  ;;  %4962 = vpow2.f32 %v4546_v11 }
 0x3f5   : > { %v2060_v44 = vsel %vm2047_vm1, %v2035_v12, 0.0  ;;  %v2756_v16 = vpack.c.b16 %v2754_v31, %v2754_v31  ;;  %v2757_v61 = vpack.c.b16 %v2755_v32, %v2755_v32  ;;  %4964 = vpow2.f32 %v4545_v34 }
 0x3f6   : > { %v2057_v22 = vsel %vm2047_vm1, %v2034_v53, 0.0  ;;  %v6424_v12 = vadd.f32 %v6216_v33, %v6301_v46  ;;  %4966 = vpow2.f32 %v4549_v5  ;;  %v2104_v31 = vadd.f32 %v6279_v6, %v2068_v58 }
 0x3f7   : > { %v2764_v36 = vsel %vm7349_vm3, %v2756_v16, 0  ;;  %v2767_v49 = vsel %vm7349_vm3, %v2757_v61, 0 }
 0x3f8   : > { %2776 = vmatpush.bf16.msrb.mxu1 %v2764_v36 }
 0x3f9   : > { %v2071_v52 = vpop.xlane.xlu0 %2070 }
 0x3fa   : > { %v4963_v26 = vpop.eup %4962  ;;  %v2105_v53 = vadd.f32 %v6279_v6, %v2071_v52 }
 0x3fc   : > { %2790 = vmatpush.bf16.msra.mxu1 %v2767_v49 }
 0x408   : > { %2061 = vadd.xlane.f32.xlu1 %v2060_v44  ;;  %v1767_v44 = vadd.f32 1.0, %v4963_v26 }
 0x40a   : > { %4968 = vrcp.f32 %v1767_v44  ;;  %v1934_v34 = vand.u32 2147483648, %v1767_v44  ;;  %vm1928_vm2 = vweird.f32 %v1767_v44  ;;  %v1932_v26 = vand.u32 2147483647, %v1767_v44 }
 0x40c   : > { %vm1933_vm13 = vcmp.eq.f32.partialorder %v1932_v26, 8.507059e+37 }
 0x40f   : > { %2058 = vadd.xlane.f32.xlu2 %v2057_v22  ;;  %v4548_v22 = vmul.f32 -1.442695, %v6424_v12 }
 0x411   : > { %4970 = vpow2.f32 %v4548_v22 }
 0x421   : > { %2126 = vperm.xlu1 %4762, %v2100_v8   ;;  %v4965_v8 = vpop.eup %4964 }
 0x422   : > { %v4967_v14 = vpop.eup %4966  ;;  %v1766_v21 = vadd.f32 1.0, %v4965_v8 }
 0x423   : > { %v1770_v59 = vadd.f32 1.0, %v4967_v14  ;;  %v4969_v32 = vpop.eup %4968 }
 0x424   : > { %4972 = vrcp.f32 %v1766_v21  ;;  %v4971_v61 = vpop.eup %4970  ;;  %v1924_v36 = vmul.f32 %v4969_v32, %v1767_v44  ;;  %vm1929_vm6 = vweird.f32 %v4969_v32  ;;  %vm1913_vm9 = vweird.f32 %v1766_v21 }
 0x425   : > { %4974 = vrcp.f32 %v1770_v59  ;;  %v6434_v49 = vadd.f32 1.0, %v4971_v61  ;;  %vm1930_vm4 = vmor %vm1928_vm2, %vm1929_vm6  ;;  %v1917_v44 = vand.u32 2147483647, %v1766_v21  ;;  %vm1973_vm2 = vweird.f32 %v1770_v59 }
 0x427   : > { %2121 = vperm.xlu2 %4761, %v2099_v9   ;;  %v1706_v9 = vpop.f32.mrf.mxu0 }
 0x428   : > { %v6430_v46 = vadd.f32 %v6216_v33, %v1706_v9 }
 0x42a   : > { %v4551_v16 = vmul.f32 -1.442695, %v6430_v46 }
 0x42c   : > { %4976 = vpow2.f32 %v4551_v16 }
 0x42d   : > { %4978 = vrcp.f32 %v6434_v49 }
 0x440   : > { %v2744_v56 = vpop.permute.xlu2 %2743 }
 0x441   : > { %v2748_v24 = vmul.f32 %v2744_v56, %v418_v51  ;;  %v4973_v51 = vpop.eup %4972  ;;  %v1925_v56 = vsub.f32 1.0, %v1924_v36 }
 0x442   : > { %vm1914_vm15 = vweird.f32 %v4973_v51 }
 0x443   : > { %v6396_v10 = vadd.f32 %v2748_v24, %v6366_v2  ;;  %v1909_v24 = vmul.f32 %v4973_v51, %v1766_v21  ;;  %vm6441_vm14 = vmor %vm1913_vm9, %vm1914_vm15  ;;  %vm1918_vm15 = vcmp.eq.f32.partialorder %v1917_v44, 8.507059e+37 }
 0x450   : > { %v2742_v41 = vpop.permute.xlu1 %2741 }
 0x451   : > { %v2747_v18 = vmul.f32 %v2742_v41, %v417_v25  ;;  %v4975_v25 = vpop.eup %4974  ;;  %v1926_v41 = vmul.f32 %v4969_v32, %v1925_v56  ;;  %v1979_v56 = vand.u32 2147483648, %v1770_v59 }
 0x452   : > { %v4977_v33 = vpop.eup %4976  ;;  %vm1974_vm6 = vweird.f32 %v4975_v25 }
 0x453   : > { %v6399_v50 = vadd.f32 %v2747_v18, %v6355_v23  ;;  %v1969_v18 = vmul.f32 %v4975_v25, %v1770_v59  ;;  %v6437_v11 = vadd.f32 1.0, %v4977_v33  ;;  %v4979_v58 = vpop.eup %4978  ;;  %v1977_v33 = vand.u32 2147483647, %v1770_v59 }
 0x454   : > { %v1954_v52 = vmul.f32 %v4979_v58, %v6434_v49  ;;  %v1962_v59 = vand.u32 2147483647, %v6434_v49 }
 0x455   : > { %v2752_v28 = vpack.c.bf16 %v6396_v10, %v6399_v50  ;;  %4980 = vrcp.f32 %v6437_v11  ;;  %vm1978_vm9 = vcmp.eq.f32.partialorder %v1977_v33, 8.507059e+37 }
 0x456   : > { %v1955_v9 = vsub.f32 1.0, %v1954_v52 }
 0x457   : > { %4590 = vmatmul.msk.bf16.vlgmr.msrb.gmra.mxu1 %vm2758_vm5, %v2752_v28  ;;  %4657 = vmatmul.msk.bf16.vlgmr.msrb.gmra.mxu3 %vm2758_vm5, %v2752_v28 }
 0x45b   : > { %v4981_v14 = vpop.eup %4980 }
 0x467   : > { %4591 = vmatmul.msk.bf16.vlgmr.msra.gmra.mxu1 %vm2758_vm5, %v2752_v28  ;;  %v1910_v28 = vsub.f32 1.0, %v1909_v24  ;;  %v1956_v24 = vmul.f32 %v4979_v58, %v1955_v9 }
 0x469   : > { %v1911_v5 = vmul.f32 %v4973_v51, %v1910_v28 }
 0x46b   : > { %v1912_v22 = vadd.f32 %v4973_v51, %v1911_v5 }
 0x47b   : > { %v2062_v15 = vpop.xlane.xlu1 %2061 }
 0x47c   : > { %v2102_v17 = vadd.f32 %v6279_v6, %v2062_v15  ;;  %v1927_v15 = vadd.f32 %v4969_v32, %v1926_v41  ;;  %v1999_v41 = vmul.f32 %v4981_v14, %v6437_v11 }
 0x47e   : > { %2136 = vperm.xlu1 %4762, %v2102_v17   ;;  %v1970_v17 = vsub.f32 1.0, %v1969_v18 }
 0x482   : > { %v2059_v27 = vpop.xlane.xlu2 %2058 }
 0x483   : > { %v2101_v54 = vadd.f32 %v6279_v6, %v2059_v27  ;;  %v1931_v27 = vsel %vm1930_vm4, %v4969_v32, %v1927_v15  ;;  %v1916_v32 = vsel %vm6441_vm14, %v4973_v51, %v1912_v22  ;;  %vm1975_vm4 = vmor %vm1973_vm2, %vm1974_vm6  ;;  %v2000_v51 = vsub.f32 1.0, %v1999_v41 }
 0x484   : > { %vm1958_vm14 = vweird.f32 %v6434_v49  ;;  %vm1963_vm2 = vcmp.eq.f32.partialorder %v1962_v59, 8.507059e+37 }
 0x485   : > { %2131 = vperm.xlu2 %4761, %v2101_v54   ;;  %v1935_v54 = vor.u32 1.1754944e-38, %v1934_v34  ;;  %v1980_v34 = vor.u32 1.1754944e-38, %v1979_v56 }
 0x486   : > { %2151 = vperm.xlu1 %4762, %v2105_v53   ;;  %v1971_v53 = vmul.f32 %v4975_v25, %v1970_v17  ;;  %v1957_v17 = vadd.f32 %v4979_v58, %v1956_v24 }
 0x487   : > { %v1936_v8 = vsel %vm1933_vm13, %v1935_v54, %v1931_v27  ;;  %vm1959_vm13 = vweird.f32 %v4979_v58  ;;  %v2001_v27 = vmul.f32 %v4981_v14, %v2000_v51 }
 0x488   : > { %v1972_v61 = vadd.f32 %v4975_v25, %v1971_v53  ;;  %v2023_v36 = vmul.f32 %v1936_v8, %v6408_v47  ;;  %v1964_v47 = vand.u32 2147483648, %v6434_v49  ;;  %vm1960_vm6 = vmor %vm1958_vm14, %vm1959_vm13 }
 0x489   : > { %v1961_v52 = vsel %vm1960_vm6, %v4979_v58, %v1957_v17  ;;  %v2002_v9 = vadd.f32 %v4981_v14, %v2001_v27 }
 0x48a   : > { %v1976_v28 = vsel %vm1975_vm4, %v4975_v25, %v1972_v61  ;;  %v1965_v53 = vor.u32 1.1754944e-38, %v1964_v47  ;;  %vm2004_vm4 = vweird.f32 %v4981_v14 }
 0x48b   : > { %v1981_v5 = vsel %vm1978_vm9, %v1980_v34, %v1976_v28 }
 0x48c   : > { %v2026_v25 = vmul.f32 %v1981_v5, %v6417_v30  ;;  %v1966_v8 = vsel %vm1963_vm2, %v1965_v53, %v1961_v52  ;;  %v2007_v30 = vand.u32 2147483647, %v6437_v11 }
 0x48d   : > { %2146 = vperm.xlu2 %4761, %v2104_v31   ;;  %v1919_v31 = vand.u32 2147483648, %v1766_v21  ;;  %v2041_v21 = vmul.f32 %v6238_v55, %v2023_v36  ;;  %v2025_v49 = vmul.f32 %v1966_v8, %v6424_v12  ;;  %v2117_v36 = vpop.permute.xlu0 %2116 }
 0x48e   : > { %vm2008_vm9 = vcmp.eq.f32.partialorder %v2007_v30, 8.507059e+37  ;;  %v2194_v47 = vmul.f32 %v2117_v36, %v5411_v29 }
 0x48f   : > { %v1920_v18 = vor.u32 1.1754944e-38, %v1919_v31  ;;  %v2078_v54 = vsel %vm2047_vm1, %v2041_v21, 0.0  ;;  %v2009_v31 = vand.u32 2147483648, %v6437_v11 }
 0x491   : > { %v1921_v15 = vsel %vm1918_vm15, %v1920_v18, %v1916_v32  ;;  %vm2003_vm15 = vweird.f32 %v6437_v11  ;;  %v2010_v61 = vor.u32 1.1754944e-38, %v2009_v31 }
 0x492   : > { %v2022_v26 = vmul.f32 %v1921_v15, %v6413_v57  ;;  %v2044_v57 = vmul.f32 %v6238_v55, %v2026_v25  ;;  %vm2005_vm13 = vmor %vm2003_vm15, %vm2004_vm4  ;;  %v2122_v15 = vpop.permute.xlu2 %2121 }
 0x493   : > { %v2006_v16 = vsel %vm2005_vm13, %v4981_v14, %v2002_v9  ;;  %v2127_v34 = vpop.permute.xlu1 %2126  ;;  %vm7392_vm13 = vcmask 1041408  }
 0x494   : > { %v2040_v22 = vmul.f32 %v6238_v55, %v2022_v26  ;;  %v2087_v44 = vsel %vm2047_vm1, %v2044_v57, 0.0  ;;  %v5120_v55 = vld [vmem:[%s7336_s5 + $0x20] ss:$0 sm:$0xff]  ;;  %v2011_v12 = vsel %vm2008_vm9, %v2010_v61, %v2006_v16  ;;  %v2196_v17 = vmul.f32 %v2127_v34, %v5417_v38 }
 0x495   : > { %v2043_v32 = vmul.f32 %v5120_v55, %v2025_v49  ;;  %v2028_v56 = vmul.f32 %v2011_v12, %v6430_v46  ;;  %v2142_v33 = vpop.permute.xlu0 %2141  ;;  %v2195_v46 = vmul.f32 %v2122_v15, %v5419_v39  ;;  %vm7393_vm9 = vcmask 31744  }
 0x496   : > { %v2075_v58 = vsel %vm2047_vm1, %v2040_v22, 0.0 }
 0x497   : > { %v2084_v11 = vsel %vm2047_vm1, %v2043_v32, 0.0  ;;  %v2046_v24 = vmul.f32 %v5120_v55, %v2028_v56 }
 0x499   : > { %v2093_v14 = vsel %vm2047_vm1, %v2046_v24, 0.0  ;;  %vm7386_vm1 = vcmask 23552  }
 0x49a   : > { %v2217_v52 = vsel %vm7386_vm1, %v2195_v46, 0.0  ;;  %vm7387_vm14 = vmmov %vm7386_vm1 }
 0x49b   : > { %v2224_v25 = vsel %vm7387_vm14, %v2196_v17, 0.0  ;;  %vm7388_vm6 = vmmov %vm7386_vm1  ;;  %v2218_v29 = vrot.slane %v2217_v52, 4 }
 0x49c   : > { %v2210_v27 = vsel %vm7388_vm6, %v2194_v47, 0.0  ;;  %vm7389_vm2 = vmmov %vm7386_vm1 }
 0x49d   : > { %v2074_v41 = vpop.xlane.xlu0 %2073  ;;  %v2211_v9 = vrot.slane %v2210_v27, 4  ;;  %vm7390_vm4 = vmmov %vm7386_vm1  ;;  %v2219_v30 = vadd.f32 %v2218_v29, %v2217_v52 }
 0x49e   : > { %v2106_v18 = vadd.f32 %v6279_v6, %v2074_v41  ;;  %vm7391_vm15 = vmmov %vm7386_vm1 }
 0x49f   : > { %v2220_v61 = vrot.slane %v2219_v30, 2  ;;  %vm7394_vm1 = vmmov %vm7393_vm9 }
 0x4a0   : > { %vm7395_vm14 = vmmov %vm7389_vm2 }
 0x4a1   : > { %vm7396_vm6 = vmmov %vm7389_vm2 }
 0x4b0   : > { %2079 = vadd.xlane.f32.xlu1 %v2078_v54  ;;  %v2199_v54 = vmul.f32 %v2142_v33, %v5421_v40 }
 0x4b2   : > { %v2245_v49 = vsel %vm7390_vm4, %v2199_v54, 0.0  ;;  %vm7398_vm4 = vmmov %vm7394_vm1 }
 0x4b3   : > { %v2246_v16 = vrot.slane %v2245_v49, 4 }
 0x4b5   : > { %v2247_v12 = vadd.f32 %v2246_v16, %v2245_v49 }
 0x4b6   : > { %2076 = vadd.xlane.f32.xlu2 %v2075_v58  ;;  %v2212_v58 = vadd.f32 %v2211_v9, %v2210_v27 }
 0x4b7   : > { %v2248_v41 = vrot.slane %v2247_v12, 2 }
 0x4b8   : > { %2088 = vadd.xlane.f32.xlu1 %v2087_v44  ;;  %v2213_v32 = vrot.slane %v2212_v58, 2 }
 0x4be   : > { %2085 = vadd.xlane.f32.xlu2 %v2084_v11  ;;  %v2221_v11 = vadd.f32 %v2220_v61, %v2219_v30 }
 0x4c0   : > { %v2222_v46 = vrot.slane %v2221_v11, 1 }
 0x4c2   : > { %v2223_v52 = vadd.f32 %v2222_v46, %v2221_v11 }
 0x4c6   : > { %2094 = vadd.xlane.f32.xlu2 %v2093_v14  ;;  %v2214_v14 = vadd.f32 %v2213_v32, %v2212_v58 }
 0x4c8   : > { %v2215_v47 = vrot.slane %v2214_v14, 1 }
 0x4ca   : > { %v2216_v54 = vadd.f32 %v2215_v47, %v2214_v14 }
 0x4cc   : > { %v2339_v29 = vsel %vm2338_vm12, %v2223_v52, %v2216_v54 }
 0x4d1   : > { %2156 = vperm.xlu1 %4762, %v2106_v18  }
 0x4d4   : > { %v6471_v28 = vpop.f32.mrf.mxu1 }
 0x4d5   : > { %v2803_v26 = vrot.slane %v6471_v28, 6  ;;  %v2804_v59 = vrot.slane %v6471_v28, 7 }
 0x4d7   : > { %v2811_v53 = vperm.slane %v2803_v26, 0  ;;  %v2812_v22 = vperm.slane %v2804_v59, 0 }
 0x4dc   : > { %v6473_v21 = vpop.f32.mrf.mxu1 }
 0x4df   : > { %v2132_v51 = vpop.permute.xlu2 %2131 }
 0x4e0   : > { %v2197_v5 = vmul.f32 %v2132_v51, %v5431_v45  ;;  %v2225_v45 = vrot.slane %v2224_v25, 4 }
 0x4e2   : > { %v2231_v39 = vsel %vm7389_vm2, %v2197_v5, 0.0  ;;  %v2226_v40 = vadd.f32 %v2225_v45, %v2224_v25  ;;  %v2249_v5 = vadd.f32 %v2248_v41, %v2247_v12  ;;  %v2083_v41 = vpop.xlane.xlu0 %2082  ;;  %vm7397_vm2 = vmmov %vm7394_vm1 }
 0x4e3   : > { %v2232_v57 = vrot.slane %v2231_v39, 4 }
 0x4e4   : > { %v6486_v38 = vpop.f32.mrf.mxu1  ;;  %v2227_v55 = vrot.slane %v2226_v40, 2 }
 0x4e5   : > { %v6489_v8 = vadd.f32 %v2811_v53, %v6486_v38  ;;  %v6492_v31 = vadd.f32 %v2812_v22, %v6486_v38  ;;  %v2233_v44 = vadd.f32 %v2232_v57, %v2231_v39  ;;  %v2250_v39 = vrot.slane %v2249_v5, 1 }
 0x4e6   : > { %v2228_v33 = vadd.f32 %v2227_v55, %v2226_v40  ;;  %v3023_v40 = vld [vmem:[%s7335_s4 + $0x140] sm:$0x3] }
 0x4e7   : > { %v2234_v36 = vrot.slane %v2233_v44, 2  ;;  %v2251_v9 = vadd.f32 %v2250_v39, %v2249_v5  ;;  %v3025_v58 = vsel %vm7392_vm13, %v3023_v40, 0  ;;  %vm7400_vm13 = vcmask 1047559  }
 0x4e8   : > { %v2229_v17 = vrot.slane %v2228_v33, 1  ;;  %3034 = vmatpush.bf16.msrb.mxu1 %v3025_v58 }
 0x4e9   : > { %v2235_v18 = vadd.f32 %v2234_v36, %v2233_v44  ;;  %v2147_v44 = vpop.permute.xlu2 %2146 }
 0x4ea   : > { %v2230_v25 = vadd.f32 %v2229_v17, %v2228_v33  ;;  %v2200_v12 = vmul.f32 %v2147_v44, %v5447_v60  ;;  %v2109_v60 = vadd.f32 %v6279_v6, %v2083_v41 }
 0x4eb   : > { %v2236_v26 = vrot.slane %v2235_v18, 1  ;;  %4592 = vmatmul.msk.bf16.vlgmr.msrb.gmra.mxu1 %vm7393_vm9, %v5453_v0  ;;  %vm7401_vm9 = vmmov %vm7394_vm1 }
 0x4ec   : > { %v2341_v22 = vsel %vm2340_vm10, %v2230_v25, %v2339_v29 }
 0x4f0   : > { %v2137_v56 = vpop.permute.xlu1 %2136 }
 0x4f1   : > { %v2198_v24 = vmul.f32 %v2137_v56, %v5415_v37  ;;  %v2237_v37 = vadd.f32 %v2236_v26, %v2235_v18  ;;  %v2252_v56 = vsel %vm7396_vm6, %v2200_v12, 0.0 }
 0x4f2   : > { %v2253_v14 = vrot.slane %v2252_v56, 4 }
 0x4f3   : > { %v2238_v15 = vsel %vm7391_vm15, %v2198_v24, 0.0  ;;  %v2343_v57 = vsel %vm2342_vm7, %v2237_v37, %v2341_v22  ;;  %vm7399_vm15 = vcmask 1046534  }
 0x4f4   : > { %v2239_v34 = vrot.slane %v2238_v15, 4  ;;  %v2254_v18 = vadd.f32 %v2253_v14, %v2252_v56 }
 0x4f6   : > { %v2240_v51 = vadd.f32 %v2239_v34, %v2238_v15  ;;  %v2255_v17 = vrot.slane %v2254_v18, 2 }
 0x4f8   : > { %v2241_v59 = vrot.slane %v2240_v51, 2  ;;  %v2152_v16 = vpop.permute.xlu1 %2151  ;;  %v2256_v5 = vadd.f32 %v2255_v17, %v2254_v18 }
 0x4f9   : > { %v2201_v55 = vmul.f32 %v2152_v16, %v5459_v3 }
 0x4fa   : > { %v2242_v27 = vadd.f32 %v2241_v59, %v2240_v51  ;;  %v2092_v51 = vpop.xlane.xlu0 %2091 }
 0x4fb   : > { %4593 = vmatmul.msk.bf16.gmra.mxu1 %vm7394_vm1, %v5505_v43  ;;  %v2259_v36 = vsel %vm7395_vm14, %v2201_v55, 0.0  ;;  %v2112_v59 = vadd.f32 %v6279_v6, %v2092_v51  ;;  %vm7402_vm1 = vmmov %vm7396_vm6 }
 0x4fc   : > { %v2243_v53 = vrot.slane %v2242_v27, 1  ;;  %v2260_v24 = vrot.slane %v2259_v36, 4  ;;  %vm7403_vm14 = vmmov %vm7402_vm1 }
 0x4fd   : > { %vm7404_vm6 = vmmov %vm7397_vm2 }
 0x4fe   : > { %v2244_v45 = vadd.f32 %v2243_v53, %v2242_v27  ;;  %v2261_v3 = vadd.f32 %v2260_v24, %v2259_v36  ;;  %v2257_v27 = vrot.slane %v2256_v5, 1  ;;  %v5121_v53 = vld [vmem:[%s5396_s22] sm:$0xff] }
 0x500   : > { %v2345_v49 = vsel %vm2344_vm8, %v2244_v45, %v2343_v57  ;;  %v2262_v46 = vrot.slane %v2261_v3, 2  ;;  %v2258_v54 = vadd.f32 %v2257_v27, %v2256_v5 }
 0x501   : > { %v2347_v30 = vsel %vm2346_vm11, %v2251_v9, %v2345_v49 }
 0x502   : > { %v2263_v47 = vadd.f32 %v2262_v46, %v2261_v3  ;;  %v2349_v39 = vsel %vm7399_vm15, %v2258_v54, %v2347_v30  ;;  %vm7407_vm15 = vmmov %vm7402_vm1 }
 0x504   : > { %v2264_v25 = vrot.slane %v2263_v47, 1 }
 0x50b   : > { %4594 = vmatmul.msk.bf16.gmra.mxu1 %vm7397_vm2, %v5399_v19  ;;  %v2265_v19 = vadd.f32 %v2264_v25, %v2263_v47  ;;  %vm7405_vm2 = vmmov %vm7402_vm1 }
 0x50d   : > { %v2351_v37 = vsel %vm7400_vm13, %v2265_v19, %v2349_v39  ;;  %vm7408_vm13 = vmmov %vm7402_vm1  ;;  %v6547_v39 = vpop.f32.mrf.mxu1 }
 0x50e   : > { %v2361_v29 = vadd.f32 %v5121_v53, %v2351_v37 }
 0x510   : > { %v2837_v22 = vperm.slane %v2361_v29, 0  ;;  %v2832_v9 = vrot.slane %v2361_v29, 3  ;;  %v2831_v49 = vrot.slane %v2361_v29, 2  ;;  %v2830_v40 = vrot.slane %v2361_v29, 1 }
 0x511   : > { %v2834_v36 = vrot.slane %v2361_v29, 5  ;;  %v2833_v56 = vrot.slane %v2361_v29, 4  ;;  %v2836_v41 = vrot.slane %v2361_v29, 7 }
 0x512   : > { %v2853_v45 = vsub.f32 %v2837_v22, %v2361_v29  ;;  %v2840_v57 = vperm.slane %v2832_v9, 0  ;;  %v2839_v30 = vperm.slane %v2831_v49, 0  ;;  %v2838_v44 = vperm.slane %v2830_v40, 0 }
 0x513   : > { %v2841_v14 = vperm.slane %v2833_v56, 0  ;;  %v2844_v51 = vperm.slane %v2836_v41, 0 }
 0x514   : > { %v2856_v16 = vsub.f32 %v2840_v57, %v2361_v29  ;;  %v2854_v12 = vsub.f32 %v2838_v44, %v2361_v29 }
 0x515   : > { %v2860_v5 = vsub.f32 %v2844_v51, %v2361_v29 }
 0x516   : > { %v2926_v24 = vmul.f32 %v2854_v12, %v2854_v12  ;;  %v7416_v12 = vld [vmem:[#allocation9_spill] sm:$0xff] }
 0x51b   : > { %4595 = vmatmul.msk.bf16.gmra.mxu1 %vm7398_vm4, %v5451_v63  ;;  %v2835_v63 = vrot.slane %v2361_v29, 6  ;;  %vm7406_vm4 = vmmov %vm7402_vm1 }
 0x51c   : > { %v2944_v18 = vsel %vm7406_vm4, %v2926_v24, 0.0  ;;  %vm7413_vm4 = vmmov %vm7405_vm2 }
 0x51d   : > { %v2843_v55 = vperm.slane %v2835_v63, 0 }
 0x523   : > { %v2080_v61 = vpop.xlane.xlu1 %2079 }
 0x524   : > { %v2108_v32 = vadd.f32 %v6279_v6, %v2080_v61  ;;  %v2928_v61 = vmul.f32 %v2856_v16, %v2856_v16 }
 0x526   : > { %2166 = vperm.xlu2 %4761, %v2108_v32   ;;  %v2855_v32 = vsub.f32 %v2839_v30, %v2361_v29 }
 0x529   : > { %v2077_v11 = vpop.xlane.xlu2 %2076 }
 0x52a   : > { %v2107_v0 = vadd.f32 %v6279_v6, %v2077_v11  ;;  %v2950_v11 = vsel %vm7403_vm14, %v2928_v61, 0.0  ;;  %vm7411_vm14 = vmmov %vm7405_vm2 }
 0x52b   : > { %v2089_v33 = vpop.xlane.xlu1 %2088  ;;  %4596 = vmatmul.msk.bf16.gmra.mxu1 %vm7401_vm9, %v5503_v42  ;;  %v2859_v42 = vsub.f32 %v2843_v55, %v2361_v29  ;;  %vm7409_vm9 = vmmov %vm7402_vm1 }
 0x52c   : > { %v2111_v43 = vadd.f32 %v6279_v6, %v2089_v33  ;;  %2161 = vperm.xlu0 %4760, %v2107_v0   ;;  %v2927_v0 = vmul.f32 %v2855_v32, %v2855_v32  ;;  %v2842_v33 = vperm.slane %v2834_v36, 0 }
 0x52e   : > { %2181 = vperm.xlu2 %4761, %v2111_v43   ;;  %v2931_v43 = vmul.f32 %v2859_v42, %v2859_v42  ;;  %v2947_v3 = vsel %vm7405_vm2, %v2927_v0, 0.0 }
 0x531   : > { %v2086_v15 = vpop.xlane.xlu2 %2085 }
 0x532   : > { %v2110_v34 = vadd.f32 %v6279_v6, %v2086_v15  ;;  %v2858_v15 = vsub.f32 %v2842_v33, %v2361_v29 }
 0x534   : > { %2176 = vperm.xlu1 %4762, %v2110_v34   ;;  %2171 = vperm.xlu0 %4760, %v2109_v60   ;;  %v2857_v60 = vsub.f32 %v2841_v14, %v2361_v29  ;;  %v2959_v34 = vsel %vm7407_vm15, %v2931_v43, 0.0  ;;  %v2930_v46 = vmul.f32 %v2858_v15, %v2858_v15  ;;  %vm7414_vm15 = vmmov %vm7405_vm2 }
 0x536   : > { %v2929_v17 = vmul.f32 %v2857_v60, %v2857_v60  ;;  %v2956_v47 = vsel %vm7408_vm13, %v2930_v46, 0.0  ;;  %vm7415_vm13 = vmmov %vm7405_vm2 }
 0x539   : > { %v2095_v26 = vpop.xlane.xlu2 %2094 }
 0x53a   : > { %v2113_v52 = vadd.f32 %v6279_v6, %v2095_v26  ;;  %v2925_v6 = vmul.f32 %v2853_v45, %v2853_v45  ;;  %v2932_v26 = vmul.f32 %v2860_v5, %v2860_v5  ;;  %v7419_v5 = vld [vmem:[#allocation11_spill] sm:$0xff] }
 0x53b   : > { %4597 = vmatmul.msk.bf16.gmra.mxu1 %vm7404_vm6, %v5536_v62  ;;  %v2953_v62 = vsel %vm7409_vm9, %v2929_v17, 0.0  ;;  %vm7417_vm9 = vmmov %vm7405_vm2 }
 0x53c   : > { %2191 = vperm.xlu1 %4762, %v2113_v52   ;;  %2186 = vperm.xlu0 %4760, %v2112_v59   ;;  %v2941_v58 = vsel %vm7402_vm1, %v2925_v6, 0.0  ;;  %vm7410_vm1 = vmmov %vm7404_vm6  ;;  %v2962_v59 = vsel %vm7411_vm14, %v2932_v26, 0.0 }
 0x53d   : > { %vm7412_vm6 = vmmov %vm7410_vm1 }
 0x543   : > { %v2157_v52 = vpop.permute.xlu1 %2156 }
 0x544   : > { %v2202_v27 = vmul.f32 %v2157_v52, %v5456_v1  ;;  %v4626_v1 = vld [vmem:[%s7335_s4 + $0x170] sm:$0xf] }
 0x546   : > { %v2266_v54 = vsel %vm7405_vm2, %v2202_v27, 0.0 }
 0x547   : > { %v2267_v37 = vrot.slane %v2266_v54, 4 }
 0x549   : > { %v2268_v9 = vadd.f32 %v2267_v37, %v2266_v54 }
 0x54b   : > { %4598 = vmatmul.msk.bf16.gmra.mxu1 %vm7410_vm1, %v5542_v4  ;;  %v2269_v63 = vrot.slane %v2268_v9, 2 }
 0x54d   : > { %v2270_v42 = vadd.f32 %v2269_v63, %v2268_v9 }
 0x54f   : > { %v2271_v60 = vrot.slane %v2270_v42, 1 }
 0x551   : > { %v2272_v54 = vadd.f32 %v2271_v60, %v2270_v42 }
 0x557   : > { %2942 = vadd.xlane.f32.xlu2 %v2941_v58 }
 0x55b   : > { %4599 = vmatmul.msk.bf16.gmra.mxu1 %vm7412_vm6, %v5548_v7  ;;  %vm7423_vm6 = vcmask 1046534  }
 0x55f   : > { %2951 = vadd.xlane.f32.xlu2 %v2950_v11 }
 0x566   : > { %2948 = vadd.xlane.f32.xlu1 %v2947_v3  ;;  %2945 = vadd.xlane.f32.xlu0 %v2944_v18 }
 0x567   : > { %2960 = vadd.xlane.f32.xlu2 %v2959_v34 }
 0x568   : > { %v6559_v40 = vpop.f32.mrf.mxu1 }
 0x56e   : > { %2957 = vadd.xlane.f32.xlu1 %v2956_v47  ;;  %2954 = vadd.xlane.f32.xlu0 %v2953_v62 }
 0x570   : > { %v6567_v34 = vpop.f32.mrf.mxu1 }
 0x576   : > { %2963 = vadd.xlane.f32.xlu0 %v2962_v59  ;;  %v7420_v59 = vld [vmem:[#allocation10_spill] sm:$0xff] }
 0x580   : > { %v2167_v25 = vpop.permute.xlu2 %2166 }
 0x581   : > { %v2204_v19 = vmul.f32 %v2167_v25, %v5485_v20  ;;  %v4700_v20 = vld [vmem:[%s7335_s4 + $0x174] sm:$0x10] }
 0x582   : > { %v4627_v57 = vor.u32 %v4700_v20, %v4626_v1 }
 0x583   : > { %v2280_v53 = vsel %vm7413_vm4, %v2204_v19, 0.0 }
 0x584   : > { %v2281_v45 = vrot.slane %v2280_v53, 4 }
 0x586   : > { %v2282_v58 = vadd.f32 %v2281_v45, %v2280_v53 }
 0x588   : > { %v2182_v4 = vpop.permute.xlu2 %2181  ;;  %v2283_v56 = vrot.slane %v2282_v58, 2 }
 0x589   : > { %v2207_v7 = vmul.f32 %v2182_v4, %v5513_v48 }
 0x58a   : > { %v2284_v3 = vadd.f32 %v2283_v56, %v2282_v58 }
 0x58b   : > { %v2301_v48 = vsel %vm7415_vm13, %v2207_v7, 0.0 }
 0x58c   : > { %v2302_v55 = vrot.slane %v2301_v48, 4  ;;  %v2285_v25 = vrot.slane %v2284_v3, 1 }
 0x58e   : > { %v2303_v43 = vadd.f32 %v2302_v55, %v2301_v48  ;;  %v2286_v20 = vadd.f32 %v2285_v25, %v2284_v3  ;;  %v6588_v25 = vld [vmem:[%s7336_s5 + $0x40] ss:$0 sm:$0xff] }
 0x590   : > { %v2304_v47 = vrot.slane %v2303_v43, 2 }
 0x592   : > { %v2305_v7 = vadd.f32 %v2304_v47, %v2303_v43 }
 0x59e   : > { %v2162_v29 = vpop.permute.xlu0 %2161 }
 0x59f   : > { %v2203_v22 = vmul.f32 %v2162_v29, %v5475_v13  ;;  %v3489_v13 = vsel %vm446_vm0, %v4627_v57, 0  ;;  %vm7418_vm0 = vmmov %vm7405_vm2  ;;  %vm7424_vm2 = vcmask 1047559  }
 0x5a0   : > { %3496 = vmatpush.bf16.msrb.mxu2 %v3489_v13  ;;  %vm7421_vm1 = vmmov %vm7418_vm0 }
 0x5a1   : > { %v2273_v6 = vsel %vm7414_vm15, %v2203_v22, 0.0  ;;  %vm7422_vm14 = vmmov %vm7418_vm0 }
 0x5a2   : > { %v2274_v49 = vrot.slane %v2273_v6, 4  ;;  %vm7425_vm4 = vmmov %vm7418_vm0 }
 0x5a3   : > { %vm7426_vm15 = vmmov %vm7418_vm0 }
 0x5a4   : > { %v2275_v16 = vadd.f32 %v2274_v49, %v2273_v6  ;;  %vm7427_vm13 = vmmov %vm7418_vm0 }
 0x5a6   : > { %v2276_v30 = vrot.slane %v2275_v16, 2  ;;  %v2177_v44 = vpop.permute.xlu1 %2176  ;;  %v2172_v61 = vpop.permute.xlu0 %2171 }
 0x5a7   : > { %v2206_v32 = vmul.f32 %v2177_v44, %v5500_v35  ;;  %v2205_v36 = vmul.f32 %v2172_v61, %v7416_v12  ;;  %v6576_v61 = vpop.f32.mrf.mxu1 }
 0x5a8   : > { %v2277_v11 = vadd.f32 %v2276_v30, %v2275_v16  ;;  %v2306_v16 = vrot.slane %v2305_v7, 1 }
 0x5a9   : > { %v2294_v0 = vsel %vm7417_vm9, %v2206_v32, 0.0  ;;  %v2287_v24 = vsel %vm7418_vm0, %v2205_v36, 0.0  ;;  %vm7428_vm9 = vmmov %vm7418_vm0 }
 0x5aa   : > { %v2295_v33 = vrot.slane %v2294_v0, 4  ;;  %v2288_v14 = vrot.slane %v2287_v24, 4  ;;  %v2278_v41 = vrot.slane %v2277_v11, 1  ;;  %v2307_v36 = vadd.f32 %v2306_v16, %v2305_v7 }
 0x5ab   : > { %v2800_v16 = vrot.slane %v6471_v28, 3 }
 0x5ac   : > { %v2296_v18 = vadd.f32 %v2295_v33, %v2294_v0  ;;  %v2289_v15 = vadd.f32 %v2288_v14, %v2287_v24  ;;  %v2279_v62 = vadd.f32 %v2278_v41, %v2277_v11  ;;  %v5122_v33 = vld [vmem:[%s5396_s22 + $0x8] sm:$0xff]  ;;  %s4232_s22 = scalar_lea.hbm %s7338_s7, %s7248_s21 }
 0x5ad   : > { %s4235_s26 = sshll.u32 %s4232_s22, 4  ;;  %s4236_s26 = int_to_ptr.hbm [resolvable:$true] %s4235_s26 }
 0x5ae   : > { %v2297_v35 = vrot.slane %v2296_v18, 2  ;;  %v2290_v46 = vrot.slane %v2289_v15, 2  ;;  %v2192_v17 = vpop.permute.xlu1 %2191  ;;  %v2187_v51 = vpop.permute.xlu0 %2186  ;;  %v2352_v1 = vsel %vm2338_vm12, %v2279_v62, %v2272_v54  ;;  %s5137_s12 = sshra.s32 %s4236_s26, 4  ;;  %s5138_s12 = int_to_ptr.hbm [resolvable:$true] %s5137_s12 }
 0x5af   : > { %v2209_v26 = vmul.f32 %v2192_v17, %v7419_v5  ;;  %v2208_v52 = vmul.f32 %v2187_v51, %v7420_v59  ;;  %v2353_v13 = vsel %vm2340_vm10, %v2286_v20, %v2352_v1  ;;  %v6583_v43 = vpop.f32.mrf.mxu1  ;;  %s5139_s0 = scalar_lea.hbm %s5138_s12, 16  ;;  %p5144_p0 = scmp.lt.s32.totalorder %s5138_s12, %s7338_s7 }
 0x5b0   : > { %v2298_v27 = vadd.f32 %v2297_v35, %v2296_v18  ;;  %v2291_v19 = vadd.f32 %v2290_v46, %v2289_v15  ;;  %p5140_p11 = scmp.ne.s32.totalorder %s5138_s12, %s5139_s0  ;;  %p5145_p1 = scmp.lt.s32.totalorder %s5143_s1, %s5139_s0 }
 0x5b1   : > { %v2315_v37 = vsel %vm7421_vm1, %v2209_v26, 0.0  ;;  %v2308_v53 = vsel %vm7422_vm14, %v2208_v52, 0.0  ;;  %vm7429_vm1 = vmmov %vm7418_vm0 }
 0x5b2   : > { %v2299_v4 = vrot.slane %v2298_v27, 1  ;;  %v2292_v29 = vrot.slane %v2291_v19, 1  ;;  %v2316_v22 = vrot.slane %v2315_v37, 4  ;;  %v2309_v45 = vrot.slane %v2308_v53, 4  ;;  %vm7430_vm14 = vmmov %vm7418_vm0  ;;  %p5141_p12 = pnand %p5140_p11, %p5336_p5  ;;  %p5146_p2 = por %p5145_p1, %p5144_p0 }
 0x5b4   : > { %v2293_v9 = vadd.f32 %v2292_v29, %v2291_v19  ;;  %v2317_v6 = vadd.f32 %v2316_v22, %v2315_v37  ;;  %v2310_v57 = vadd.f32 %v2309_v45, %v2308_v53  ;;  %v2300_v49 = vadd.f32 %v2299_v4, %v2298_v27  ;;  %p5142_p13 = pneg %p5141_p12 }
 0x5b5   : > { %v2805_v4 = vperm.slane %v6471_v28, 0 }
 0x5b6   : > { %v2318_v58 = vrot.slane %v2317_v6, 2  ;;  %v2311_v48 = vrot.slane %v2310_v57, 2  ;;  %v2354_v63 = vsel %vm2342_vm7, %v2293_v9, %v2353_v13  ;;  %p5147_p3 = pnand %p5146_p2, %p5142_p13 }
 0x5b7   : > { %v2355_v55 = vsel %vm2344_vm8, %v2300_v49, %v2354_v63  ;;  %v2821_v9 = vadd.f32 %v2805_v4, %v6486_v38  ;;  %v2802_v4 = vrot.slane %v6471_v28, 5 }
 0x5b8   : > { %v2319_v30 = vadd.f32 %v2318_v58, %v2317_v6  ;;  %v2312_v44 = vadd.f32 %v2311_v48, %v2310_v57  ;;  %v2356_v42 = vsel %vm2346_vm11, %v2307_v36, %v2355_v55  ;;  %v6596_v57 = vpop.f32.mrf.mxu1  ;;  %v6601_v58 = vld [vmem:[%s7336_s5 + $0x48] ss:$0 sm:$0xff] }
 0x5ba   : > { %v2320_v32 = vrot.slane %v2319_v30, 1  ;;  %v2313_v12 = vrot.slane %v2312_v44, 1 }
 0x5bc   : > { %v2321_v56 = vadd.f32 %v2320_v32, %v2319_v30  ;;  %v2314_v11 = vadd.f32 %v2313_v12, %v2312_v44 }
 0x5be   : > { %v2357_v0 = vsel %vm7423_vm6, %v2314_v11, %v2356_v42  ;;  %vm7431_vm6 = vmmov %vm7418_vm0 }
 0x5bf   : > { %v2358_v24 = vsel %vm7424_vm2, %v2321_v56, %v2357_v0  ;;  %v2808_v56 = vperm.slane %v2800_v16, 0 }
 0x5c0   : > { %v2362_v14 = vadd.f32 %v5122_v33, %v2358_v24 }
 0x5c2   : > { %v2901_v41 = vperm.slane %v2362_v14, 0  ;;  %v2895_v3 = vrot.slane %v2362_v14, 2  ;;  %v2894_v18 = vrot.slane %v2362_v14, 1  ;;  %v2896_v15 = vrot.slane %v2362_v14, 3 }
 0x5c3   : > { %v2898_v60 = vrot.slane %v2362_v14, 5  ;;  %v2897_v35 = vrot.slane %v2362_v14, 4  ;;  %v2899_v27 = vrot.slane %v2362_v14, 6  ;;  %v2900_v29 = vrot.slane %v2362_v14, 7 }
 0x5c4   : > { %v2917_v46 = vsub.f32 %v2901_v41, %v2362_v14  ;;  %v2903_v17 = vperm.slane %v2895_v3, 0  ;;  %v2902_v51 = vperm.slane %v2894_v18, 0  ;;  %v2904_v47 = vperm.slane %v2896_v15, 0  ;;  %v3048_v18 = vpop.f32.mrf.mxu1 }
 0x5c5   : > { %v2906_v62 = vperm.slane %v2898_v60, 0  ;;  %v2905_v52 = vperm.slane %v2897_v35, 0  ;;  %v2907_v13 = vperm.slane %v2899_v27, 0  ;;  %v2908_v44 = vperm.slane %v2900_v29, 0 }
 0x5c6   : > { %v2933_v5 = vmul.f32 %v2917_v46, %v2917_v46  ;;  %v2919_v26 = vsub.f32 %v2903_v17, %v2362_v14  ;;  %v2918_v59 = vsub.f32 %v2902_v51, %v2362_v14  ;;  %v2920_v53 = vsub.f32 %v2904_v47, %v2362_v14 }
 0x5c7   : > { %v2922_v1 = vsub.f32 %v2906_v62, %v2362_v14  ;;  %v2921_v20 = vsub.f32 %v2905_v52, %v2362_v14  ;;  %v2923_v12 = vsub.f32 %v2907_v13, %v2362_v14  ;;  %v2924_v24 = vsub.f32 %v2908_v44, %v2362_v14 }
 0x5c8   : > { %v2965_v19 = vsel %vm7425_vm4, %v2933_v5, 0.0  ;;  %v2935_v54 = vmul.f32 %v2919_v26, %v2919_v26  ;;  %v2934_v37 = vmul.f32 %v2918_v59, %v2918_v59  ;;  %v2936_v49 = vmul.f32 %v2920_v53, %v2920_v53 }
 0x5c9   : > { %2966 = vadd.xlane.f32.xlu1 %v2965_v19  ;;  %v2938_v63 = vmul.f32 %v2922_v1, %v2922_v1  ;;  %v2937_v30 = vmul.f32 %v2921_v20, %v2921_v20  ;;  %v2824_v41 = vadd.f32 %v2808_v56, %v6486_v38  ;;  %v2799_v3 = vrot.slane %v6471_v28, 2  ;;  %v4699_v56 = vld [vmem:[%s7335_s4 + $0x164] sm:$0xf0] }
 0x5ca   : > { %v2943_v22 = vpop.xlane.xlu2 %2942  ;;  %v2971_v45 = vsel %vm7426_vm15, %v2935_v54, 0.0  ;;  %v2968_v7 = vsel %vm7427_vm13, %v2934_v37, 0.0  ;;  %v2974_v32 = vsel %vm7428_vm9, %v2936_v49, 0.0  ;;  %v2939_v15 = vmul.f32 %v2923_v12, %v2923_v12  ;;  %v4622_v12 = vld [vmem:[%s7335_s4 + $0x160] sm:$0xf] }
 0x5cb   : > { %v2991_v6 = vmul.f32 %v6588_v25, %v2943_v22  ;;  %2972 = vadd.xlane.f32.xlu0 %v2971_v45  ;;  %2969 = vadd.xlane.f32.xlu2 %v2968_v7  ;;  %v2980_v42 = vsel %vm7418_vm0, %v2938_v63, 0.0  ;;  %v2977_v0 = vsel %vm7429_vm1, %v2937_v30, 0.0  ;;  %v2798_v60 = vrot.slane %v6471_v28, 1 }
 0x5cc   : > { %v2940_v46 = vmul.f32 %v2924_v24, %v2924_v24  ;;  %v2807_v14 = vperm.slane %v2799_v3, 0  ;;  %v2983_v51 = vsel %vm7430_vm14, %v2939_v15, 0.0  ;;  %v3051_v7 = vpop.f32.mrf.mxu1  ;;  %v2801_v1 = vrot.slane %v6471_v28, 4 }
 0x5cd   : > { %v3007_v48 = vadd.f32 %v2991_v6, %v2821_v9  ;;  %v2806_v47 = vperm.slane %v2798_v60, 0 }
 0x5ce   : > { %v2823_v5 = vadd.f32 %v2807_v14, %v6486_v38  ;;  %v2809_v16 = vperm.slane %v2801_v1, 0 }
 0x5cf   : > { %v3076_v55 = vadd.f32 %v6559_v40, %v3007_v48  ;;  %v2822_v27 = vadd.f32 %v2806_v47, %v6486_v38  ;;  %v2810_v48 = vperm.slane %v2802_v4, 0  ;;  %v4698_v4 = vld [vmem:[%s7335_s4 + $0x154] sm:$0xf0] }
 0x5d1   : > { %v6607_v36 = vadd.f32 %v6601_v58, %v3076_v55  ;;  %2975 = vadd.xlane.f32.xlu1 %v2974_v32  ;;  %v2825_v55 = vadd.f32 %v2809_v16, %v6486_v38 }
 0x5d2   : > { %v2952_v11 = vpop.xlane.xlu2 %2951 }
 0x5d3   : > { %v4600_v33 = vmul.f32 -1.442695, %v6607_v36  ;;  %v2994_v40 = vmul.f32 %v6588_v25, %v2952_v11  ;;  %2981 = vadd.xlane.f32.xlu0 %v2980_v42  ;;  %2978 = vadd.xlane.f32.xlu2 %v2977_v0  ;;  %v4623_v0 = vor.u32 %v4699_v56, %v4622_v12 }
 0x5d4   : > { %v3053_v47 = vpop.f32.mrf.mxu1 }
 0x5d5   : > { %4982 = vpow2.f32 %v4600_v33  ;;  %v3010_v35 = vadd.f32 %v2994_v40, %v2824_v41  ;;  %3497 = vmatpush.bf16.msrb.mxu2 %v4623_v0 }
 0x5d7   : > { %v3079_v17 = vadd.f32 %v6583_v43, %v3010_v35  ;;  %v2986_v43 = vsel %vm7431_vm6, %v2940_v46, 0.0  ;;  %vm3463_vm6 = vcmask 343040  }
 0x5d9   : > { %v6619_v62 = vadd.f32 %v6601_v58, %v3079_v17  ;;  %v2949_v26 = vpop.xlane.xlu1 %2948  ;;  %2984 = vadd.xlane.f32.xlu1 %v2983_v51  ;;  %v2946_v59 = vpop.xlane.xlu0 %2945 }
 0x5da   : > { %v2993_v52 = vmul.f32 %v6588_v25, %v2949_v26  ;;  %v2992_v19 = vmul.f32 %v6588_v25, %v2946_v59  ;;  %v2961_v54 = vpop.xlane.xlu2 %2960 }
 0x5db   : > { %v4983_v37 = vpop.eup %4982  ;;  %v2997_v53 = vmul.f32 %v6588_v25, %v2961_v54  ;;  %2987 = vadd.xlane.f32.xlu2 %v2986_v43  ;;  %v4603_v29 = vmul.f32 -1.442695, %v6619_v62 }
 0x5dc   : > { %v3009_v22 = vadd.f32 %v2993_v52, %v2823_v5  ;;  %v3008_v45 = vadd.f32 %v2992_v19, %v2822_v27  ;;  %v6630_v20 = vadd.f32 1.0, %v4983_v37 }
 0x5dd   : > { %v3013_v9 = vadd.f32 %v2997_v53, %v6489_v8  ;;  %4984 = vpow2.f32 %v4603_v29 }
 0x5de   : > { %v3078_v6 = vadd.f32 %v6576_v61, %v3009_v22  ;;  %v3077_v49 = vadd.f32 %v6567_v34, %v3008_v45  ;;  %4986 = vrcp.f32 %v6630_v20  ;;  %v2826_v61 = vadd.f32 %v2810_v48, %v6486_v38 }
 0x5df   : > { %v3082_v13 = vadd.f32 %v3051_v7, %v3013_v9  ;;  %vm3179_vm4 = vweird.f32 %v6630_v20  ;;  %v3185_v48 = vand.u32 2147483648, %v6630_v20 }
 0x5e0   : > { %v6637_v63 = vadd.f32 %v6601_v58, %v3078_v6  ;;  %v6640_v30 = vadd.f32 %v6601_v58, %v3077_v49 }
 0x5e1   : > { %v6643_v28 = vadd.f32 %v6601_v58, %v3082_v13  ;;  %v2958_v8 = vpop.xlane.xlu1 %2957  ;;  %v2955_v44 = vpop.xlane.xlu0 %2954 }
 0x5e2   : > { %v2996_v34 = vmul.f32 %v6588_v25, %v2958_v8  ;;  %v2995_v32 = vmul.f32 %v6588_v25, %v2955_v44  ;;  %v4602_v11 = vmul.f32 -1.442695, %v6637_v63  ;;  %v4601_v42 = vmul.f32 -1.442695, %v6640_v30 }
 0x5e3   : > { %v4606_v24 = vmul.f32 -1.442695, %v6643_v28  ;;  %v4985_v38 = vpop.eup %4984  ;;  %v3183_v44 = vand.u32 2147483647, %v6630_v20 }
 0x5e4   : > { %v3012_v33 = vadd.f32 %v2996_v34, %v2826_v61  ;;  %v3011_v41 = vadd.f32 %v2995_v32, %v2825_v55  ;;  %4988 = vpow2.f32 %v4602_v11  ;;  %v6659_v15 = vpop.eup %4986  ;;  %v6666_v35 = vadd.f32 1.0, %v4985_v38 }
 0x5e5   : > { %4990 = vpow2.f32 %v4601_v42  ;;  %vm3180_vm2 = vweird.f32 %v6659_v15  ;;  %vm3184_vm9 = vcmp.eq.f32.partialorder %v3183_v44, 8.507059e+37 }
 0x5e6   : > { %v3081_v40 = vadd.f32 %v3048_v18, %v3012_v33  ;;  %v3080_v3 = vadd.f32 %v6596_v57, %v3011_v41  ;;  %4992 = vpow2.f32 %v4606_v24  ;;  %v3175_v18 = vmul.f32 %v6659_v15, %v6630_v20  ;;  %vm6709_vm15 = vmor %vm3179_vm4, %vm3180_vm2 }
 0x5e7   : > { %4185 = vrot.lane.b32.xlu0 %v6355_v23, %s5248_s19  ;;  %4994 = vrcp.f32 %v6666_v35  ;;  %v3186_v20 = vor.u32 1.1754944e-38, %v3185_v48 }
 0x5e8   : > { %v6664_v60 = vadd.f32 %v6601_v58, %v3081_v40  ;;  %v6669_v46 = vadd.f32 %v6601_v58, %v3080_v3  ;;  %v3176_v27 = vsub.f32 1.0, %v3175_v18 }
 0x5e9   : > { %v2964_v17 = vpop.xlane.xlu0 %2963 }
 0x5ea   : > { %v4605_v57 = vmul.f32 -1.442695, %v6664_v60  ;;  %v2998_v14 = vmul.f32 %v6588_v25, %v2964_v17  ;;  %v4989_v51 = vpop.eup %4988  ;;  %v4604_v59 = vmul.f32 -1.442695, %v6669_v46  ;;  %v3177_v37 = vmul.f32 %v6659_v15, %v3176_v27 }
 0x5eb   : > { %v6675_v23 = vadd.f32 1.0, %v4989_v51  ;;  %v4991_v26 = vpop.eup %4990 }
 0x5ec   : > { %v3014_v5 = vadd.f32 %v2998_v14, %v6492_v31  ;;  %v4993_v52 = vpop.eup %4992  ;;  %v3159_v19 = vadd.f32 1.0, %v4991_v26  ;;  %4996 = vpow2.f32 %v4605_v57  ;;  %v4618_v31 = vld [vmem:[%s7335_s4 + $0x150] sm:$0xf]  ;;  %v3178_v6 = vadd.f32 %v6659_v15, %v3177_v37 }
 0x5ed   : > { %4998 = vrcp.f32 %v6675_v23  ;;  %v6681_v43 = vadd.f32 1.0, %v4993_v52  ;;  %v6696_v29 = vpop.eup %4994  ;;  %v4619_v22 = vor.u32 %v4698_v4, %v4618_v31  ;;  %v3228_v26 = vand.u32 2147483647, %v6666_v35 }
 0x5ee   : > { %v3083_v54 = vadd.f32 %v3053_v47, %v3014_v5  ;;  %5000 = vrcp.f32 %v3159_v19  ;;  %v3220_v16 = vmul.f32 %v6696_v29, %v6666_v35  ;;  %v3182_v55 = vsel %vm6709_vm15, %v6659_v15, %v3178_v6 }
 0x5ef   : > { %5002 = vpow2.f32 %v4604_v59  ;;  %3498 = vmatpush.bf16.msrb.mxu2 %v4619_v22  ;;  %v3198_v32 = vand.u32 2147483647, %v3159_v19  ;;  %v3200_v12 = vand.u32 2147483648, %v3159_v19  ;;  %vm3194_vm0 = vweird.f32 %v3159_v19 }
 0x5f0   : > { %5004 = vrcp.f32 %v6681_v43  ;;  %v6689_v53 = vadd.f32 %v6601_v58, %v3083_v54  ;;  %v3221_v24 = vsub.f32 1.0, %v3220_v16  ;;  %v3187_v40 = vsel %vm3184_vm9, %v3186_v20, %v3182_v55 }
 0x5f1   : > { %v3201_v3 = vor.u32 1.1754944e-38, %v3200_v12  ;;  %vm3199_vm14 = vcmp.eq.f32.partialorder %v3198_v32, 8.507059e+37  ;;  %v3414_v51 = vmul.f32 %v3187_v40, %v6607_v36  ;;  %vm3225_vm2 = vweird.f32 %v6696_v29 }
 0x5f2   : > { %4187 = vrot.lane.b32.xlu1 %v6366_v2, %s5248_s19  ;;  %v4997_v45 = vpop.eup %4996  ;;  %v4607_v7 = vmul.f32 -1.442695, %v6689_v53  ;;  %v3222_v14 = vmul.f32 %v6696_v29, %v3221_v24  ;;  %vm3224_vm15 = vweird.f32 %v6666_v35  ;;  %v3213_v31 = vand.u32 2147483647, %v6675_v23  ;;  %s6879_s19 = scalar_lea.vmem [#allocation6], %s6353_s18 }
 0x5f3   : > { %v6699_v1 = vpop.eup %4998  ;;  %v6719_v56 = vadd.f32 1.0, %v4997_v45  ;;  %v3215_v37 = vand.u32 2147483648, %v6675_v23  ;;  %v3230_v22 = vand.u32 2147483648, %v6666_v35  ;;  %v3273_v6 = vand.u32 2147483647, %v6681_v43  ;;  %s4250_s24 = sshll.u32 %s6879_s19, 4  ;;  %s4251_s24 = int_to_ptr.vmem [resolvable:$true] %s4250_s24 }
 0x5f4   : > { %v5001_v9 = vpop.eup %5000  ;;  %5006 = vpow2.f32 %v4607_v7  ;;  %v3205_v34 = vmul.f32 %v6699_v1, %v6675_v23  ;;  %vm3210_vm4 = vweird.f32 %v6699_v1  ;;  %v3275_v35 = vand.u32 2147483648, %v6681_v43 }
 0x5f5   : > { %v5003_v49 = vpop.eup %5002  ;;  %v3190_v2 = vmul.f32 %v5001_v9, %v3159_v19  ;;  %vm3195_vm13 = vweird.f32 %v5001_v9  ;;  %5008 = vrcp.f32 %v6719_v56  ;;  %v3223_v19 = vadd.f32 %v6696_v29, %v3222_v14 }
 0x5f6   : > { %v6703_v13 = vpop.eup %5004  ;;  %v6723_v0 = vadd.f32 1.0, %v5003_v49  ;;  %v3206_v38 = vsub.f32 1.0, %v3205_v34  ;;  %vm3196_vm1 = vmor %vm3194_vm0, %vm3195_vm13  ;;  %vm6748_vm13 = vcmp.eq.f32.partialorder %v3228_v26, 8.507059e+37  ;;  %vm3209_vm0 = vweird.f32 %v6675_v23 }
 0x5f7   : > { %v3191_v61 = vsub.f32 1.0, %v3190_v2  ;;  %v3265_v42 = vmul.f32 %v6703_v13, %v6681_v43  ;;  %vm3270_vm9 = vweird.f32 %v6703_v13  ;;  %vm6768_vm3 = vmor %vm3209_vm0, %vm3210_vm4  ;;  %vm3214_vm4 = vcmp.eq.f32.partialorder %v3213_v31, 8.507059e+37 }
 0x5f8   : > { %5010 = vrcp.f32 %v6723_v0  ;;  %v3207_v5 = vmul.f32 %v6699_v1, %v3206_v38  ;;  %v3276_v32 = vor.u32 1.1754944e-38, %v3275_v35  ;;  %v3258_v26 = vand.u32 2147483647, %v6719_v56 }
 0x5f9   : > { %v3192_v11 = vmul.f32 %v5001_v9, %v3191_v61  ;;  %v3266_v18 = vsub.f32 1.0, %v3265_v42  ;;  %v3216_v61 = vor.u32 1.1754944e-38, %v3215_v37 }
 0x5fa   : > { %v5007_v33 = vpop.eup %5006  ;;  %v3208_v36 = vadd.f32 %v6699_v1, %v3207_v5  ;;  %v3243_v5 = vand.u32 2147483647, %v6723_v0 }
 0x5fb   : > { %v3193_v41 = vadd.f32 %v5001_v9, %v3192_v11  ;;  %v6726_v15 = vadd.f32 1.0, %v5007_v33  ;;  %v3267_v59 = vmul.f32 %v6703_v13, %v3266_v18  ;;  %v6736_v27 = vpop.eup %5008 }
 0x5fc   : > { %v3212_v48 = vsel %vm6768_vm3, %v6699_v1, %v3208_v36 }
 0x5fd   : > { %v3197_v17 = vsel %vm3196_vm1, %v5001_v9, %v3193_v41  ;;  %5012 = vrcp.f32 %v6726_v15  ;;  %v3268_v45 = vadd.f32 %v6703_v13, %v3267_v59  ;;  %vm6759_vm1 = vmor %vm3224_vm15, %vm3225_vm2  ;;  %v3290_v44 = vand.u32 2147483648, %v6726_v15 }
 0x5fe   : > { %v3202_v57 = vsel %vm3199_vm14, %v3201_v3, %v3197_v17  ;;  %v6740_v54 = vpop.eup %5010  ;;  %vm3269_vm14 = vweird.f32 %v6681_v43  ;;  %v3227_v23 = vsel %vm6759_vm1, %v6696_v29, %v3223_v19  ;;  %v3250_v43 = vmul.f32 %v6736_v27, %v6719_v56 }
 0x5ff   : > { %v3415_v47 = vmul.f32 %v3202_v57, %v6640_v30  ;;  %v3235_v16 = vmul.f32 %v6740_v54, %v6723_v0  ;;  %vm6782_vm2 = vmor %vm3269_vm14, %vm3270_vm9  ;;  %v3231_v29 = vor.u32 1.1754944e-38, %v3230_v22  ;;  %v3288_v55 = vand.u32 2147483647, %v6726_v15 }
 0x600   : > { %v3272_v34 = vsel %vm6782_vm2, %v6703_v13, %v3268_v45  ;;  %vm3274_vm15 = vcmp.eq.f32.partialorder %v3273_v6, 8.507059e+37  ;;  %v3217_v12 = vsel %vm3214_vm4, %v3216_v61, %v3212_v48  ;;  %vm3284_vm9 = vweird.f32 %v6726_v15 }
 0x601   : > { %v3436_v52 = vpack.c.bf16 %v3415_v47, %v3414_v51  ;;  %v3232_v11 = vsel %vm6748_vm13, %v3231_v29, %v3227_v23  ;;  %v3236_v20 = vsub.f32 1.0, %v3235_v16  ;;  %v3251_v24 = vsub.f32 1.0, %v3250_v43  ;;  %v3056_v51 = vpop.f32.mrf.mxu1 }
 0x602   : > { %v3277_v33 = vsel %vm3274_vm15, %v3276_v32, %v3272_v34  ;;  %v3291_v41 = vor.u32 1.1754944e-38, %v3290_v44  ;;  %vm3289_vm1 = vcmp.eq.f32.partialorder %v3288_v55, 8.507059e+37  ;;  %v3416_v13 = vmul.f32 %v3217_v12, %v6637_v63 }
 0x603   : > { %4628 = vmatmul.msk.bf16.vlgmr.msrb.gmra.mxu2 %vm3463_vm6, %v3436_v52  ;;  %v5013_v30 = vpop.eup %5012  ;;  %v3417_v3 = vmul.f32 %v3232_v11, %v6619_v62  ;;  %v3420_v17 = vmul.f32 %v3277_v33, %v6643_v28  ;;  %v3237_v57 = vmul.f32 %v6740_v54, %v3236_v20  ;;  %vm3255_vm13 = vweird.f32 %v6736_v27 }
 0x604   : > { %v3280_v7 = vmul.f32 %v5013_v30, %v6726_v15  ;;  %vm3285_vm3 = vweird.f32 %v5013_v30  ;;  %v3252_v15 = vmul.f32 %v6736_v27, %v3251_v24  ;;  %vm3240_vm14 = vweird.f32 %v6740_v54 }
 0x605   : > { %vm3286_vm0 = vmor %vm3284_vm9, %vm3285_vm3  ;;  %v3437_v14 = vpack.c.bf16 %v3417_v3, %v3416_v13  ;;  %v3238_v63 = vadd.f32 %v6740_v54, %v3237_v57  ;;  %v3245_v28 = vand.u32 2147483648, %v6723_v0  ;;  %vm3254_vm2 = vweird.f32 %v6719_v56 }
 0x606   : > { %v3281_v2 = vsub.f32 1.0, %v3280_v7  ;;  %v3253_v62 = vadd.f32 %v6736_v27, %v3252_v15  ;;  %vm3239_vm4 = vweird.f32 %v6723_v0  ;;  %vm3256_vm3 = vmor %vm3254_vm2, %vm3255_vm13  ;;  %vm3244_vm9 = vcmp.eq.f32.partialorder %v3243_v5, 8.507059e+37 }
 0x607   : > { %vm3241_vm15 = vmor %vm3239_vm4, %vm3240_vm14  ;;  %v3246_v19 = vor.u32 1.1754944e-38, %v3245_v28  ;;  %v2869_v9 = vperm.slane %v6473_v21, 0  ;;  %v2864_v16 = vrot.slane %v6473_v21, 3  ;;  %v2865_v32 = vrot.slane %v6473_v21, 4 }
 0x608   : > { %v3282_v1 = vmul.f32 %v5013_v30, %v3281_v2  ;;  %v3242_v59 = vsel %vm3241_vm15, %v6740_v54, %v3238_v63  ;;  %v3257_v52 = vsel %vm3256_vm3, %v6736_v27, %v3253_v62  ;;  %v2862_v27 = vrot.slane %v6473_v21, 1 }
 0x609   : > { %v3058_v37 = vpop.f32.mrf.mxu1  ;;  %v2863_v54 = vrot.slane %v6473_v21, 2  ;;  %v2872_v55 = vperm.slane %v2864_v16, 0  ;;  %v2866_v12 = vrot.slane %v6473_v21, 5 }
 0x60a   : > { %v3283_v42 = vadd.f32 %v5013_v30, %v3282_v1  ;;  %v2870_v35 = vperm.slane %v2862_v27, 0  ;;  %v2868_v27 = vrot.slane %v6473_v21, 7 }
 0x60b   : > { %v2871_v49 = vperm.slane %v2863_v54, 0  ;;  %v2888_v24 = vadd.f32 %v2872_v55, %v6547_v39  ;;  %v2874_v57 = vperm.slane %v2866_v12, 0 }
 0x60c   : > { %v3287_v38 = vsel %vm3286_vm0, %v5013_v30, %v3283_v42  ;;  %vm3259_vm0 = vcmp.eq.f32.partialorder %v3258_v26, 8.507059e+37  ;;  %v3247_v30 = vsel %vm3244_vm9, %v3246_v19, %v3242_v59  ;;  %v2886_v23 = vadd.f32 %v2870_v35, %v6547_v39 }
 0x60d   : > { %v3292_v40 = vsel %vm3289_vm1, %v3291_v41, %v3287_v38  ;;  %v3418_v4 = vmul.f32 %v3247_v30, %v6669_v46  ;;  %v2885_v46 = vadd.f32 %v2869_v9, %v6547_v39  ;;  %v2887_v44 = vadd.f32 %v2871_v49, %v6547_v39 }
 0x60e   : > { %v3421_v18 = vmul.f32 %v3292_v40, %v6689_v53  ;;  %v3260_v53 = vand.u32 2147483648, %v6719_v56  ;;  %v2890_v28 = vadd.f32 %v2874_v57, %v6547_v39  ;;  %v2867_v9 = vrot.slane %v6473_v21, 6 }
 0x60f   : > { %v2876_v49 = vperm.slane %v2868_v27, 0 }
 0x610   : > { %v3439_v47 = vpack.c.bf16 %v3421_v18, %v3420_v17  ;;  %v3261_v36 = vor.u32 1.1754944e-38, %v3260_v53  ;;  %v2873_v17 = vperm.slane %v2865_v32, 0 }
 0x611   : > { %v3061_v56 = vpop.f32.mrf.mxu1 }
 0x612   : > { %v3262_v31 = vsel %vm3259_vm0, %v3261_v36, %v3257_v52  ;;  %v2889_v63 = vadd.f32 %v2873_v17, %v6547_v39 }
 0x613   : > { %4629 = vmatmul.msk.bf16.gmra.mxu2 %vm3463_vm6, %v3437_v14  ;;  %v3419_v22 = vmul.f32 %v3262_v31, %v6664_v60 }
 0x615   : > { %v3438_v0 = vpack.c.bf16 %v3419_v22, %v3418_v4 }
 0x619   : > { %v3063_v45 = vpop.f32.mrf.mxu1 }
 0x621   : > { %v3066_v7 = vpop.f32.mrf.mxu1 }
 0x623   : > { %4630 = vmatmul.msk.bf16.gmra.mxu2 %vm3463_vm6, %v3438_v0 }
 0x629   : > { %v3068_v40 = vpop.f32.mrf.mxu1 }
 0x631   : > { %v3071_v22 = vpop.f32.mrf.mxu1 }
 0x633   : > { %4631 = vmatmul.msk.bf16.gmra.mxu2 %vm3463_vm6, %v3439_v47 }
 0x63c   : > { %v2967_v6 = vpop.xlane.xlu1 %2966 }
 0x63d   : > { %v2999_v60 = vmul.f32 %v6588_v25, %v2967_v6 }
 0x63e   : > { %v2970_v2 = vpop.xlane.xlu2 %2969  ;;  %v2973_v48 = vpop.xlane.xlu0 %2972 }
 0x63f   : > { %v3015_v43 = vadd.f32 %v2999_v60, %v2885_v46  ;;  %v3000_v8 = vmul.f32 %v6588_v25, %v2970_v2  ;;  %v3001_v61 = vmul.f32 %v6588_v25, %v2973_v48  ;;  %v2875_v48 = vperm.slane %v2867_v9, 0 }
 0x641   : > { %v3084_v29 = vadd.f32 %v3056_v51, %v3015_v43  ;;  %v3016_v34 = vadd.f32 %v3000_v8, %v2886_v23  ;;  %v3017_v1 = vadd.f32 %v3001_v61, %v2887_v44  ;;  %v2892_v43 = vadd.f32 %v2876_v49, %v6547_v39 }
 0x642   : > { %v2891_v61 = vadd.f32 %v2875_v48, %v6547_v39 }
 0x643   : > { %v6830_v11 = vadd.f32 %v6601_v58, %v3084_v29  ;;  %v3085_v42 = vadd.f32 %v3058_v37, %v3016_v34  ;;  %v3086_v20 = vadd.f32 %v3061_v56, %v3017_v1  ;;  %v3073_v34 = vpop.f32.mrf.mxu1 }
 0x644   : > { %v2976_v33 = vpop.xlane.xlu1 %2975 }
 0x645   : > { %v4608_v41 = vmul.f32 -1.442695, %v6830_v11  ;;  %v6835_v38 = vadd.f32 %v6601_v58, %v3085_v42  ;;  %v6838_v13 = vadd.f32 %v6601_v58, %v3086_v20  ;;  %v3002_v3 = vmul.f32 %v6588_v25, %v2976_v33 }
 0x646   : > { %v2979_v18 = vpop.xlane.xlu2 %2978  ;;  %v2982_v15 = vpop.xlane.xlu0 %2981 }
 0x647   : > { %5014 = vpow2.f32 %v4608_v41  ;;  %v4609_v14 = vmul.f32 -1.442695, %v6835_v38  ;;  %v4610_v51 = vmul.f32 -1.442695, %v6838_v13  ;;  %v3018_v47 = vadd.f32 %v3002_v3, %v2888_v24 }
 0x648   : > { %v3003_v62 = vmul.f32 %v6588_v25, %v2979_v18  ;;  %v3004_v53 = vmul.f32 %v6588_v25, %v2982_v15 }
 0x649   : > { %5016 = vpow2.f32 %v4609_v14  ;;  %v3087_v5 = vadd.f32 %v3063_v45, %v3018_v47 }
 0x64a   : > { %5018 = vpow2.f32 %v4610_v51  ;;  %v3019_v26 = vadd.f32 %v3003_v62, %v2889_v63  ;;  %v3020_v59 = vadd.f32 %v3004_v53, %v2890_v28 }
 0x64b   : > { %v6848_v52 = vadd.f32 %v6601_v58, %v3087_v5 }
 0x64c   : > { %v3088_v19 = vadd.f32 %v3066_v7, %v3019_v26  ;;  %v3089_v31 = vadd.f32 %v3068_v40, %v3020_v59  ;;  %v2985_v35 = vpop.xlane.xlu1 %2984 }
 0x64d   : > { %v5015_v36 = vpop.eup %5014  ;;  %v4611_v30 = vmul.f32 -1.442695, %v6848_v52  ;;  %v3005_v16 = vmul.f32 %v6588_v25, %v2985_v35 }
 0x64e   : > { %v6851_v37 = vadd.f32 1.0, %v5015_v36  ;;  %v6857_v45 = vadd.f32 %v6601_v58, %v3088_v19  ;;  %v6861_v54 = vadd.f32 %v6601_v58, %v3089_v31  ;;  %v2988_v7 = vpop.xlane.xlu2 %2987 }
 0x64f   : > { %v5017_v4 = vpop.eup %5016  ;;  %v3006_v60 = vmul.f32 %v6588_v25, %v2988_v7  ;;  %v3021_v12 = vadd.f32 %v3005_v16, %v2891_v61 }
 0x650   : > { %v5019_v0 = vpop.eup %5018  ;;  %5020 = vrcp.f32 %v6851_v37  ;;  %v6854_v56 = vadd.f32 1.0, %v5017_v4  ;;  %v4612_v46 = vmul.f32 -1.442695, %v6857_v45  ;;  %v4613_v23 = vmul.f32 -1.442695, %v6861_v54 }
 0x651   : > { %5022 = vpow2.f32 %v4611_v30  ;;  %v6865_v6 = vadd.f32 1.0, %v5019_v0  ;;  %v3022_v29 = vadd.f32 %v3006_v60, %v2892_v43  ;;  %v3090_v41 = vadd.f32 %v3071_v22, %v3021_v12 }
 0x652   : > { %5024 = vrcp.f32 %v6854_v56  ;;  %v3303_v17 = vand.u32 2147483647, %v6851_v37  ;;  %v3305_v18 = vand.u32 2147483648, %v6851_v37  ;;  %v3318_v14 = vand.u32 2147483647, %v6854_v56 }
 0x653   : > { %5026 = vrcp.f32 %v6865_v6  ;;  %v3091_v20 = vadd.f32 %v3073_v34, %v3022_v29  ;;  %v3320_v51 = vand.u32 2147483648, %v6854_v56  ;;  %vm3299_vm13 = vweird.f32 %v6851_v37 }
 0x654   : > { %5028 = vpow2.f32 %v4612_v46  ;;  %vm3314_vm4 = vweird.f32 %v6854_v56  ;;  %v6906_v53 = vadd.f32 %v6601_v58, %v3090_v41  ;;  %v3306_v26 = vor.u32 1.1754944e-38, %v3305_v18 }
 0x655   : > { %5030 = vpow2.f32 %v4613_v23  ;;  %v6889_v57 = vadd.f32 %v6601_v58, %v3091_v20  ;;  %vm3304_vm3 = vcmp.eq.f32.partialorder %v3303_v17, 8.507059e+37  ;;  %vm3319_vm9 = vcmp.eq.f32.partialorder %v3318_v14, 8.507059e+37 }
 0x656   : > { %v5021_v2 = vpop.eup %5020  ;;  %v3321_v31 = vor.u32 1.1754944e-38, %v3320_v51  ;;  %v4614_v0 = vmul.f32 -1.442695, %v6906_v53  ;;  %v3335_v48 = vand.u32 2147483648, %v6865_v6 }
 0x657   : > { %v5023_v8 = vpop.eup %5022  ;;  %v3295_v21 = vmul.f32 %v5021_v2, %v6851_v37  ;;  %vm3300_vm1 = vweird.f32 %v5021_v2  ;;  %v4615_v36 = vmul.f32 -1.442695, %v6889_v57 }
 0x658   : > { %v5025_v44 = vpop.eup %5024  ;;  %v6876_v25 = vadd.f32 1.0, %v5023_v8  ;;  %vm6900_vm2 = vmor %vm3299_vm13, %vm3300_vm1 }
 0x659   : > { %v4186_v1 = vpop.permute.xlu0 %4185  ;;  %v3296_v55 = vsub.f32 1.0, %v3295_v21  ;;  %v3310_v32 = vmul.f32 %v5025_v44, %v6854_v56  ;;  %v6883_v33 = vpop.eup %5026  ;;  %vm3315_vm14 = vweird.f32 %v5025_v44 }
 0x65a   : > { %4191 = vst.msk [vmem:[%s6879_s19] sm:$0xff] %vm2758_vm5, %v4186_v1  ;;  %v5029_v39 = vpop.eup %5028  ;;  %5032 = vrcp.f32 %v6876_v25  ;;  %v3325_v63 = vmul.f32 %v6883_v33, %v6865_v6  ;;  %vm3316_vm15 = vmor %vm3314_vm4, %vm3315_vm14  ;;  %vm3330_vm1 = vweird.f32 %v6883_v33  ;;  %vm3344_vm13 = vweird.f32 %v6876_v25 }
 0x65b   : > { %v3297_v42 = vmul.f32 %v5021_v2, %v3296_v55  ;;  %v3311_v24 = vsub.f32 1.0, %v3310_v32  ;;  %v5031_v40 = vpop.eup %5030  ;;  %v6893_v47 = vadd.f32 1.0, %v5029_v39  ;;  %vm3329_vm14 = vweird.f32 %v6865_v6 }
 0x65c   : > { %v6898_v62 = vadd.f32 1.0, %v5031_v40  ;;  %v3326_v4 = vsub.f32 1.0, %v3325_v63  ;;  %vm3331_vm4 = vmor %vm3329_vm14, %vm3330_vm1  ;;  %v3336_v32 = vor.u32 1.1754944e-38, %v3335_v48 }
 0x65d   : > { %v3298_v3 = vadd.f32 %v5021_v2, %v3297_v42  ;;  %v3312_v15 = vmul.f32 %v5025_v44, %v3311_v24  ;;  %5034 = vrcp.f32 %v6893_v47  ;;  %vm3359_vm1 = vweird.f32 %v6893_v47 }
 0x65e   : > { %5036 = vrcp.f32 %v6898_v62  ;;  %v3327_v35 = vmul.f32 %v6883_v33, %v3326_v4  ;;  %v3365_v18 = vand.u32 2147483648, %v6893_v47  ;;  %vm3374_vm14 = vweird.f32 %v6898_v62 }
 0x65f   : > { %v3302_v5 = vsel %vm6900_vm2, %v5021_v2, %v3298_v3  ;;  %v3313_v59 = vadd.f32 %v5025_v44, %v3312_v15  ;;  %5038 = vpow2.f32 %v4615_v36  ;;  %v3348_v2 = vand.u32 2147483647, %v6876_v25 }
 0x660   : > { %v5033_v19 = vpop.eup %5032  ;;  %v3307_v37 = vsel %vm3304_vm3, %v3306_v26, %v3302_v5  ;;  %5040 = vpow2.f32 %v4614_v0  ;;  %v3363_v15 = vand.u32 2147483647, %v6893_v47  ;;  %v3378_v14 = vand.u32 2147483647, %v6898_v62 }
 0x661   : > { %v3317_v58 = vsel %vm3316_vm15, %v5025_v44, %v3313_v59  ;;  %v3422_v56 = vmul.f32 %v3307_v37, %v6830_v11  ;;  %v3340_v7 = vmul.f32 %v5033_v19, %v6876_v25  ;;  %vm3345_vm0 = vweird.f32 %v5033_v19 }
 0x662   : > { %v3322_v22 = vsel %vm3319_vm9, %v3321_v31, %v3317_v58  ;;  %v3350_v11 = vand.u32 2147483648, %v6876_v25  ;;  %v3333_v44 = vand.u32 2147483647, %v6865_v6  ;;  %vm3346_vm2 = vmor %vm3344_vm13, %vm3345_vm0  ;;  %vm3349_vm3 = vcmp.eq.f32.partialorder %v3348_v2, 8.507059e+37  ;;  %v6968_v58 = vld [vmem:[%s7336_s5 + $0x50] ss:$0 sm:$0xff] }
 0x663   : > { %v3423_v27 = vmul.f32 %v3322_v22, %v6835_v38  ;;  %v3341_v46 = vsub.f32 1.0, %v3340_v7  ;;  %v6920_v60 = vpop.eup %5034  ;;  %v3328_v38 = vadd.f32 %v6883_v33, %v3327_v35  ;;  %v3366_v26 = vor.u32 1.1754944e-38, %v3365_v18 }
 0x664   : > { %v4188_v30 = vpop.permute.xlu1 %4187  ;;  %v6923_v49 = vpop.eup %5036  ;;  %v3355_v8 = vmul.f32 %v6920_v60, %v6893_v47  ;;  %v3351_v29 = vor.u32 1.1754944e-38, %v3350_v11  ;;  %vm3334_vm15 = vcmp.eq.f32.partialorder %v3333_v44, 8.507059e+37  ;;  %vm3360_vm9 = vweird.f32 %v6920_v60 }
 0x665   : > { %4192 = vst.msk [vmem:[%s6879_s19 + $0x8] sm:$0xff] %vm2758_vm5, %v4188_v30  ;;  %v3440_v9 = vpack.c.bf16 %v3423_v27, %v3422_v56  ;;  %v3342_v23 = vmul.f32 %v5033_v19, %v3341_v46  ;;  %v5039_v43 = vpop.eup %5038  ;;  %v3370_v21 = vmul.f32 %v6923_v49, %v6898_v62  ;;  %v3332_v1 = vsel %vm3331_vm4, %v6883_v33, %v3328_v38  ;;  %vm3361_vm13 = vmor %vm3359_vm1, %vm3360_vm9 }
 0x666   : > { %v5041_v34 = vpop.eup %5040  ;;  %v6938_v55 = vadd.f32 1.0, %v5039_v43  ;;  %v3356_v12 = vsub.f32 1.0, %v3355_v8  ;;  %v3337_v24 = vsel %vm3334_vm15, %v3336_v32, %v3332_v1  ;;  %vm3375_vm0 = vweird.f32 %v6923_v49 }
 0x667   : > { %4632 = vmatmul.msk.bf16.gmra.mxu2 %vm3463_vm6, %v3440_v9  ;;  %v3343_v16 = vadd.f32 %v5033_v19, %v3342_v23  ;;  %v3371_v42 = vsub.f32 1.0, %v3370_v21  ;;  %v6940_v20 = vadd.f32 1.0, %v5041_v34  ;;  %v3424_v33 = vmul.f32 %v3337_v24, %v6838_v13 }
 0x668   : > { %5042 = vrcp.f32 %v6938_v55  ;;  %v3357_v39 = vmul.f32 %v6920_v60, %v3356_v12  ;;  %v3380_v13 = vand.u32 2147483648, %v6898_v62  ;;  %vm3364_vm4 = vcmp.eq.f32.partialorder %v3363_v15, 8.507059e+37 }
 0x669   : > { %v3347_v61 = vsel %vm3346_vm2, %v5033_v19, %v3343_v16  ;;  %v3372_v41 = vmul.f32 %v6923_v49, %v3371_v42  ;;  %5044 = vrcp.f32 %v6940_v20  ;;  %vm3376_vm2 = vmor %vm3374_vm14, %vm3375_vm0  ;;  %vm3404_vm9 = vweird.f32 %v6938_v55 }
 0x66a   : > { %v3352_v25 = vsel %vm3349_vm3, %v3351_v29, %v3347_v61  ;;  %v3358_v3 = vadd.f32 %v6920_v60, %v3357_v39  ;;  %v3381_v59 = vor.u32 1.1754944e-38, %v3380_v13  ;;  %vm3379_vm3 = vcmp.eq.f32.partialorder %v3378_v14, 8.507059e+37 }
 0x66b   : > { %v3425_v6 = vmul.f32 %v3352_v25, %v6848_v52  ;;  %v3373_v17 = vadd.f32 %v6923_v49, %v3372_v41  ;;  %v3408_v35 = vand.u32 2147483647, %v6938_v55  ;;  %v3395_v46 = vand.u32 2147483648, %v6940_v20 }
 0x66c   : > { %v3362_v63 = vsel %vm3361_vm13, %v6920_v60, %v3358_v3  ;;  %vm3389_vm13 = vweird.f32 %v6940_v20  ;;  %v3393_v60 = vand.u32 2147483647, %v6940_v20 }
 0x66d   : > { %v3441_v40 = vpack.c.bf16 %v3425_v6, %v3424_v33  ;;  %v3377_v28 = vsel %vm3376_vm2, %v6923_v49, %v3373_v17  ;;  %v3367_v36 = vsel %vm3364_vm4, %v3366_v26, %v3362_v63  ;;  %vm3409_vm2 = vcmp.eq.f32.partialorder %v3408_v35, 8.507059e+37 }
 0x66e   : > { %v5043_v52 = vpop.eup %5042  ;;  %v3382_v47 = vsel %vm3379_vm3, %v3381_v59, %v3377_v28  ;;  %v3426_v31 = vmul.f32 %v3367_v36, %v6857_v45  ;;  %v3410_v45 = vand.u32 2147483648, %v6938_v55  ;;  %v3396_v48 = vor.u32 1.1754944e-38, %v3395_v46 }
 0x66f   : > { %v5045_v51 = vpop.eup %5044  ;;  %v3400_v5 = vmul.f32 %v5043_v52, %v6938_v55  ;;  %v3427_v62 = vmul.f32 %v3382_v47, %v6861_v54  ;;  %vm3405_vm15 = vweird.f32 %v5043_v52  ;;  %vm3394_vm4 = vcmp.eq.f32.partialorder %v3393_v60, 8.507059e+37 }
 0x670   : > { %v3385_v19 = vmul.f32 %v5045_v51, %v6940_v20  ;;  %vm3390_vm0 = vweird.f32 %v5045_v51  ;;  %vm3406_vm1 = vmor %vm3404_vm9, %vm3405_vm15  ;;  %v3411_v23 = vor.u32 1.1754944e-38, %v3410_v45 }
 0x671   : > { %v3401_v30 = vsub.f32 1.0, %v3400_v5  ;;  %v3442_v27 = vpack.c.bf16 %v3427_v62, %v3426_v31  ;;  %vm3391_vm14 = vmor %vm3389_vm13, %vm3390_vm0  ;;  %vm7444_vm0 = vcmask 130048  }
 0x672   : > { %v3386_v37 = vsub.f32 1.0, %v3385_v19 }
 0x673   : > { %v3402_v4 = vmul.f32 %v5043_v52, %v3401_v30 }
 0x674   : > { %v3387_v0 = vmul.f32 %v5045_v51, %v3386_v37 }
 0x675   : > { %v3403_v7 = vadd.f32 %v5043_v52, %v3402_v4 }
 0x676   : > { %v3388_v54 = vadd.f32 %v5045_v51, %v3387_v0 }
 0x677   : > { %4633 = vmatmul.msk.bf16.gmra.mxu2 %vm3463_vm6, %v3441_v40  ;;  %v3407_v49 = vsel %vm3406_vm1, %v5043_v52, %v3403_v7 }
 0x678   : > { %v3392_v38 = vsel %vm3391_vm14, %v5045_v51, %v3388_v54  ;;  %v3412_v16 = vsel %vm3409_vm2, %v3411_v23, %v3407_v49 }
 0x679   : > { %v3397_v21 = vsel %vm3394_vm4, %v3396_v48, %v3392_v38  ;;  %v3429_v61 = vmul.f32 %v3412_v16, %v6889_v57  ;;  %vm7445_vm4 = vmmov %vm7444_vm0 }
 0x67a   : > { %v3428_v29 = vmul.f32 %v3397_v21, %v6906_v53 }
 0x67c   : > { %v3443_v1 = vpack.c.bf16 %v3429_v61, %v3428_v29 }
 0x686   : > { %v3500_v22 = vpop.f32.mrf.mxu2 }
 0x687   : > { %v6971_v56 = vadd.f32 %v6968_v58, %v3500_v22  ;;  %4634 = vmatmul.msk.bf16.gmra.mxu2 %vm3463_vm6, %v3442_v27 }
 0x689   : > { %v4636_v9 = vmul.f32 -1.442695, %v6971_v56 }
 0x68b   : > { %5046 = vpow2.f32 %v4636_v9 }
 0x68e   : > { %v3502_v11 = vpop.f32.mrf.mxu2 }
 0x68f   : > { %v6982_v2 = vadd.f32 %v6968_v58, %v3502_v11 }
 0x691   : > { %v5047_v43 = vpop.eup %5046  ;;  %v4637_v8 = vmul.f32 -1.442695, %v6982_v2 }
 0x692   : > { %v3588_v44 = vadd.f32 1.0, %v5047_v43 }
 0x693   : > { %5048 = vpow2.f32 %v4637_v8 }
 0x694   : > { %5050 = vrcp.f32 %v3588_v44  ;;  %v3615_v24 = vand.u32 2147483648, %v3588_v44  ;;  %v3613_v53 = vand.u32 2147483647, %v3588_v44  ;;  %vm3609_vm15 = vweird.f32 %v3588_v44 }
 0x696   : > { %v3505_v34 = vpop.f32.mrf.mxu2  ;;  %v3616_v52 = vor.u32 1.1754944e-38, %v3615_v24  ;;  %vm3614_vm9 = vcmp.eq.f32.partialorder %v3613_v53, 8.507059e+37 }
 0x697   : > { %v6988_v55 = vadd.f32 %v6968_v58, %v3505_v34  ;;  %4635 = vmatmul.msk.bf16.gmra.mxu2 %vm3463_vm6, %v3443_v1 }
 0x699   : > { %v5049_v32 = vpop.eup %5048  ;;  %v4638_v25 = vmul.f32 -1.442695, %v6988_v55 }
 0x69a   : > { %v5051_v12 = vpop.eup %5050  ;;  %v3589_v42 = vadd.f32 1.0, %v5049_v32 }
 0x69b   : > { %v3605_v20 = vmul.f32 %v5051_v12, %v3588_v44  ;;  %5052 = vpow2.f32 %v4638_v25  ;;  %vm3610_vm3 = vweird.f32 %v5051_v12 }
 0x69c   : > { %5054 = vrcp.f32 %v3589_v42  ;;  %vm3611_vm6 = vmor %vm3609_vm15, %vm3610_vm3  ;;  %v3628_v28 = vand.u32 2147483647, %v3589_v42  ;;  %v3630_v5 = vand.u32 2147483648, %v3589_v42  ;;  %vm3624_vm13 = vweird.f32 %v3589_v42 }
 0x69d   : > { %v3606_v57 = vsub.f32 1.0, %v3605_v20 }
 0x69e   : > { %v3507_v6 = vpop.f32.mrf.mxu2  ;;  %v3631_v22 = vor.u32 1.1754944e-38, %v3630_v5  ;;  %vm3629_vm2 = vcmp.eq.f32.partialorder %v3628_v28, 8.507059e+37 }
 0x69f   : > { %v3607_v39 = vmul.f32 %v5051_v12, %v3606_v57  ;;  %v6993_v41 = vadd.f32 %v6968_v58, %v3507_v6 }
 0x6a1   : > { %v5053_v33 = vpop.eup %5052  ;;  %v3608_v40 = vadd.f32 %v5051_v12, %v3607_v39  ;;  %v4639_v3 = vmul.f32 -1.442695, %v6993_v41 }
 0x6a2   : > { %v5055_v17 = vpop.eup %5054  ;;  %v3590_v18 = vadd.f32 1.0, %v5053_v33 }
 0x6a3   : > { %v3612_v13 = vsel %vm3611_vm6, %v5051_v12, %v3608_v40  ;;  %v3620_v15 = vmul.f32 %v5055_v17, %v3589_v42  ;;  %5056 = vpow2.f32 %v4639_v3  ;;  %vm3625_vm1 = vweird.f32 %v5055_v17 }
 0x6a4   : > { %v3617_v14 = vsel %vm3614_vm9, %v3616_v52, %v3612_v13  ;;  %5058 = vrcp.f32 %v3590_v18  ;;  %vm3626_vm14 = vmor %vm3624_vm13, %vm3625_vm1  ;;  %v3645_v35 = vand.u32 2147483648, %v3590_v18  ;;  %v3643_v11 = vand.u32 2147483647, %v3590_v18 }
 0x6a5   : > { %v3844_v51 = vmul.f32 %v3617_v14, %v6971_v56  ;;  %v3621_v63 = vsub.f32 1.0, %v3620_v15  ;;  %vm3639_vm15 = vweird.f32 %v3590_v18 }
 0x6a6   : > { %v3510_v26 = vpop.f32.mrf.mxu2  ;;  %v3646_v8 = vor.u32 1.1754944e-38, %v3645_v35  ;;  %vm3644_vm9 = vcmp.eq.f32.partialorder %v3643_v11, 8.507059e+37 }
 0x6a7   : > { %v3860_v59 = vsel %vm7444_vm0, %v3844_v51, 0.0  ;;  %v3622_v19 = vmul.f32 %v5055_v17, %v3621_v63  ;;  %v6999_v36 = vadd.f32 %v6968_v58, %v3510_v26 }
 0x6a8   : > { %v3861_v47 = vrot.slane %v3860_v59, 4 }
 0x6a9   : > { %v5057_v30 = vpop.eup %5056  ;;  %v3623_v31 = vadd.f32 %v5055_v17, %v3622_v19  ;;  %v4640_v62 = vmul.f32 -1.442695, %v6999_v36 }
 0x6aa   : > { %v5059_v37 = vpop.eup %5058  ;;  %v3862_v4 = vadd.f32 %v3861_v47, %v3860_v59  ;;  %v3591_v0 = vadd.f32 1.0, %v5057_v30 }
 0x6ab   : > { %v3627_v56 = vsel %vm3626_vm14, %v5055_v17, %v3623_v31  ;;  %v3635_v27 = vmul.f32 %v5059_v37, %v3590_v18  ;;  %5060 = vpow2.f32 %v4640_v62  ;;  %vm3640_vm3 = vweird.f32 %v5059_v37 }
 0x6ac   : > { %v3863_v7 = vrot.slane %v3862_v4, 2  ;;  %v3632_v9 = vsel %vm3629_vm2, %v3631_v22, %v3627_v56  ;;  %5062 = vrcp.f32 %v3591_v0  ;;  %vm3641_vm6 = vmor %vm3639_vm15, %vm3640_vm3  ;;  %v3658_v20 = vand.u32 2147483647, %v3591_v0 }
 0x6ad   : > { %v3845_v45 = vmul.f32 %v3632_v9, %v6982_v2  ;;  %v3636_v54 = vsub.f32 1.0, %v3635_v27  ;;  %v3660_v6 = vand.u32 2147483648, %v3591_v0  ;;  %vm3654_vm13 = vweird.f32 %v3591_v0 }
 0x6ae   : > { %v3864_v46 = vadd.f32 %v3863_v7, %v3862_v4  ;;  %v3512_v60 = vpop.f32.mrf.mxu2  ;;  %vm3659_vm2 = vcmp.eq.f32.partialorder %v3658_v20, 8.507059e+37 }
 0x6af   : > { %v3867_v49 = vsel %vm7445_vm4, %v3845_v45, 0.0  ;;  %v3637_v23 = vmul.f32 %v5059_v37, %v3636_v54  ;;  %v7005_v48 = vadd.f32 %v6968_v58, %v3512_v60  ;;  %v3661_v51 = vor.u32 1.1754944e-38, %v3660_v6  ;;  %vm7446_vm4 = vmmov %vm7444_vm0 }
 0x6b0   : > { %v3868_v38 = vrot.slane %v3867_v49, 4  ;;  %v3865_v44 = vrot.slane %v3864_v46, 1 }
 0x6b1   : > { %v5061_v16 = vpop.eup %5060  ;;  %v3638_v43 = vadd.f32 %v5059_v37, %v3637_v23  ;;  %v4641_v29 = vmul.f32 -1.442695, %v7005_v48 }
 0x6b2   : > { %v5063_v21 = vpop.eup %5062  ;;  %v3869_v2 = vadd.f32 %v3868_v38, %v3867_v49  ;;  %v7007_v61 = vadd.f32 1.0, %v5061_v16  ;;  %v3866_v57 = vadd.f32 %v3865_v44, %v3864_v46 }
 0x6b3   : > { %v3642_v34 = vsel %vm3641_vm6, %v5059_v37, %v3638_v43  ;;  %v3650_v1 = vmul.f32 %v5063_v21, %v3591_v0  ;;  %vm3655_vm1 = vweird.f32 %v5063_v21 }
 0x6b4   : > { %v3870_v32 = vrot.slane %v3869_v2, 2  ;;  %v3647_v25 = vsel %vm3644_vm9, %v3646_v8, %v3642_v34  ;;  %5064 = vrcp.f32 %v7007_v61  ;;  %v3975_v13 = vpack.c.bf16 %v3866_v57, %v3866_v57  ;;  %vm3656_vm14 = vmor %vm3654_vm13, %vm3655_vm1 }
 0x6b5   : > { %v3846_v12 = vmul.f32 %v3647_v25, %v6988_v55  ;;  %v3651_v42 = vsub.f32 1.0, %v3650_v1  ;;  %5066 = vpow2.f32 %v4641_v29  ;;  %v3673_v31 = vand.u32 2147483647, %v7007_v61 }
 0x6b6   : > { %v3871_v24 = vadd.f32 %v3870_v32, %v3869_v2  ;;  %v3515_v39 = vpop.f32.mrf.mxu2  ;;  %v4007_v37 = vunpack.c.l.b16 %v3975_v13  ;;  %v3675_v0 = vand.u32 2147483648, %v7007_v61  ;;  %vm3669_vm15 = vweird.f32 %v7007_v61 }
 0x6b7   : > { %v3874_v53 = vsel %vm7444_vm0, %v3846_v12, 0.0  ;;  %v3652_v33 = vmul.f32 %v5063_v21, %v3651_v42  ;;  %v7014_v40 = vadd.f32 %v6968_v58, %v3515_v39  ;;  %vm3674_vm9 = vcmp.eq.f32.partialorder %v3673_v31, 8.507059e+37 }
 0x6b8   : > { %v3872_v3 = vrot.slane %v3871_v24, 1  ;;  %v3875_v17 = vrot.slane %v3874_v53, 4  ;;  %v3676_v23 = vor.u32 1.1754944e-38, %v3675_v0 }
 0x6b9   : > { %v3653_v52 = vadd.f32 %v5063_v21, %v3652_v33  ;;  %v4642_v55 = vmul.f32 -1.442695, %v7014_v40 }
 0x6ba   : > { %v5065_v18 = vpop.eup %5064  ;;  %v3873_v15 = vadd.f32 %v3872_v3, %v3871_v24  ;;  %v3876_v14 = vadd.f32 %v3875_v17, %v3874_v53 }
 0x6bb   : > { %v3657_v63 = vsel %vm3656_vm14, %v5063_v21, %v3653_v52  ;;  %v3665_v28 = vmul.f32 %v5065_v18, %v7007_v61  ;;  %5068 = vpow2.f32 %v4642_v55  ;;  %v5067_v5 = vpop.eup %5066  ;;  %vm3670_vm3 = vweird.f32 %v5065_v18 }
 0x6bc   : > { %v3976_v26 = vpack.c.bf16 %v3873_v15, %v3873_v15  ;;  %v3877_v59 = vrot.slane %v3876_v14, 2  ;;  %v3662_v19 = vsel %vm3659_vm2, %v3661_v51, %v3657_v63  ;;  %v3593_v62 = vadd.f32 1.0, %v5067_v5  ;;  %vm3671_vm6 = vmor %vm3669_vm15, %vm3670_vm3 }
 0x6bd   : > { %v3847_v47 = vmul.f32 %v3662_v19, %v6993_v41  ;;  %v3666_v30 = vsub.f32 1.0, %v3665_v28  ;;  %vm7447_vm15 = vmmov %vm7444_vm0 }
 0x6be   : > { %v4008_v4 = vunpack.c.l.b16 %v3976_v26  ;;  %v3878_v22 = vadd.f32 %v3877_v59, %v3876_v14  ;;  %v3517_v56 = vpop.f32.mrf.mxu2  ;;  %5070 = vrcp.f32 %v3593_v62  ;;  %v3688_v20 = vand.u32 2147483647, %v3593_v62 }
 0x6bf   : > { %v3881_v27 = vsel %vm7446_vm4, %v3847_v47, 0.0  ;;  %v3667_v7 = vmul.f32 %v5065_v18, %v3666_v30  ;;  %v7025_v46 = vadd.f32 %v6968_v58, %v3517_v56  ;;  %v3690_v57 = vand.u32 2147483648, %v3593_v62 }
 0x6c0   : > { %v4023_v9 = vsel %vm2338_vm12, %v4008_v4, %v4007_v37  ;;  %v3879_v45 = vrot.slane %v3878_v22, 1  ;;  %v3882_v54 = vrot.slane %v3881_v27, 4  ;;  %vm3684_vm13 = vweird.f32 %v3593_v62  ;;  %v4654_v4 = vld [vmem:[%s7335_s4 + $0x1a0] sm:$0xf] }
 0x6c1   : > { %v5069_v41 = vpop.eup %5068  ;;  %v3668_v35 = vadd.f32 %v5065_v18, %v3667_v7  ;;  %v4643_v16 = vmul.f32 -1.442695, %v7025_v46  ;;  %vm3689_vm2 = vcmp.eq.f32.partialorder %v3688_v20, 8.507059e+37  ;;  %v3691_v55 = vor.u32 1.1754944e-38, %v3690_v57 }
 0x6c2   : > { %v3880_v60 = vadd.f32 %v3879_v45, %v3878_v22  ;;  %v3883_v49 = vadd.f32 %v3882_v54, %v3881_v27  ;;  %v3594_v11 = vadd.f32 1.0, %v5069_v41  ;;  %v4701_v22 = vld [vmem:[%s7335_s4 + $0x1a4] sm:$0xf0] }
 0x6c3   : > { %v3672_v38 = vsel %vm3671_vm6, %v5065_v18, %v3668_v35  ;;  %v4655_v7 = vor.u32 %v4701_v22, %v4654_v4 }
 0x6c4   : > { %v3977_v43 = vpack.c.bf16 %v3880_v60, %v3880_v60  ;;  %v3884_v8 = vrot.slane %v3883_v49, 2  ;;  %v3677_v21 = vsel %vm3674_vm9, %v3676_v23, %v3672_v38  ;;  %5072 = vrcp.f32 %v3594_v11  ;;  %v5071_v44 = vpop.eup %5070 }
 0x6c5   : > { %v3848_v2 = vmul.f32 %v3677_v21, %v6999_v36  ;;  %v3680_v34 = vmul.f32 %v5071_v44, %v3593_v62  ;;  %5074 = vpow2.f32 %v4643_v16  ;;  %vm3685_vm1 = vweird.f32 %v5071_v44  ;;  %4054 = vmatpush.bf16.msrb.mxu0 %v4655_v7 }
 0x6c6   : > { %v4009_v61 = vunpack.c.l.b16 %v3977_v43  ;;  %v3885_v29 = vadd.f32 %v3884_v8, %v3883_v49  ;;  %vm3686_vm14 = vmor %vm3684_vm13, %vm3685_vm1  ;;  %v3705_v13 = vand.u32 2147483648, %v3594_v11  ;;  %v3703_v26 = vand.u32 2147483647, %v3594_v11 }
 0x6c7   : > { %v3888_v1 = vsel %vm7444_vm0, %v3848_v2, 0.0  ;;  %v3681_v42 = vsub.f32 1.0, %v3680_v34  ;;  %vm3699_vm3 = vweird.f32 %v3594_v11 }
 0x6c8   : > { %v4024_v32 = vsel %vm2340_vm10, %v4009_v61, %v4023_v9  ;;  %v3886_v25 = vrot.slane %v3885_v29, 1  ;;  %v3889_v12 = vrot.slane %v3888_v1, 4  ;;  %v3706_v37 = vor.u32 1.1754944e-38, %v3705_v13 }
 0x6c9   : > { %v3682_v53 = vmul.f32 %v5071_v44, %v3681_v42  ;;  %vm3704_vm9 = vcmp.eq.f32.partialorder %v3703_v26, 8.507059e+37 }
 0x6ca   : > { %v5073_v24 = vpop.eup %5072  ;;  %v3887_v6 = vadd.f32 %v3886_v25, %v3885_v29  ;;  %v3890_v39 = vadd.f32 %v3889_v12, %v3888_v1 }
 0x6cb   : > { %v3695_v33 = vmul.f32 %v5073_v24, %v3594_v11  ;;  %v3683_v17 = vadd.f32 %v5071_v44, %v3682_v53  ;;  %v5075_v52 = vpop.eup %5074  ;;  %vm3700_vm4 = vweird.f32 %v5073_v24 }
 0x6cc   : > { %v3978_v36 = vpack.c.bf16 %v3887_v6, %v3887_v6  ;;  %v3891_v3 = vrot.slane %v3890_v39, 2  ;;  %v3595_v63 = vadd.f32 1.0, %v5075_v52  ;;  %vm3701_vm6 = vmor %vm3699_vm3, %vm3700_vm4  ;;  %vm7449_vm3 = vcmask 1046534  }
 0x6cd   : > { %v3696_v18 = vsub.f32 1.0, %v3695_v33  ;;  %v3687_v51 = vsel %vm3686_vm14, %v5071_v44, %v3683_v17  ;;  %vm7448_vm4 = vmmov %vm7444_vm0 }
 0x6ce   : > { %v4010_v15 = vunpack.c.l.b16 %v3978_v36  ;;  %v3892_v14 = vadd.f32 %v3891_v3, %v3890_v39  ;;  %v3692_v28 = vsel %vm3689_vm2, %v3691_v55, %v3687_v51  ;;  %5076 = vrcp.f32 %v3595_v63 }
 0x6cf   : > { %v3697_v5 = vmul.f32 %v5073_v24, %v3696_v18  ;;  %v3849_v47 = vmul.f32 %v3692_v28, %v7005_v48  ;;  %v3720_v8 = vand.u32 2147483648, %v3595_v63  ;;  %v3718_v2 = vand.u32 2147483647, %v3595_v63 }
 0x6d0   : > { %v4025_v59 = vsel %vm2342_vm7, %v4010_v15, %v4024_v32  ;;  %v3893_v19 = vrot.slane %v3892_v14, 1  ;;  %vm3714_vm13 = vweird.f32 %v3595_v63 }
 0x6d1   : > { %v3698_v30 = vadd.f32 %v5073_v24, %v3697_v5  ;;  %v3895_v62 = vsel %vm7447_vm15, %v3849_v47, 0.0  ;;  %v3721_v1 = vor.u32 1.1754944e-38, %v3720_v8  ;;  %vm3719_vm2 = vcmp.eq.f32.partialorder %v3718_v2, 8.507059e+37 }
 0x6d2   : > { %v3894_v31 = vadd.f32 %v3893_v19, %v3892_v14  ;;  %v3896_v0 = vrot.slane %v3895_v62, 4  ;;  %vm7450_vm15 = vcmask 1047559  }
 0x6d3   : > { %v3702_v56 = vsel %vm3701_vm6, %v5073_v24, %v3698_v30 }
 0x6d4   : > { %v3979_v48 = vpack.c.bf16 %v3894_v31, %v3894_v31  ;;  %v3707_v27 = vsel %vm3704_vm9, %v3706_v37, %v3702_v56  ;;  %v3897_v9 = vadd.f32 %v3896_v0, %v3895_v62  ;;  %v5077_v54 = vpop.eup %5076 }
 0x6d5   : > { %v3850_v45 = vmul.f32 %v3707_v27, %v7014_v40  ;;  %v3710_v49 = vmul.f32 %v5077_v54, %v3595_v63  ;;  %vm3715_vm1 = vweird.f32 %v5077_v54 }
 0x6d6   : > { %v4011_v41 = vunpack.c.l.b16 %v3979_v48  ;;  %v3898_v35 = vrot.slane %v3897_v9, 2  ;;  %vm3716_vm14 = vmor %vm3714_vm13, %vm3715_vm1 }
 0x6d7   : > { %v3902_v60 = vsel %vm7444_vm0, %v3850_v45, 0.0  ;;  %v3711_v16 = vsub.f32 1.0, %v3710_v49 }
 0x6d8   : > { %v4026_v23 = vsel %vm2344_vm8, %v4011_v41, %v4025_v59  ;;  %v3903_v11 = vrot.slane %v3902_v60, 4  ;;  %v3899_v38 = vadd.f32 %v3898_v35, %v3897_v9 }
 0x6d9   : > { %v3712_v44 = vmul.f32 %v5077_v54, %v3711_v16 }
 0x6da   : > { %v3904_v43 = vadd.f32 %v3903_v11, %v3902_v60  ;;  %v3900_v21 = vrot.slane %v3899_v38, 1 }
 0x6db   : > { %v3713_v29 = vadd.f32 %v5077_v54, %v3712_v44 }
 0x6dc   : > { %v3905_v61 = vrot.slane %v3904_v43, 2  ;;  %v3901_v40 = vadd.f32 %v3900_v21, %v3899_v38 }
 0x6dd   : > { %v3717_v25 = vsel %vm3716_vm14, %v5077_v54, %v3713_v29 }
 0x6de   : > { %v3906_v34 = vadd.f32 %v3905_v61, %v3904_v43  ;;  %v3980_v32 = vpack.c.bf16 %v3901_v40, %v3901_v40  ;;  %v3722_v42 = vsel %vm3719_vm2, %v3721_v1, %v3717_v25 }
 0x6df   : > { %v3851_v57 = vmul.f32 %v3722_v42, %v7025_v46 }
 0x6e0   : > { %v3907_v12 = vrot.slane %v3906_v34, 1  ;;  %v4012_v20 = vunpack.c.l.b16 %v3980_v32 }
 0x6e1   : > { %v3909_v39 = vsel %vm7448_vm4, %v3851_v57, 0.0 }
 0x6e2   : > { %v3908_v24 = vadd.f32 %v3907_v12, %v3906_v34  ;;  %v4027_v6 = vsel %vm2346_vm11, %v4012_v20, %v4026_v23  ;;  %v3910_v33 = vrot.slane %v3909_v39, 4 }
 0x6e4   : > { %v3981_v53 = vpack.c.bf16 %v3908_v24, %v3908_v24  ;;  %v3911_v3 = vadd.f32 %v3910_v33, %v3909_v39 }
 0x6e6   : > { %v4013_v36 = vunpack.c.l.b16 %v3981_v53  ;;  %v3912_v52 = vrot.slane %v3911_v3, 2 }
 0x6e8   : > { %v4028_v17 = vsel %vm7449_vm3, %v4013_v36, %v4027_v6  ;;  %v3913_v55 = vadd.f32 %v3912_v52, %v3911_v3 }
 0x6ea   : > { %v3914_v18 = vrot.slane %v3913_v55, 1  ;;  %v3520_v13 = vpop.f32.mrf.mxu2 }
 0x6eb   : > { %v7048_v46 = vadd.f32 %v6968_v58, %v3520_v13 }
 0x6ec   : > { %v3915_v15 = vadd.f32 %v3914_v18, %v3913_v55 }
 0x6ed   : > { %v4644_v26 = vmul.f32 -1.442695, %v7048_v46 }
 0x6ee   : > { %v3982_v14 = vpack.c.bf16 %v3915_v15, %v3915_v15 }
 0x6ef   : > { %5078 = vpow2.f32 %v4644_v26 }
 0x6f0   : > { %v4014_v51 = vunpack.c.l.b16 %v3982_v14 }
 0x6f2   : > { %v3522_v63 = vpop.f32.mrf.mxu2  ;;  %v7051_v28 = vsel %vm7450_vm15, %v4014_v51, %v4028_v17 }
 0x6f3   : > { %v7054_v5 = vadd.f32 %v6968_v58, %v3522_v63 }
 0x6f5   : > { %v4645_v59 = vmul.f32 -1.442695, %v7054_v5  ;;  %v5079_v31 = vpop.eup %5078 }
 0x6f6   : > { %v7062_v37 = vadd.f32 1.0, %v5079_v31 }
 0x6f7   : > { %5080 = vpow2.f32 %v4645_v59 }
 0x6f8   : > { %vm3729_vm6 = vweird.f32 %v7062_v37  ;;  %v3733_v42 = vand.u32 2147483647, %v7062_v37  ;;  %v3735_v24 = vand.u32 2147483648, %v7062_v37 }
 0x6fa   : > { %v3525_v19 = vpop.f32.mrf.mxu2  ;;  %vm7134_vm2 = vcmp.eq.f32.partialorder %v3733_v42, 8.507059e+37  ;;  %v3736_v63 = vor.u32 1.1754944e-38, %v3735_v24 }
 0x6fb   : > { %v7059_v47 = vadd.f32 %v6968_v58, %v3525_v19 }
 0x6fd   : > { %v4646_v30 = vmul.f32 -1.442695, %v7059_v47  ;;  %v5081_v62 = vpop.eup %5080 }
 0x6fe   : > { %v7067_v0 = vadd.f32 1.0, %v5081_v62 }
 0x6ff   : > { %5082 = vpow2.f32 %v4646_v30 }
 0x700   : > { %5084 = vrcp.f32 %v7062_v37  ;;  %v3748_v6 = vand.u32 2147483647, %v7067_v0  ;;  %v3750_v39 = vand.u32 2147483648, %v7067_v0  ;;  %vm3744_vm14 = vweird.f32 %v7067_v0 }
 0x702   : > { %v3527_v4 = vpop.f32.mrf.mxu2  ;;  %vm7144_vm3 = vcmp.eq.f32.partialorder %v3748_v6, 8.507059e+37  ;;  %v3751_v30 = vor.u32 1.1754944e-38, %v3750_v39 }
 0x703   : > { %v7065_v22 = vadd.f32 %v6968_v58, %v3527_v4 }
 0x705   : > { %v5083_v56 = vpop.eup %5082  ;;  %v4647_v48 = vmul.f32 -1.442695, %v7065_v22 }
 0x706   : > { %v7071_v27 = vadd.f32 1.0, %v5083_v56  ;;  %v7078_v45 = vpop.eup %5084 }
 0x707   : > { %5086 = vpow2.f32 %v4647_v48  ;;  %v3725_v23 = vmul.f32 %v7078_v45, %v7062_v37  ;;  %vm3730_vm9 = vweird.f32 %v7078_v45 }
 0x708   : > { %5088 = vrcp.f32 %v7067_v0  ;;  %v3763_v52 = vand.u32 2147483647, %v7071_v27  ;;  %v3765_v55 = vand.u32 2147483648, %v7071_v27  ;;  %vm7127_vm13 = vmor %vm3729_vm6, %vm3730_vm9  ;;  %vm3759_vm15 = vweird.f32 %v7071_v27 }
 0x709   : > { %5090 = vrcp.f32 %v7071_v27  ;;  %v3726_v21 = vsub.f32 1.0, %v3725_v23 }
 0x70a   : > { %v3530_v7 = vpop.f32.mrf.mxu2  ;;  %vm7164_vm9 = vcmp.eq.f32.partialorder %v3763_v52, 8.507059e+37  ;;  %v3766_v48 = vor.u32 1.1754944e-38, %v3765_v55 }
 0x70b   : > { %v7076_v9 = vadd.f32 %v6968_v58, %v3530_v7  ;;  %v3727_v1 = vmul.f32 %v7078_v45, %v3726_v21 }
 0x70d   : > { %v5087_v54 = vpop.eup %5086  ;;  %v4648_v41 = vmul.f32 -1.442695, %v7076_v9  ;;  %v3728_v53 = vadd.f32 %v7078_v45, %v3727_v1 }
 0x70e   : > { %v7081_v35 = vpop.eup %5088  ;;  %v7083_v60 = vadd.f32 1.0, %v5087_v54 }
 0x70f   : > { %v7085_v49 = vpop.eup %5090  ;;  %5092 = vpow2.f32 %v4648_v41  ;;  %v3740_v11 = vmul.f32 %v7081_v35, %v7067_v0  ;;  %vm3745_vm0 = vweird.f32 %v7081_v35  ;;  %v3732_v4 = vsel %vm7127_vm13, %v7078_v45, %v3728_v53 }
 0x710   : > { %5094 = vrcp.f32 %v7083_v60  ;;  %v3755_v38 = vmul.f32 %v7085_v49, %v7071_v27  ;;  %vm3760_vm1 = vweird.f32 %v7085_v49  ;;  %vm7140_vm4 = vmor %vm3744_vm14, %vm3745_vm0  ;;  %v3780_v45 = vand.u32 2147483648, %v7083_v60 }
 0x711   : > { %v3741_v44 = vsub.f32 1.0, %v3740_v11  ;;  %vm7154_vm6 = vmor %vm3759_vm15, %vm3760_vm1  ;;  %vm3774_vm1 = vweird.f32 %v7083_v60 }
 0x712   : > { %v3532_v16 = vpop.f32.mrf.mxu2  ;;  %v3756_v61 = vsub.f32 1.0, %v3755_v38 }
 0x713   : > { %v7095_v43 = vadd.f32 %v6968_v58, %v3532_v16  ;;  %v3742_v32 = vmul.f32 %v7081_v35, %v3741_v44 }
 0x714   : > { %v3757_v25 = vmul.f32 %v7085_v49, %v3756_v61 }
 0x715   : > { %v5093_v8 = vpop.eup %5092  ;;  %v4649_v29 = vmul.f32 -1.442695, %v7095_v43  ;;  %v3743_v33 = vadd.f32 %v7081_v35, %v3742_v32 }
 0x716   : > { %v7097_v2 = vpop.eup %5094  ;;  %v7099_v40 = vadd.f32 1.0, %v5093_v8  ;;  %v3758_v17 = vadd.f32 %v7085_v49, %v3757_v25 }
 0x717   : > { %v3770_v34 = vmul.f32 %v7097_v2, %v7083_v60  ;;  %v3747_v19 = vsel %vm7140_vm4, %v7081_v35, %v3743_v33  ;;  %vm3775_vm0 = vweird.f32 %v7097_v2 }
 0x718   : > { %5096 = vrcp.f32 %v7099_v40  ;;  %v3762_v0 = vsel %vm7154_vm6, %v7085_v49, %v3758_v17  ;;  %v3752_v41 = vsel %vm7144_vm3, %v3751_v30, %v3747_v19  ;;  %v3778_v49 = vand.u32 2147483647, %v7083_v60  ;;  %vm7181_vm14 = vmor %vm3774_vm1, %vm3775_vm0 }
 0x719   : > { %5098 = vpow2.f32 %v4649_v29  ;;  %v3771_v20 = vsub.f32 1.0, %v3770_v34  ;;  %v3795_v11 = vand.u32 2147483648, %v7099_v40  ;;  %v3767_v16 = vsel %vm7164_vm9, %v3766_v48, %v3762_v0 }
 0x71a   : > { %v3535_v12 = vpop.f32.mrf.mxu2  ;;  %vm3789_vm4 = vweird.f32 %v7099_v40  ;;  %v3793_v21 = vand.u32 2147483647, %v7099_v40  ;;  %v3737_v60 = vsel %vm7134_vm2, %v3736_v63, %v3732_v4  ;;  %v3853_v29 = vmul.f32 %v3752_v41, %v7054_v5 }
 0x71b   : > { %v7111_v57 = vadd.f32 %v6968_v58, %v3535_v12  ;;  %v3772_v13 = vmul.f32 %v7097_v2, %v3771_v20  ;;  %v3781_v34 = vor.u32 1.1754944e-38, %v3780_v45  ;;  %vm3779_vm15 = vcmp.eq.f32.partialorder %v3778_v49, 8.507059e+37 }
 0x71c   : > { %v3796_v25 = vor.u32 1.1754944e-38, %v3795_v11  ;;  %vm3794_vm2 = vcmp.eq.f32.partialorder %v3793_v21, 8.507059e+37  ;;  %v3852_v20 = vmul.f32 %v3737_v60, %v7048_v46  ;;  %vm7465_vm6 = vcmask 130048  }
 0x71d   : > { %v4650_v36 = vmul.f32 -1.442695, %v7111_v57  ;;  %v3773_v7 = vadd.f32 %v7097_v2, %v3772_v13  ;;  %v3923_v24 = vsel %vm7465_vm6, %v3853_v29, 0.0  ;;  %vm7466_vm9 = vmmov %vm7465_vm6 }
 0x71e   : > { %v5097_v3 = vpop.eup %5096  ;;  %vm7467_vm1 = vmmov %vm7465_vm6  ;;  %v3924_v52 = vrot.slane %v3923_v24, 4 }
 0x71f   : > { %v3785_v15 = vmul.f32 %v5097_v3, %v7099_v40  ;;  %5100 = vpow2.f32 %v4650_v36  ;;  %v5099_v14 = vpop.eup %5098  ;;  %vm3790_vm13 = vweird.f32 %v5097_v3  ;;  %v3854_v40 = vmul.f32 %v3767_v16, %v7059_v47 }
 0x720   : > { %v3601_v37 = vadd.f32 1.0, %v5099_v14  ;;  %vm3791_vm3 = vmor %vm3789_vm4, %vm3790_vm13  ;;  %v3916_v17 = vsel %vm7467_vm1, %v3852_v20, 0.0  ;;  %v3925_v56 = vadd.f32 %v3924_v52, %v3923_v24 }
 0x721   : > { %v3786_v62 = vsub.f32 1.0, %v3785_v15  ;;  %v3930_v5 = vsel %vm7466_vm9, %v3854_v40, 0.0  ;;  %v3917_v31 = vrot.slane %v3916_v17, 4  ;;  %vm7470_vm9 = vmmov %vm7467_vm1 }
 0x722   : > { %v3537_v27 = vpop.f32.mrf.mxu2  ;;  %5102 = vrcp.f32 %v3601_v37  ;;  %v3808_v53 = vand.u32 2147483647, %v3601_v37  ;;  %v3810_v33 = vand.u32 2147483648, %v3601_v37  ;;  %v3931_v55 = vrot.slane %v3930_v5, 4 }
 0x723   : > { %v3787_v54 = vmul.f32 %v5097_v3, %v3786_v62  ;;  %v7177_v38 = vadd.f32 %v6968_v58, %v3537_v27  ;;  %v3777_v58 = vsel %vm7181_vm14, %v7097_v2, %v3773_v7  ;;  %vm3804_vm13 = vweird.f32 %v3601_v37  ;;  %vm7468_vm14 = vmmov %vm7467_vm1 }
 0x724   : > { %v3782_v12 = vsel %vm3779_vm15, %v3781_v34, %v3777_v58  ;;  %vm7469_vm15 = vmmov %vm7467_vm1  ;;  %v3932_v7 = vadd.f32 %v3931_v55, %v3930_v5  ;;  %v3918_v45 = vadd.f32 %v3917_v31, %v3916_v17  ;;  %v3926_v16 = vrot.slane %v3925_v56, 2 }
 0x725   : > { %v5101_v35 = vpop.eup %5100  ;;  %v3788_v23 = vadd.f32 %v5097_v3, %v3787_v54  ;;  %v4651_v61 = vmul.f32 -1.442695, %v7177_v38  ;;  %v3855_v39 = vmul.f32 %v3782_v12, %v7065_v22  ;;  %v3811_v22 = vor.u32 1.1754944e-38, %v3810_v33 }
 0x726   : > { %v7187_v44 = vadd.f32 1.0, %v5101_v35  ;;  %v3933_v21 = vrot.slane %v3932_v7, 2  ;;  %v3919_v58 = vrot.slane %v3918_v45, 2 }
 0x727   : > { %v3792_v1 = vsel %vm3791_vm3, %v5097_v3, %v3788_v23  ;;  %v3937_v15 = vsel %vm7468_vm14, %v3855_v39, 0.0  ;;  %vm3809_vm3 = vcmp.eq.f32.partialorder %v3808_v53, 8.507059e+37 }
 0x728   : > { %5104 = vrcp.f32 %v7187_v44  ;;  %v5103_v32 = vpop.eup %5102  ;;  %v3797_v2 = vsel %vm3794_vm2, %v3796_v25, %v3792_v1  ;;  %v3825_v63 = vand.u32 2147483648, %v7187_v44  ;;  %v3823_v30 = vand.u32 2147483647, %v7187_v44 }
 0x729   : > { %v3800_v42 = vmul.f32 %v5103_v32, %v3601_v37  ;;  %5106 = vpow2.f32 %v4651_v61  ;;  %v3856_v47 = vmul.f32 %v3797_v2, %v7076_v9  ;;  %vm3805_vm0 = vweird.f32 %v5103_v32 }
 0x72a   : > { %vm3806_vm4 = vmor %vm3804_vm13, %vm3805_vm0  ;;  %v3938_v62 = vrot.slane %v3937_v15, 4  ;;  %vm3819_vm6 = vweird.f32 %v7187_v44  ;;  %v3826_v27 = vor.u32 1.1754944e-38, %v3825_v63  ;;  %vm3824_vm1 = vcmp.eq.f32.partialorder %v3823_v30, 8.507059e+37 }
 0x72b   : > { %v3801_v6 = vsub.f32 1.0, %v3800_v42  ;;  %v3944_v51 = vsel %vm7469_vm15, %v3856_v47, 0.0  ;;  %vm7471_vm13 = vmmov %vm7470_vm9  ;;  %v3934_v42 = vadd.f32 %v3933_v21, %v3932_v7  ;;  %v3920_v2 = vadd.f32 %v3919_v58, %v3918_v45 }
 0x72c   : > { %v3945_v4 = vrot.slane %v3944_v51, 4  ;;  %v3939_v35 = vadd.f32 %v3938_v62, %v3937_v15 }
 0x72d   : > { %v3802_v3 = vmul.f32 %v5103_v32, %v3801_v6  ;;  %v3935_v47 = vrot.slane %v3934_v42, 1 }
 0x72e   : > { %v5105_v36 = vpop.eup %5104  ;;  %v3946_v23 = vadd.f32 %v3945_v4, %v3944_v51  ;;  %v3940_v61 = vrot.slane %v3939_v35, 2 }
 0x72f   : > { %v3815_v46 = vmul.f32 %v5105_v36, %v7187_v44  ;;  %v3803_v18 = vadd.f32 %v5103_v32, %v3802_v3  ;;  %v5107_v13 = vpop.eup %5106  ;;  %vm3820_vm2 = vweird.f32 %v5105_v36 }
 0x730   : > { %v3603_v26 = vadd.f32 1.0, %v5107_v13  ;;  %vm3821_vm0 = vmor %vm3819_vm6, %vm3820_vm2  ;;  %v3947_v34 = vrot.slane %v3946_v23, 2  ;;  %v3941_v24 = vadd.f32 %v3940_v61, %v3939_v35  ;;  %vm7473_vm6 = vcmask 1046534  }
 0x731   : > { %v3816_v14 = vsub.f32 1.0, %v3815_v46  ;;  %v3807_v9 = vsel %vm3806_vm4, %v5103_v32, %v3803_v18  ;;  %v3927_v32 = vadd.f32 %v3926_v16, %v3925_v56  ;;  %v3921_v46 = vrot.slane %v3920_v2, 1  ;;  %vm7472_vm2 = vmmov %vm7470_vm9 }
 0x732   : > { %v3812_v59 = vsel %vm3809_vm3, %v3811_v22, %v3807_v9  ;;  %5108 = vrcp.f32 %v3603_v26  ;;  %v3840_v12 = vand.u32 2147483648, %v3603_v26  ;;  %v3948_v5 = vadd.f32 %v3947_v34, %v3946_v23 }
 0x733   : > { %v3817_v19 = vmul.f32 %v5105_v36, %v3816_v14  ;;  %v3857_v37 = vmul.f32 %v3812_v59, %v7095_v43  ;;  %vm3834_vm4 = vweird.f32 %v3603_v26  ;;  %v3928_v53 = vrot.slane %v3927_v32, 1 }
 0x734   : > { %v3942_v52 = vrot.slane %v3941_v24, 1  ;;  %v3949_v18 = vrot.slane %v3948_v5, 1  ;;  %v3936_v14 = vadd.f32 %v3935_v47, %v3934_v42  ;;  %v3922_v63 = vadd.f32 %v3921_v46, %v3920_v2 }
 0x735   : > { %v3818_v0 = vadd.f32 %v5105_v36, %v3817_v19  ;;  %v3951_v48 = vsel %vm7470_vm9, %v3857_v37, 0.0  ;;  %v3929_v15 = vadd.f32 %v3928_v53, %v3927_v32  ;;  %vm7474_vm9 = vcmask 1047559   ;;  %v4702_v53 = vld [vmem:[%s7335_s4 + $0x1b4] sm:$0xf0] }
 0x736   : > { %v3952_v54 = vrot.slane %v3951_v48, 4  ;;  %v3950_v19 = vadd.f32 %v3949_v18, %v3948_v5  ;;  %v3985_v37 = vpack.c.bf16 %v3936_v14, %v3936_v14 }
 0x737   : > { %v3822_v41 = vsel %vm3821_vm0, %v5105_v36, %v3818_v0  ;;  %v3841_v36 = vor.u32 1.1754944e-38, %v3840_v12  ;;  %v3984_v30 = vpack.c.bf16 %v3929_v15, %v3929_v15  ;;  %v3983_v0 = vpack.c.bf16 %v3922_v63, %v3922_v63  ;;  %v4775_v12 = vld [vmem:[%s7336_s5 + $0x70] ss:$0 sm:$0xff] }
 0x738   : > { %v3827_v49 = vsel %vm3824_vm1, %v3826_v27, %v3822_v41  ;;  %v5109_v11 = vpop.eup %5108  ;;  %v3953_v8 = vadd.f32 %v3952_v54, %v3951_v48  ;;  %v3987_v27 = vpack.c.bf16 %v3950_v19, %v3950_v19  ;;  %v4017_v41 = vunpack.c.l.b16 %v3985_v37 }
 0x739   : > { %v3858_v43 = vmul.f32 %v3827_v49, %v7111_v57  ;;  %v3830_v60 = vmul.f32 %v5109_v11, %v3603_v26  ;;  %vm3835_vm14 = vweird.f32 %v5109_v11  ;;  %v3838_v57 = vand.u32 2147483647, %v3603_v26 }
 0x73a   : > { %v3954_v40 = vrot.slane %v3953_v8, 2  ;;  %vm3836_vm3 = vmor %vm3834_vm4, %vm3835_vm14  ;;  %v3943_v26 = vadd.f32 %v3942_v52, %v3941_v24  ;;  %v4015_v35 = vunpack.c.l.b16 %v3983_v0 }
 0x73b   : > { %v3958_v44 = vsel %vm7471_vm13, %v3858_v43, 0.0  ;;  %v3831_v1 = vsub.f32 1.0, %v3830_v60  ;;  %vm3839_vm15 = vcmp.eq.f32.partialorder %v3838_v57, 8.507059e+37  ;;  %v4019_v43 = vunpack.c.l.b16 %v3987_v27 }
 0x73c   : > { %v3959_v29 = vrot.slane %v3958_v44, 4  ;;  %v3955_v33 = vadd.f32 %v3954_v40, %v3953_v8  ;;  %v3986_v56 = vpack.c.bf16 %v3943_v26, %v3943_v26 }
 0x73d   : > { %v3832_v20 = vmul.f32 %v5109_v11, %v3831_v1 }
 0x73e   : > { %v3960_v25 = vadd.f32 %v3959_v29, %v3958_v44  ;;  %v3956_v22 = vrot.slane %v3955_v33, 1  ;;  %v4018_v49 = vunpack.c.l.b16 %v3986_v56 }
 0x73f   : > { %v3833_v39 = vadd.f32 %v5109_v11, %v3832_v20 }
 0x740   : > { %v3961_v6 = vrot.slane %v3960_v25, 2  ;;  %v3957_v31 = vadd.f32 %v3956_v22, %v3955_v33 }
 0x741   : > { %v3837_v17 = vsel %vm3836_vm3, %v5109_v11, %v3833_v39  ;;  %vm7477_vm3 = vmmov %vm7472_vm2 }
 0x742   : > { %v3962_v3 = vadd.f32 %v3961_v6, %v3960_v25  ;;  %v3842_v55 = vsel %vm3839_vm15, %v3841_v36, %v3837_v17  ;;  %v3988_v7 = vpack.c.bf16 %v3957_v31, %v3957_v31  ;;  %v4073_v25 = vpop.f32.mrf.mxu3 }
 0x743   : > { %v3859_v13 = vmul.f32 %v3842_v55, %v7177_v38  ;;  %v4016_v38 = vunpack.c.l.b16 %v3984_v30 }
 0x744   : > { %v3963_v51 = vrot.slane %v3962_v3, 1  ;;  %v4020_v16 = vunpack.c.l.b16 %v3988_v7 }
 0x745   : > { %v3965_v9 = vsel %vm7472_vm2, %v3859_v13, 0.0  ;;  %v4030_v11 = vsel %vm2338_vm12, %v4016_v38, %v4015_v35  ;;  %vm7475_vm12 = vmmov %vm7472_vm2  ;;  %v4776_v35 = vld [vmem:[%s7336_s5 + $0x78] ss:$0 sm:$0xff] }
 0x746   : > { %v3966_v59 = vrot.slane %v3965_v9, 4  ;;  %v3964_v4 = vadd.f32 %v3963_v51, %v3962_v3  ;;  %v4031_v21 = vsel %vm2340_vm10, %v4017_v41, %v4030_v11  ;;  %v4154_v3 = vld [vmem:[%s7335_s4 + $0x1e0] sm:$0xf]  ;;  %vm7476_vm10 = vcmask 1043456  }
 0x747   : > { %v4032_v60 = vsel %vm2342_vm7, %v4018_v49, %v4031_v21  ;;  %v4162_v46 = vsel %vm7476_vm10, %v4154_v3, 0 }
 0x748   : > { %v3967_v62 = vadd.f32 %v3966_v59, %v3965_v9  ;;  %v3989_v45 = vpack.c.bf16 %v3964_v4, %v3964_v4  ;;  %v4033_v61 = vsel %vm2344_vm8, %v4019_v43, %v4032_v60  ;;  %4171 = vmatpush.bf16.msra.mxu3 %v4162_v46 }
 0x749   : > { %v4034_v29 = vsel %vm2346_vm11, %v4020_v16, %v4033_v61 }
 0x74a   : > { %v3968_v48 = vrot.slane %v3967_v62, 2  ;;  %v4021_v44 = vunpack.c.l.b16 %v3989_v45  ;;  %v4075_v24 = vpop.f32.mrf.mxu3 }
 0x74c   : > { %v3969_v54 = vadd.f32 %v3968_v48, %v3967_v62  ;;  %v4035_v1 = vsel %vm7473_vm6, %v4021_v44, %v4034_v29 }
 0x74e   : > { %v3970_v23 = vrot.slane %v3969_v54, 1 }
 0x750   : > { %v3971_v8 = vadd.f32 %v3970_v23, %v3969_v54 }
 0x752   : > { %v3990_v58 = vpack.c.bf16 %v3971_v8, %v3971_v8 }
 0x754   : > { %v4022_v34 = vunpack.c.l.b16 %v3990_v58 }
 0x756   : > { %v4036_v32 = vsel %vm7474_vm9, %v4022_v34, %v4035_v1 }
 0x757   : > { %v4037_v40 = vpack.c.b16 %v4036_v32, %v7051_v28  ;;  %v4662_v28 = vld [vmem:[%s7335_s4 + $0x1b0] sm:$0xf] }
 0x758   : > { %v4663_v33 = vor.u32 %v4702_v53, %v4662_v28 }
 0x759   : > { %4656 = vmatmul.msk.bf16.vlgmr.msrb.gmra.mxu0 %vm7475_vm12, %v4037_v40 }
 0x75a   : > { %4141 = vmatpush.bf16.msra.mxu0 %v4663_v33 }
 0x7d6   : > { %v4056_v42 = vpop.f32.mrf.mxu0 }
 0x7d7   : > { %v4074_v20 = vadd.f32 %v4073_v25, %v4056_v42 }
 0x7d9   : > { %v4080_v57 = vadd.f32 %v4775_v12, %v4074_v20 }
 0x7db   : > { %v4658_v2 = vmul.f32 -1.442695, %v4080_v57 }
 0x7dd   : > { %5110 = vpow2.f32 %v4658_v2 }
 0x7de   : > { %v4058_v6 = vpop.f32.mrf.mxu0 }
 0x7df   : > { %v4076_v5 = vadd.f32 %v4075_v24, %v4058_v6 }
 0x7e1   : > { %v4081_v39 = vadd.f32 %v4775_v12, %v4076_v5 }
 0x7e3   : > { %v5111_v36 = vpop.eup %5110  ;;  %v4659_v47 = vmul.f32 -1.442695, %v4081_v39 }
 0x7e4   : > { %v4088_v17 = vadd.f32 1.0, %v5111_v36 }
 0x7e5   : > { %5112 = vpow2.f32 %v4659_v47 }
 0x7e6   : > { %5114 = vrcp.f32 %v4088_v17  ;;  %v4101_v63 = vand.u32 2147483648, %v4088_v17  ;;  %vm4095_vm8 = vweird.f32 %v4088_v17  ;;  %v4099_v26 = vand.u32 2147483647, %v4088_v17 }
 0x7e8   : > { %v4102_v37 = vor.u32 1.1754944e-38, %v4101_v63  ;;  %vm4100_vm1 = vcmp.eq.f32.partialorder %v4099_v26, 8.507059e+37 }
 0x7eb   : > { %v5113_v52 = vpop.eup %5112 }
 0x7ec   : > { %v5115_v55 = vpop.eup %5114  ;;  %v4089_v18 = vadd.f32 1.0, %v5113_v52 }
 0x7ed   : > { %v4091_v13 = vmul.f32 %v5115_v55, %v4088_v17  ;;  %vm4096_vm7 = vweird.f32 %v5115_v55 }
 0x7ee   : > { %5116 = vrcp.f32 %v4089_v18  ;;  %vm4097_vm11 = vmor %vm4095_vm8, %vm4096_vm7  ;;  %v4116_v19 = vand.u32 2147483648, %v4089_v18  ;;  %v4114_v62 = vand.u32 2147483647, %v4089_v18  ;;  %vm4110_vm13 = vweird.f32 %v4089_v18 }
 0x7ef   : > { %v4092_v15 = vsub.f32 1.0, %v4091_v13 }
 0x7f0   : > { %v4117_v56 = vor.u32 1.1754944e-38, %v4116_v19  ;;  %vm4115_vm4 = vcmp.eq.f32.partialorder %v4114_v62, 8.507059e+37 }
 0x7f1   : > { %v4093_v22 = vmul.f32 %v5115_v55, %v4092_v15 }
 0x7f3   : > { %v4094_v51 = vadd.f32 %v5115_v55, %v4093_v22 }
 0x7f4   : > { %v5117_v14 = vpop.eup %5116 }
 0x7f5   : > { %v4106_v9 = vmul.f32 %v5117_v14, %v4089_v18  ;;  %v4098_v30 = vsel %vm4097_vm11, %v5115_v55, %v4094_v51  ;;  %vm4111_vm0 = vweird.f32 %v5117_v14 }
 0x7f6   : > { %v4103_v0 = vsel %vm4100_vm1, %v4102_v37, %v4098_v30  ;;  %vm4112_vm14 = vmor %vm4110_vm13, %vm4111_vm0 }
 0x7f7   : > { %v4107_v59 = vsub.f32 1.0, %v4106_v9  ;;  %v4120_v38 = vmul.f32 %v4103_v0, %v4080_v57 }
 0x7f9   : > { %v4108_v31 = vmul.f32 %v5117_v14, %v4107_v59 }
 0x7fb   : > { %v4109_v4 = vadd.f32 %v5117_v14, %v4108_v31 }
 0x7fd   : > { %v4113_v48 = vsel %vm4112_vm14, %v5117_v14, %v4109_v4 }
 0x7fe   : > { %v4118_v27 = vsel %vm4115_vm4, %v4117_v56, %v4113_v48 }
 0x7ff   : > { %v4121_v7 = vmul.f32 %v4118_v27, %v4081_v39 }
 0x801   : > { %v4124_v54 = vpack.c.bf16 %v4121_v7, %v4120_v38 }
 0x803   : > { %4664 = vmatmul.msk.bf16.vlgmr.msra.gmra.mxu0 %vm7477_vm3, %v4124_v54 }
 0x880   : > { %v4143_v41 = vpop.f32.mrf.mxu0 }
 0x881   : > { %v4148_v45 = vadd.f32 %v4143_v41, %v6399_v50 }
 0x883   : > { %v4152_v43 = vadd.f32 %v4776_v35, %v4148_v45 }
 0x888   : > { %v4145_v49 = vpop.f32.mrf.mxu0 }
 0x889   : > { %v4149_v23 = vadd.f32 %v4145_v49, %v6396_v10 }
 0x88b   : > { %v4153_v11 = vadd.f32 %v4776_v35, %v4149_v23 }
 0x88d   : > { %v4155_v16 = vpack.c.bf16 %v4153_v11, %v4152_v43 }
 0x88f   : > { %4665 = vmatmul.msk.bf16.vlgmr.msra.gmra.mxu3 %vm2758_vm5, %v4155_v16 }
 0x890   : > { %5150 = shalt.err (!%p5147_p3)
}
 0x891   : > { %s5249_s19 = smov 128   ;;  %s5250_s17 = smov 8  }
 0x892   : > { %4708 = dma.vmem_to_hbm [thread:$0]  (%p5336_p5), %s4234_s13, 256, %s4236_s26, %s7255_s10, %s5249_s19, %s5249_s19, %s5250_s17  }
 0x893   : > { %s4249_s2 = scalar_lea.hbm %s7339_s8, %s7248_s21  ;;  %s5171_s20 = scalar_lea.hbm %s7339_s8, 32 }
 0x894   : > { %s4252_s0 = sshll.u32 %s4249_s2, 4  ;;  %s4253_s0 = int_to_ptr.hbm [resolvable:$true] %s4252_s0 }
 0x895   : > { %s5165_s1 = sshra.s32 %s4253_s0, 4  ;;  %s5166_s1 = int_to_ptr.hbm [resolvable:$true] %s5165_s1 }
 0x896   : > { %s5167_s3 = scalar_lea.hbm %s5166_s1, 16  ;;  %p5172_p9 = scmp.lt.s32.totalorder %s5166_s1, %s7339_s8 }
 0x897   : > { %p5168_p4 = scmp.ne.s32.totalorder %s5166_s1, %s5167_s3  ;;  %p5173_p10 = scmp.lt.s32.totalorder %s5171_s20, %s5167_s3 }
 0x899   : > { %p5169_p7 = pnand %p5168_p4, %p5336_p5  ;;  %p5174_p11 = por %p5173_p10, %p5172_p9 }
 0x89b   : > { %p5170_p8 = pneg %p5169_p7 }
 0x89d   : > { %p5175_p12 = pnand %p5174_p11, %p5170_p8 }
 0x89f   : > { %5178 = shalt.err (!%p5175_p12)
}
 0x8a0   : > { %4709 = dma.vmem_to_hbm [thread:$0]  (%p5336_p5), %s4251_s24, 256, %s4253_s0, %s7255_s10, %s5249_s19, %s5249_s19, %s5250_s17   ;;  %vm4178_vm5 = vcmask 162816  }
 0x8a1   : > { %v4777_v10 = vld [vmem:[%s7336_s5 + $0x88] ss:$0 sm:$0xff]  ;;  %s353_s23 = scalar_lea.vmem [#allocation2], %s6353_s18  ;;  %s4215_s3 = scalar_lea.hbm %s7337_s6, %s7248_s21 }
 0x8a2   : > { %s4216_s12 = sshll.u32 %s353_s23, 4  ;;  %s4218_s22 = sshll.u32 %s4215_s3, 4  ;;  %s4217_s12 = int_to_ptr.vmem [resolvable:$true] %s4216_s12  ;;  %s4219_s22 = int_to_ptr.hbm [resolvable:$true] %s4218_s22 }
 0x8a3   : > { %s7478_s10 = sand.u32 1, %s5237_s28   ;;  %s5193_s0 = sshra.s32 %s4219_s22, 4  ;;  %s5194_s0 = int_to_ptr.hbm [resolvable:$true] %s5193_s0 }
 0x8a4   : > { %s4194_s24 = scalar_lea.sflag [#allocation3], %s7478_s10  ;;  %s5195_s20 = scalar_lea.hbm %s5194_s0, 16 }
 0x8a5   : > { %p5196_p13 = scmp.ne.s32.totalorder %s5194_s0, %s5195_s20  ;;  %s5199_s21 = scalar_lea.hbm %s7337_s6, 32 }
 0x8a6   : > { %p5200_p2 = scmp.lt.s32.totalorder %s5194_s0, %s7337_s6  ;;  %p5201_p3 = scmp.lt.s32.totalorder %s5199_s21, %s5195_s20 }
 0x8a7   : > { %p5197_p0 = pnand %p5196_p13, %p5336_p5 }
 0x8a8   : > { %p5202_p4 = por %p5201_p3, %p5200_p2 }
 0x8a9   : > { %p5198_p1 = pneg %p5197_p0 }
 0x8ab   : > { %p5203_p7 = pnand %p5202_p4, %p5198_p1 }
 0x912   : > { %v4173_v50 = vpop.f32.mrf.mxu3 }
 0x913   : > { %v4174_v8 = vadd.f32 %v4777_v10, %v4173_v50 }
 0x915   : > { %4179 = vst.msk [vmem:[%s353_s23] sm:$0xff] %vm4178_vm5, %v4174_v8 }
 0x91a   : > { %v4175_v21 = vpop.f32.mrf.mxu3 }
 0x91b   : > { %v4176_v44 = vadd.f32 %v4777_v10, %v4175_v21 }
 0x91d   : > { %4180 = vst.msk [vmem:[%s353_s23 + $0x8] sm:$0xff] %vm4178_vm5, %v4176_v44 }
 0x91e   : > { %5206 = shalt.err (!%p5203_p7)
}
 0x91f   : > { %4707 = dma.vmem_to_hbm [thread:$0]  (%p5336_p5), %s4217_s12, 256, %s4219_s22, %s4194_s24, %s5249_s19, %s5249_s19, %s5250_s17  }
 0x920 PF: > { %p4723_p8 = scmp.ge.s32.totalorder %s5245_s30, 2  ;;  %s4267_s25 = sand.u32 1, %s5233_s27  }
 0x921   : > { %s4268_s23 = scalar_lea.sflag [#allocation3], %s4267_s25 }
 0x922   : > { %p4714_p9 = pnand %p4723_p8, %p5340_p6 }
 0x924   : > { %p4715_p10 = pneg %p4714_p9 }
 0x926   : > { %5224 = dma.done.wait (%p4715_p10), %s4268_s23, 256  }
 0x927   : > { %5226 = vsyncadd (%p4715_p10), %s4268_s23, 4294967040  ;;  %s7479_s2 = sadd.s32 4294967294, %s5245_s30  }
 0x928   : > { %s4277_s1 = sand.u32 1, %s7479_s2  }
 0x929   : > { %s4278_s15 = scalar_lea.sflag [#allocation5], %s4277_s1 }
 0x92a   : > { %5228 = dma.done.wait (%p4715_p10), %s4278_s15, 512  }
 0x92b   : > { %5230 = vsyncadd (%p4715_p10), %s4278_s15, 4294966784  ;;  %p22_p5 = scmp.ge.s32.totalorder %s5321_s11, 4   ;;  %s7480_s27 = smov %s5237_s28 }
 0x92c   : > { %s7481_s28 = smov %s5241_s29  ;;  %s7482_s29 = smov %s5334_s14 }
 0x92d   : > { %s7483_s30 = smov %s5321_s11  ;;  %24 = sbr.rel (!%p22_p5) target bundleno = 10 (0xa), region = 120 }
 0x932   :  { %4294 = vsyncpa [#allocation3], 1 }
 0x933   :  { %4296 = vsyncpa [#allocation3 + $0x1], 1 }
 0x934   :  { %4297 = vsyncpa [#allocation5], 1 }
 0x935   :  { %4299 = vsyncpa [#allocation5 + $0x1], 1 }

</bundles_post_ra>
